<compile_context>
chip_gen: v7x
topology: tpu7x:2x2x1
jax: 0.10.0
libtpu: 0.0.40
codegen_flags: <defaults>
</compile_context>

<pallas_src>
import functools

import jax
import jax.numpy as jnp
import numpy as np
from jax.experimental import pallas as pl
from jax.experimental.pallas import tpu as pltpu

LANE = 128


# ----------------------------- Pallas kernel ------------------------------- #
def _basic_block_kernel(x_ref, w1_ref, b1_ref, w2_ref, b2_ref, o_ref,
                        xs_ref, o1p_ref, *, H, W, apply_relu2):
    """Fused BasicBlock for one image.

    x_ref  : (Spad, Cp) bf16  zero-padded (H+2, W+2, Cp) image, spatial dims
             flattened row-major (Spad >= (H+2)*(W+2)+2, zero tail).
    w*_ref : (9, Cp, Cp) bf16 3x3 taps with BN scale folded in.
    b*_ref : (1, Cp)  f32     conv bias * bn_scale + bn_shift.
    o_ref  : (Mo, Cp) f32     output on the padded-width (H, W+2) grid; the two
             wrap columns per row are garbage and dropped by the caller.
    xs_ref : (Spad, Cp) f32   VMEM staging of the input (unpacked dtype so all
             shifted-slab slices are plain f32 sublane accesses).
    o1p_ref: (Spad, Cp) f32   VMEM staging of the zero-padded intermediate.
    """
    Wp = W + 2
    Mo = H * Wp
    Cp = o_ref.shape[-1]

    # Columns w >= W of the padded-width grid mix pixels across row boundaries;
    # mask them so they cannot leak into conv2's zero halo.
    col = jax.lax.broadcasted_iota(jnp.int32, (Mo, 1), 0) % Wp
    valid = col < W

    # Stage the bf16 HBM tile once as f32 in VMEM.
    xs_ref[...] = x_ref[...].astype(jnp.float32)

    def conv3x3(src_ref, w_ref):
        # 3x3 / stride-1 conv as 9 accumulating shifted-slab matmuls (MXU,
        # bf16 x bf16 -> f32 accumulate).
        acc = jnp.zeros((Mo, Cp), jnp.float32)
        for dh in range(3):
            for dw in range(3):
                tap = src_ref[pl.ds(dh * Wp + dw, Mo), :].astype(jnp.bfloat16)
                acc = acc + jnp.dot(tap, w_ref[3 * dh + dw],
                                    preferred_element_type=jnp.float32)
        return acc

    # conv1 + fused BN/bias + ReLU, staged in VMEM (never leaves the chip).
    a1 = jnp.maximum(conv3x3(xs_ref, w1_ref) + b1_ref[...], 0.0)
    a1 = jnp.where(valid, a1, 0.0)
    o1p_ref[...] = jnp.zeros_like(o1p_ref)
    o1p_ref[pl.ds(Wp + 1, Mo), :] = a1          # interior of the padded grid

    # conv2 + fused BN/bias + identity residual (+ ReLU).
    a2 = conv3x3(o1p_ref, w2_ref) + b2_ref[...]
    a2 = a2 + xs_ref[pl.ds(Wp + 1, Mo), :]      # residual = input interior
    if apply_relu2:
        a2 = jnp.maximum(a2, 0.0)
    o_ref[...] = a2.astype(o_ref.dtype)


# ------------------------------- JAX glue ---------------------------------- #
def _fuse_conv_bn(w, b, sc, sh, cp):
    """Fold eval-mode BN into conv weights/bias; pad channels to cp lanes."""
    kh, kw, cin, cout = w.shape
    wf = (w * sc).astype(jnp.bfloat16)
    wf = jnp.pad(wf, ((0, 0), (0, 0), (0, cp - cin), (0, cp - cout)))
    wf = wf.reshape(kh * kw, cp, cp)
    bf = jnp.pad(b * sc + sh, (0, cp - cout)).reshape(1, cp).astype(jnp.float32)
    return wf, bf


def basic_block_forward(x_nchw, params, no_relu=False):
    # TODO(synk): stride>1 / downsample branch and training-mode BatchNorm
    # (batch statistics) are not implemented; this matches stride=1,
    # downsample=None, module in eval() mode.
    # TODO(synk): for large H*W or Cout, add grid axes over row-bands (2-row
    # halo) and 128-wide output-channel tiles instead of one image per step.
    x = jnp.transpose(x_nchw, (0, 2, 3, 1))          # NCHW -> NHWC
    N, H, W, C = x.shape
    w1, b1, sc1, sh1, w2, b2, sc2, sh2 = params
    Cm = w1.shape[-1]
    assert C == Cm, "identity residual requires in_channels == out_channels"

    Cp = max(LANE, -(-C // LANE) * LANE)             # lane-dense channel pad
    Wp = W + 2
    S = (H + 2) * Wp
    Mo = H * Wp
    Spad = -(-(S + 2) // 8) * 8                      # headroom for the (2,2) tap

    w1f, b1f = _fuse_conv_bn(w1, b1, sc1, sh1, Cp)
    w2f, b2f = _fuse_conv_bn(w2, b2, sc2, sh2, Cp)

    # One zero-pad of the input (spatial halo + channel lanes), flattened and
    # stored as bf16 -- this is the only activation read from HBM.
    xp = jnp.pad(x, ((0, 0), (1, 1), (1, 1), (0, Cp - C)))
    x_flat = jnp.pad(xp.reshape(N, S, Cp), ((0, 0), (0, Spad - S), (0, 0)))
    x_flat = x_flat.astype(jnp.bfloat16)

    kernel = functools.partial(_basic_block_kernel, H=H, W=W,
                               apply_relu2=not no_relu)
    flops = 2 * N * 2 * 9 * Mo * Cp * Cp
    bytes_accessed = (N * Spad * Cp * 2 + (w1f.size + w2f.size) * 2
                      + (b1f.size + b2f.size) * 4 + N * Mo * Cp * 4)

    out_flat = pl.pallas_call(
        kernel,
        out_shape=jax.ShapeDtypeStruct((N, Mo, Cp), jnp.float32),
        grid=(N,),
        in_specs=[
            pl.BlockSpec((None, Spad, Cp), lambda i: (i, 0, 0)),   # image i
            pl.BlockSpec((9, Cp, Cp), lambda i: (0, 0, 0)),        # w1 (resident)
            pl.BlockSpec((1, Cp), lambda i: (0, 0)),               # b1
            pl.BlockSpec((9, Cp, Cp), lambda i: (0, 0, 0)),        # w2 (resident)
            pl.BlockSpec((1, Cp), lambda i: (0, 0)),               # b2
        ],
        out_specs=pl.BlockSpec((None, Mo, Cp), lambda i: (i, 0, 0)),
        scratch_shapes=[pltpu.VMEM((Spad, Cp), jnp.float32),       # staged x
                        pltpu.VMEM((Spad, Cp), jnp.float32)],      # staged out1
        compiler_params=pltpu.CompilerParams(
            dimension_semantics=("parallel",)),
        cost_estimate=pl.CostEstimate(flops=flops, transcendentals=0,
                                      bytes_accessed=bytes_accessed),
    )(x_flat, w1f, b1f, w2f, b2f)

    out = out_flat.reshape(N, H, Wp, Cp)[:, :, :W, :C]
    return jnp.transpose(out, (0, 3, 1, 2))          # NHWC -> NCHW


def init_basic_block_params(key, in_channels, out_channels, eps=1e-5):
    k1, k2, k3, k4 = jax.random.split(key, 4)
    # kaiming_normal_(mode='fan_out', nonlinearity='relu'): std = sqrt(2/(k*k*Cout))
    std = (2.0 / (9 * out_channels)) ** 0.5
    w1 = std * jax.random.normal(k1, (3, 3, in_channels, out_channels), jnp.float32)
    w2 = std * jax.random.normal(k3, (3, 3, out_channels, out_channels), jnp.float32)
    # nn.Conv2d default bias init: U(-1/sqrt(fan_in), 1/sqrt(fan_in))
    bnd1 = 1.0 / (9 * in_channels) ** 0.5
    bnd2 = 1.0 / (9 * out_channels) ** 0.5
    b1 = jax.random.uniform(k2, (out_channels,), jnp.float32, -bnd1, bnd1)
    b2 = jax.random.uniform(k4, (out_channels,), jnp.float32, -bnd2, bnd2)
    # BatchNorm2d: weight=1, bias=0, running_mean=0, running_var=1 (eval mode)
    gamma = jnp.ones((out_channels,), jnp.float32)
    beta = jnp.zeros((out_channels,), jnp.float32)
    mean = jnp.zeros((out_channels,), jnp.float32)
    var = jnp.ones((out_channels,), jnp.float32)
    sc = gamma / jnp.sqrt(var + eps)
    sh = beta - mean * sc
    return (w1, b1, sc, sh, w2, b2, sc, sh)


def ref_forward(x_nchw, params, no_relu=False):
    """Pure-JAX reference (lax.conv) mirroring the kernel's bf16 rounding so the
    numerical comparison can be tight."""
    x = jnp.transpose(x_nchw, (0, 2, 3, 1))
    w1, b1, sc1, sh1, w2, b2, sc2, sh2 = params
    w1f = (w1 * sc1).astype(jnp.bfloat16).astype(jnp.float32)
    b1f = b1 * sc1 + sh1
    w2f = (w2 * sc2).astype(jnp.bfloat16).astype(jnp.float32)
    b2f = b2 * sc2 + sh2
    xc = x.astype(jnp.bfloat16).astype(jnp.float32)

    def conv(v, w):
        return jax.lax.conv_general_dilated(
            v, w, (1, 1), "SAME",
            dimension_numbers=("NHWC", "HWIO", "NHWC"))

    o = jnp.maximum(conv(xc, w1f) + b1f, 0.0)
    o = o.astype(jnp.bfloat16).astype(jnp.float32)   # kernel feeds bf16 to conv2
    o = conv(o, w2f) + b2f + xc
    if not no_relu:
        o = jnp.maximum(o, 0.0)
    return jnp.transpose(o, (0, 3, 1, 2))


# --------------------------------- main ------------------------------------ #
if __name__ == "__main__":
    key = jax.random.PRNGKey(0)
    k_x, k_p = jax.random.split(key)

    N, C, H, W = 2, 4, 16, 16  # in_channels == out_channels == 4, stride = 1
    x_nchw = jax.random.normal(k_x, (N, C, H, W), jnp.float32)
    params = init_basic_block_params(k_p, C, C)

    fwd = jax.jit(functools.partial(basic_block_forward, no_relu=False))
    out = jax.block_until_ready(fwd(x_nchw, params))

    ref = jax.block_until_ready(ref_forward(x_nchw, params, no_relu=False))
    assert out.shape == (N, C, H, W)
    np.testing.assert_allclose(np.asarray(out), np.asarray(ref),
                               rtol=2e-3, atol=2e-3)

    print("KERNEL_OK")
</pallas_src>

<mosaic_0001>
module attributes {stable_mosaic.version = 11 : i64} {
  func.func @_basic_block_kernel(%arg0: i32, %arg1: memref<1x328x128xbf16, #tpu.memory_space<vmem>>, %arg2: memref<9x128x128xbf16, #tpu.memory_space<vmem>>, %arg3: memref<1x128xf32, #tpu.memory_space<vmem>>, %arg4: memref<9x128x128xbf16, #tpu.memory_space<vmem>>, %arg5: memref<1x128xf32, #tpu.memory_space<vmem>>, %arg6: memref<1x288x128xf32, #tpu.memory_space<vmem>>, %arg7: memref<328x128xf32, #tpu.memory_space<vmem>>, %arg8: memref<328x128xf32, #tpu.memory_space<vmem>>) attributes {dimension_semantics = [#tpu.dimension_semantics<parallel>], iteration_bounds = array<i64: 2>, scalar_prefetch = 0 : i64, scratch_operands = 2 : i64, tpu.core_type = #tpu.core_type<tc>, window_params = [{transform_indices = @transform_0, window_bounds = array<i64: 1, 328, 128>}, {pipeline_mode = #tpu.pipeline_mode<synchronous>, transform_indices = @transform_1, window_bounds = array<i64: 9, 128, 128>}, {pipeline_mode = #tpu.pipeline_mode<synchronous>, transform_indices = @transform_2, window_bounds = array<i64: 1, 128>}, {pipeline_mode = #tpu.pipeline_mode<synchronous>, transform_indices = @transform_3, window_bounds = array<i64: 9, 128, 128>}, {pipeline_mode = #tpu.pipeline_mode<synchronous>, transform_indices = @transform_4, window_bounds = array<i64: 1, 128>}, {transform_indices = @transform_5, window_bounds = array<i64: 1, 288, 128>}]} {
    %0 = tpu.iota {dimensions = array<i32: 0>} : vector<288x1xi32>
    %c18_i32 = arith.constant 18 : i32
    %c0_i32 = arith.constant 0 : i32
    %1 = arith.cmpi eq, %c18_i32, %c0_i32 : i32
    %c1_i32 = arith.constant 1 : i32
    %2 = arith.select %1, %c1_i32, %c18_i32 : i32
    %3 = vector.broadcast %2 : i32 to vector<288x1xi32>
    %4 = arith.remsi %0, %3 : vector<288x1xi32>
    %c0_i32_0 = arith.constant 0 : i32
    %5 = vector.broadcast %c0_i32_0 : i32 to vector<288x1xi32>
    %6 = arith.cmpi ne, %4, %5 : vector<288x1xi32>
    %c0_i32_1 = arith.constant 0 : i32
    %7 = vector.broadcast %c0_i32_1 : i32 to vector<288x1xi32>
    %8 = arith.cmpi slt, %4, %7 : vector<288x1xi32>
    %c0_i32_2 = arith.constant 0 : i32
    %9 = arith.cmpi slt, %2, %c0_i32_2 : i32
    %10 = vector.broadcast %9 : i1 to vector<288x1xi1>
    %11 = vector.broadcast %10 : vector<288x1xi1> to vector<288x1xi1>
    %12 = arith.xori %8, %11 : vector<288x1xi1>
    %13 = arith.andi %12, %6 : vector<288x1xi1>
    %14 = vector.broadcast %2 : i32 to vector<288x1xi32>
    %15 = arith.addi %4, %14 : vector<288x1xi32>
    %16 = arith.select %13, %15, %4 : vector<288x1xi1>, vector<288x1xi32>
    %c16_i32 = arith.constant 16 : i32
    %17 = vector.broadcast %c16_i32 : i32 to vector<288x1xi32>
    %18 = arith.cmpi slt, %16, %17 : vector<288x1xi32>
    %c0 = arith.constant 0 : index
    %c0_3 = arith.constant 0 : index
    %c0_4 = arith.constant 0 : index
    %19 = vector.load %arg1[%c0, %c0_3, %c0_4] : memref<1x328x128xbf16, #tpu.memory_space<vmem>>, vector<1x328x128xbf16>
    %20 = vector.shape_cast %19 : vector<1x328x128xbf16> to vector<328x128xbf16>
    %21 = arith.extf %20 : vector<328x128xbf16> to vector<328x128xf32>
    %c0_5 = arith.constant 0 : index
    %c0_6 = arith.constant 0 : index
    %22 = vector.load %arg7[%c0_5, %c0_6] : memref<328x128xf32, #tpu.memory_space<vmem>>, vector<328x128xf32>
    tpu.vector_store %arg7[%c0_5, %c0_6], %21 {strides = array<i32>} : memref<328x128xf32, #tpu.memory_space<vmem>>, vector<328x128xf32>,
    %cst = arith.constant 0.000000e+00 : f32
    %23 = vector.broadcast %cst : f32 to vector<288x128xf32>
    %c0_7 = arith.constant 0 : index
    %c0_8 = arith.constant 0 : index
    %24 = vector.load %arg7[%c0_7, %c0_8] : memref<328x128xf32, #tpu.memory_space<vmem>>, vector<288x128xf32>
    %25 = arith.truncf %24 : vector<288x128xf32> to vector<288x128xbf16>
    %c0_9 = arith.constant 0 : index
    %c0_10 = arith.constant 0 : index
    %c0_11 = arith.constant 0 : index
    %26 = vector.load %arg2[%c0_9, %c0_10, %c0_11] : memref<9x128x128xbf16, #tpu.memory_space<vmem>>, vector<1x128x128xbf16>
    %27 = vector.shape_cast %26 : vector<1x128x128xbf16> to vector<128x128xbf16>
    %cst_12 = arith.constant dense<0.000000e+00> : vector<288x128xf32>
    %28 = tpu.matmul %25, %27, %cst_12 {dimension_numbers = #tpu.dot_dimension_numbers<[1], [0], [0], [1], [0, 0, 1, 1], [], []>} : vector<288x128xbf16>, vector<128x128xbf16>, vector<288x128xf32> -> vector<288x128xf32>
    %29 = arith.addf %23, %28 : vector<288x128xf32>
    %c1 = arith.constant 1 : index
    %c0_13 = arith.constant 0 : index
    %30 = vector.load %arg7[%c1, %c0_13] : memref<328x128xf32, #tpu.memory_space<vmem>>, vector<288x128xf32>
    %31 = arith.truncf %30 : vector<288x128xf32> to vector<288x128xbf16>
    %c1_14 = arith.constant 1 : index
    %c0_15 = arith.constant 0 : index
    %c0_16 = arith.constant 0 : index
    %32 = vector.load %arg2[%c1_14, %c0_15, %c0_16] : memref<9x128x128xbf16, #tpu.memory_space<vmem>>, vector<1x128x128xbf16>
    %33 = vector.shape_cast %32 : vector<1x128x128xbf16> to vector<128x128xbf16>
    %cst_17 = arith.constant dense<0.000000e+00> : vector<288x128xf32>
    %34 = tpu.matmul %31, %33, %cst_17 {dimension_numbers = #tpu.dot_dimension_numbers<[1], [0], [0], [1], [0, 0, 1, 1], [], []>} : vector<288x128xbf16>, vector<128x128xbf16>, vector<288x128xf32> -> vector<288x128xf32>
    %35 = arith.addf %29, %34 : vector<288x128xf32>
    %c2 = arith.constant 2 : index
    %c0_18 = arith.constant 0 : index
    %36 = vector.load %arg7[%c2, %c0_18] : memref<328x128xf32, #tpu.memory_space<vmem>>, vector<288x128xf32>
    %37 = arith.truncf %36 : vector<288x128xf32> to vector<288x128xbf16>
    %c2_19 = arith.constant 2 : index
    %c0_20 = arith.constant 0 : index
    %c0_21 = arith.constant 0 : index
    %38 = vector.load %arg2[%c2_19, %c0_20, %c0_21] : memref<9x128x128xbf16, #tpu.memory_space<vmem>>, vector<1x128x128xbf16>
    %39 = vector.shape_cast %38 : vector<1x128x128xbf16> to vector<128x128xbf16>
    %cst_22 = arith.constant dense<0.000000e+00> : vector<288x128xf32>
    %40 = tpu.matmul %37, %39, %cst_22 {dimension_numbers = #tpu.dot_dimension_numbers<[1], [0], [0], [1], [0, 0, 1, 1], [], []>} : vector<288x128xbf16>, vector<128x128xbf16>, vector<288x128xf32> -> vector<288x128xf32>
    %41 = arith.addf %35, %40 : vector<288x128xf32>
    %c18 = arith.constant 18 : index
    %c0_23 = arith.constant 0 : index
    %42 = vector.load %arg7[%c18, %c0_23] : memref<328x128xf32, #tpu.memory_space<vmem>>, vector<288x128xf32>
    %43 = arith.truncf %42 : vector<288x128xf32> to vector<288x128xbf16>
    %c3 = arith.constant 3 : index
    %c0_24 = arith.constant 0 : index
    %c0_25 = arith.constant 0 : index
    %44 = vector.load %arg2[%c3, %c0_24, %c0_25] : memref<9x128x128xbf16, #tpu.memory_space<vmem>>, vector<1x128x128xbf16>
    %45 = vector.shape_cast %44 : vector<1x128x128xbf16> to vector<128x128xbf16>
    %cst_26 = arith.constant dense<0.000000e+00> : vector<288x128xf32>
    %46 = tpu.matmul %43, %45, %cst_26 {dimension_numbers = #tpu.dot_dimension_numbers<[1], [0], [0], [1], [0, 0, 1, 1], [], []>} : vector<288x128xbf16>, vector<128x128xbf16>, vector<288x128xf32> -> vector<288x128xf32>
    %47 = arith.addf %41, %46 : vector<288x128xf32>
    %c19 = arith.constant 19 : index
    %c0_27 = arith.constant 0 : index
    %48 = vector.load %arg7[%c19, %c0_27] : memref<328x128xf32, #tpu.memory_space<vmem>>, vector<288x128xf32>
    %49 = arith.truncf %48 : vector<288x128xf32> to vector<288x128xbf16>
    %c4 = arith.constant 4 : index
    %c0_28 = arith.constant 0 : index
    %c0_29 = arith.constant 0 : index
    %50 = vector.load %arg2[%c4, %c0_28, %c0_29] : memref<9x128x128xbf16, #tpu.memory_space<vmem>>, vector<1x128x128xbf16>
    %51 = vector.shape_cast %50 : vector<1x128x128xbf16> to vector<128x128xbf16>
    %cst_30 = arith.constant dense<0.000000e+00> : vector<288x128xf32>
    %52 = tpu.matmul %49, %51, %cst_30 {dimension_numbers = #tpu.dot_dimension_numbers<[1], [0], [0], [1], [0, 0, 1, 1], [], []>} : vector<288x128xbf16>, vector<128x128xbf16>, vector<288x128xf32> -> vector<288x128xf32>
    %53 = arith.addf %47, %52 : vector<288x128xf32>
    %c20 = arith.constant 20 : index
    %c0_31 = arith.constant 0 : index
    %54 = vector.load %arg7[%c20, %c0_31] : memref<328x128xf32, #tpu.memory_space<vmem>>, vector<288x128xf32>
    %55 = arith.truncf %54 : vector<288x128xf32> to vector<288x128xbf16>
    %c5 = arith.constant 5 : index
    %c0_32 = arith.constant 0 : index
    %c0_33 = arith.constant 0 : index
    %56 = vector.load %arg2[%c5, %c0_32, %c0_33] : memref<9x128x128xbf16, #tpu.memory_space<vmem>>, vector<1x128x128xbf16>
    %57 = vector.shape_cast %56 : vector<1x128x128xbf16> to vector<128x128xbf16>
    %cst_34 = arith.constant dense<0.000000e+00> : vector<288x128xf32>
    %58 = tpu.matmul %55, %57, %cst_34 {dimension_numbers = #tpu.dot_dimension_numbers<[1], [0], [0], [1], [0, 0, 1, 1], [], []>} : vector<288x128xbf16>, vector<128x128xbf16>, vector<288x128xf32> -> vector<288x128xf32>
    %59 = arith.addf %53, %58 : vector<288x128xf32>
    %c36 = arith.constant 36 : index
    %c0_35 = arith.constant 0 : index
    %60 = vector.load %arg7[%c36, %c0_35] : memref<328x128xf32, #tpu.memory_space<vmem>>, vector<288x128xf32>
    %61 = arith.truncf %60 : vector<288x128xf32> to vector<288x128xbf16>
    %c6 = arith.constant 6 : index
    %c0_36 = arith.constant 0 : index
    %c0_37 = arith.constant 0 : index
    %62 = vector.load %arg2[%c6, %c0_36, %c0_37] : memref<9x128x128xbf16, #tpu.memory_space<vmem>>, vector<1x128x128xbf16>
    %63 = vector.shape_cast %62 : vector<1x128x128xbf16> to vector<128x128xbf16>
    %cst_38 = arith.constant dense<0.000000e+00> : vector<288x128xf32>
    %64 = tpu.matmul %61, %63, %cst_38 {dimension_numbers = #tpu.dot_dimension_numbers<[1], [0], [0], [1], [0, 0, 1, 1], [], []>} : vector<288x128xbf16>, vector<128x128xbf16>, vector<288x128xf32> -> vector<288x128xf32>
    %65 = arith.addf %59, %64 : vector<288x128xf32>
    %c37 = arith.constant 37 : index
    %c0_39 = arith.constant 0 : index
    %66 = vector.load %arg7[%c37, %c0_39] : memref<328x128xf32, #tpu.memory_space<vmem>>, vector<288x128xf32>
    %67 = arith.truncf %66 : vector<288x128xf32> to vector<288x128xbf16>
    %c7 = arith.constant 7 : index
    %c0_40 = arith.constant 0 : index
    %c0_41 = arith.constant 0 : index
    %68 = vector.load %arg2[%c7, %c0_40, %c0_41] : memref<9x128x128xbf16, #tpu.memory_space<vmem>>, vector<1x128x128xbf16>
    %69 = vector.shape_cast %68 : vector<1x128x128xbf16> to vector<128x128xbf16>
    %cst_42 = arith.constant dense<0.000000e+00> : vector<288x128xf32>
    %70 = tpu.matmul %67, %69, %cst_42 {dimension_numbers = #tpu.dot_dimension_numbers<[1], [0], [0], [1], [0, 0, 1, 1], [], []>} : vector<288x128xbf16>, vector<128x128xbf16>, vector<288x128xf32> -> vector<288x128xf32>
    %71 = arith.addf %65, %70 : vector<288x128xf32>
    %c38 = arith.constant 38 : index
    %c0_43 = arith.constant 0 : index
    %72 = vector.load %arg7[%c38, %c0_43] : memref<328x128xf32, #tpu.memory_space<vmem>>, vector<288x128xf32>
    %73 = arith.truncf %72 : vector<288x128xf32> to vector<288x128xbf16>
    %c8 = arith.constant 8 : index
    %c0_44 = arith.constant 0 : index
    %c0_45 = arith.constant 0 : index
    %74 = vector.load %arg2[%c8, %c0_44, %c0_45] : memref<9x128x128xbf16, #tpu.memory_space<vmem>>, vector<1x128x128xbf16>
    %75 = vector.shape_cast %74 : vector<1x128x128xbf16> to vector<128x128xbf16>
    %cst_46 = arith.constant dense<0.000000e+00> : vector<288x128xf32>
    %76 = tpu.matmul %73, %75, %cst_46 {dimension_numbers = #tpu.dot_dimension_numbers<[1], [0], [0], [1], [0, 0, 1, 1], [], []>} : vector<288x128xbf16>, vector<128x128xbf16>, vector<288x128xf32> -> vector<288x128xf32>
    %77 = arith.addf %71, %76 : vector<288x128xf32>
    %c0_47 = arith.constant 0 : index
    %c0_48 = arith.constant 0 : index
    %78 = vector.load %arg3[%c0_47, %c0_48] : memref<1x128xf32, #tpu.memory_space<vmem>>, vector<1x128xf32>
    %79 = vector.broadcast %78 : vector<1x128xf32> to vector<288x128xf32>
    %80 = arith.addf %77, %79 : vector<288x128xf32>
    %cst_49 = arith.constant 0.000000e+00 : f32
    %81 = vector.broadcast %cst_49 : f32 to vector<288x128xf32>
    %82 = arith.maximumf %80, %81 : vector<288x128xf32>
    %cst_50 = arith.constant 0.000000e+00 : f32
    %83 = vector.shape_cast %18 : vector<288x1xi1> to vector<288x1xi1>
    %84 = vector.broadcast %83 : vector<288x1xi1> to vector<288x128xi1>
    %85 = vector.broadcast %cst_50 : f32 to vector<288x128xf32>
    %86 = arith.select %84, %82, %85 : vector<288x128xi1>, vector<288x128xf32>
    %cst_51 = arith.constant 0.000000e+00 : f32
    %87 = vector.broadcast %cst_51 : f32 to vector<328x128xf32>
    %c0_52 = arith.constant 0 : index
    %c0_53 = arith.constant 0 : index
    %88 = vector.load %arg8[%c0_52, %c0_53] : memref<328x128xf32, #tpu.memory_space<vmem>>, vector<328x128xf32>
    tpu.vector_store %arg8[%c0_52, %c0_53], %87 {strides = array<i32>} : memref<328x128xf32, #tpu.memory_space<vmem>>, vector<328x128xf32>,
    %c19_54 = arith.constant 19 : index
    %c0_55 = arith.constant 0 : index
    %89 = vector.load %arg8[%c19_54, %c0_55] : memref<328x128xf32, #tpu.memory_space<vmem>>, vector<288x128xf32>
    tpu.vector_store %arg8[%c19_54, %c0_55], %86 {strides = array<i32>} : memref<328x128xf32, #tpu.memory_space<vmem>>, vector<288x128xf32>,
    %cst_56 = arith.constant 0.000000e+00 : f32
    %90 = vector.broadcast %cst_56 : f32 to vector<288x128xf32>
    %c0_57 = arith.constant 0 : index
    %c0_58 = arith.constant 0 : index
    %91 = vector.load %arg8[%c0_57, %c0_58] : memref<328x128xf32, #tpu.memory_space<vmem>>, vector<288x128xf32>
    %92 = arith.truncf %91 : vector<288x128xf32> to vector<288x128xbf16>
    %c0_59 = arith.constant 0 : index
    %c0_60 = arith.constant 0 : index
    %c0_61 = arith.constant 0 : index
    %93 = vector.load %arg4[%c0_59, %c0_60, %c0_61] : memref<9x128x128xbf16, #tpu.memory_space<vmem>>, vector<1x128x128xbf16>
    %94 = vector.shape_cast %93 : vector<1x128x128xbf16> to vector<128x128xbf16>
    %cst_62 = arith.constant dense<0.000000e+00> : vector<288x128xf32>
    %95 = tpu.matmul %92, %94, %cst_62 {dimension_numbers = #tpu.dot_dimension_numbers<[1], [0], [0], [1], [0, 0, 1, 1], [], []>} : vector<288x128xbf16>, vector<128x128xbf16>, vector<288x128xf32> -> vector<288x128xf32>
    %96 = arith.addf %90, %95 : vector<288x128xf32>
    %c1_63 = arith.constant 1 : index
    %c0_64 = arith.constant 0 : index
    %97 = vector.load %arg8[%c1_63, %c0_64] : memref<328x128xf32, #tpu.memory_space<vmem>>, vector<288x128xf32>
    %98 = arith.truncf %97 : vector<288x128xf32> to vector<288x128xbf16>
    %c1_65 = arith.constant 1 : index
    %c0_66 = arith.constant 0 : index
    %c0_67 = arith.constant 0 : index
    %99 = vector.load %arg4[%c1_65, %c0_66, %c0_67] : memref<9x128x128xbf16, #tpu.memory_space<vmem>>, vector<1x128x128xbf16>
    %100 = vector.shape_cast %99 : vector<1x128x128xbf16> to vector<128x128xbf16>
    %cst_68 = arith.constant dense<0.000000e+00> : vector<288x128xf32>
    %101 = tpu.matmul %98, %100, %cst_68 {dimension_numbers = #tpu.dot_dimension_numbers<[1], [0], [0], [1], [0, 0, 1, 1], [], []>} : vector<288x128xbf16>, vector<128x128xbf16>, vector<288x128xf32> -> vector<288x128xf32>
    %102 = arith.addf %96, %101 : vector<288x128xf32>
    %c2_69 = arith.constant 2 : index
    %c0_70 = arith.constant 0 : index
    %103 = vector.load %arg8[%c2_69, %c0_70] : memref<328x128xf32, #tpu.memory_space<vmem>>, vector<288x128xf32>
    %104 = arith.truncf %103 : vector<288x128xf32> to vector<288x128xbf16>
    %c2_71 = arith.constant 2 : index
    %c0_72 = arith.constant 0 : index
    %c0_73 = arith.constant 0 : index
    %105 = vector.load %arg4[%c2_71, %c0_72, %c0_73] : memref<9x128x128xbf16, #tpu.memory_space<vmem>>, vector<1x128x128xbf16>
    %106 = vector.shape_cast %105 : vector<1x128x128xbf16> to vector<128x128xbf16>
    %cst_74 = arith.constant dense<0.000000e+00> : vector<288x128xf32>
    %107 = tpu.matmul %104, %106, %cst_74 {dimension_numbers = #tpu.dot_dimension_numbers<[1], [0], [0], [1], [0, 0, 1, 1], [], []>} : vector<288x128xbf16>, vector<128x128xbf16>, vector<288x128xf32> -> vector<288x128xf32>
    %108 = arith.addf %102, %107 : vector<288x128xf32>
    %c18_75 = arith.constant 18 : index
    %c0_76 = arith.constant 0 : index
    %109 = vector.load %arg8[%c18_75, %c0_76] : memref<328x128xf32, #tpu.memory_space<vmem>>, vector<288x128xf32>
    %110 = arith.truncf %109 : vector<288x128xf32> to vector<288x128xbf16>
    %c3_77 = arith.constant 3 : index
    %c0_78 = arith.constant 0 : index
    %c0_79 = arith.constant 0 : index
    %111 = vector.load %arg4[%c3_77, %c0_78, %c0_79] : memref<9x128x128xbf16, #tpu.memory_space<vmem>>, vector<1x128x128xbf16>
    %112 = vector.shape_cast %111 : vector<1x128x128xbf16> to vector<128x128xbf16>
    %cst_80 = arith.constant dense<0.000000e+00> : vector<288x128xf32>
    %113 = tpu.matmul %110, %112, %cst_80 {dimension_numbers = #tpu.dot_dimension_numbers<[1], [0], [0], [1], [0, 0, 1, 1], [], []>} : vector<288x128xbf16>, vector<128x128xbf16>, vector<288x128xf32> -> vector<288x128xf32>
    %114 = arith.addf %108, %113 : vector<288x128xf32>
    %c19_81 = arith.constant 19 : index
    %c0_82 = arith.constant 0 : index
    %115 = vector.load %arg8[%c19_81, %c0_82] : memref<328x128xf32, #tpu.memory_space<vmem>>, vector<288x128xf32>
    %116 = arith.truncf %115 : vector<288x128xf32> to vector<288x128xbf16>
    %c4_83 = arith.constant 4 : index
    %c0_84 = arith.constant 0 : index
    %c0_85 = arith.constant 0 : index
    %117 = vector.load %arg4[%c4_83, %c0_84, %c0_85] : memref<9x128x128xbf16, #tpu.memory_space<vmem>>, vector<1x128x128xbf16>
    %118 = vector.shape_cast %117 : vector<1x128x128xbf16> to vector<128x128xbf16>
    %cst_86 = arith.constant dense<0.000000e+00> : vector<288x128xf32>
    %119 = tpu.matmul %116, %118, %cst_86 {dimension_numbers = #tpu.dot_dimension_numbers<[1], [0], [0], [1], [0, 0, 1, 1], [], []>} : vector<288x128xbf16>, vector<128x128xbf16>, vector<288x128xf32> -> vector<288x128xf32>
    %120 = arith.addf %114, %119 : vector<288x128xf32>
    %c20_87 = arith.constant 20 : index
    %c0_88 = arith.constant 0 : index
    %121 = vector.load %arg8[%c20_87, %c0_88] : memref<328x128xf32, #tpu.memory_space<vmem>>, vector<288x128xf32>
    %122 = arith.truncf %121 : vector<288x128xf32> to vector<288x128xbf16>
    %c5_89 = arith.constant 5 : index
    %c0_90 = arith.constant 0 : index
    %c0_91 = arith.constant 0 : index
    %123 = vector.load %arg4[%c5_89, %c0_90, %c0_91] : memref<9x128x128xbf16, #tpu.memory_space<vmem>>, vector<1x128x128xbf16>
    %124 = vector.shape_cast %123 : vector<1x128x128xbf16> to vector<128x128xbf16>
    %cst_92 = arith.constant dense<0.000000e+00> : vector<288x128xf32>
    %125 = tpu.matmul %122, %124, %cst_92 {dimension_numbers = #tpu.dot_dimension_numbers<[1], [0], [0], [1], [0, 0, 1, 1], [], []>} : vector<288x128xbf16>, vector<128x128xbf16>, vector<288x128xf32> -> vector<288x128xf32>
    %126 = arith.addf %120, %125 : vector<288x128xf32>
    %c36_93 = arith.constant 36 : index
    %c0_94 = arith.constant 0 : index
    %127 = vector.load %arg8[%c36_93, %c0_94] : memref<328x128xf32, #tpu.memory_space<vmem>>, vector<288x128xf32>
    %128 = arith.truncf %127 : vector<288x128xf32> to vector<288x128xbf16>
    %c6_95 = arith.constant 6 : index
    %c0_96 = arith.constant 0 : index
    %c0_97 = arith.constant 0 : index
    %129 = vector.load %arg4[%c6_95, %c0_96, %c0_97] : memref<9x128x128xbf16, #tpu.memory_space<vmem>>, vector<1x128x128xbf16>
    %130 = vector.shape_cast %129 : vector<1x128x128xbf16> to vector<128x128xbf16>
    %cst_98 = arith.constant dense<0.000000e+00> : vector<288x128xf32>
    %131 = tpu.matmul %128, %130, %cst_98 {dimension_numbers = #tpu.dot_dimension_numbers<[1], [0], [0], [1], [0, 0, 1, 1], [], []>} : vector<288x128xbf16>, vector<128x128xbf16>, vector<288x128xf32> -> vector<288x128xf32>
    %132 = arith.addf %126, %131 : vector<288x128xf32>
    %c37_99 = arith.constant 37 : index
    %c0_100 = arith.constant 0 : index
    %133 = vector.load %arg8[%c37_99, %c0_100] : memref<328x128xf32, #tpu.memory_space<vmem>>, vector<288x128xf32>
    %134 = arith.truncf %133 : vector<288x128xf32> to vector<288x128xbf16>
    %c7_101 = arith.constant 7 : index
    %c0_102 = arith.constant 0 : index
    %c0_103 = arith.constant 0 : index
    %135 = vector.load %arg4[%c7_101, %c0_102, %c0_103] : memref<9x128x128xbf16, #tpu.memory_space<vmem>>, vector<1x128x128xbf16>
    %136 = vector.shape_cast %135 : vector<1x128x128xbf16> to vector<128x128xbf16>
    %cst_104 = arith.constant dense<0.000000e+00> : vector<288x128xf32>
    %137 = tpu.matmul %134, %136, %cst_104 {dimension_numbers = #tpu.dot_dimension_numbers<[1], [0], [0], [1], [0, 0, 1, 1], [], []>} : vector<288x128xbf16>, vector<128x128xbf16>, vector<288x128xf32> -> vector<288x128xf32>
    %138 = arith.addf %132, %137 : vector<288x128xf32>
    %c38_105 = arith.constant 38 : index
    %c0_106 = arith.constant 0 : index
    %139 = vector.load %arg8[%c38_105, %c0_106] : memref<328x128xf32, #tpu.memory_space<vmem>>, vector<288x128xf32>
    %140 = arith.truncf %139 : vector<288x128xf32> to vector<288x128xbf16>
    %c8_107 = arith.constant 8 : index
    %c0_108 = arith.constant 0 : index
    %c0_109 = arith.constant 0 : index
    %141 = vector.load %arg4[%c8_107, %c0_108, %c0_109] : memref<9x128x128xbf16, #tpu.memory_space<vmem>>, vector<1x128x128xbf16>
    %142 = vector.shape_cast %141 : vector<1x128x128xbf16> to vector<128x128xbf16>
    %cst_110 = arith.constant dense<0.000000e+00> : vector<288x128xf32>
    %143 = tpu.matmul %140, %142, %cst_110 {dimension_numbers = #tpu.dot_dimension_numbers<[1], [0], [0], [1], [0, 0, 1, 1], [], []>} : vector<288x128xbf16>, vector<128x128xbf16>, vector<288x128xf32> -> vector<288x128xf32>
    %144 = arith.addf %138, %143 : vector<288x128xf32>
    %c0_111 = arith.constant 0 : index
    %c0_112 = arith.constant 0 : index
    %145 = vector.load %arg5[%c0_111, %c0_112] : memref<1x128xf32, #tpu.memory_space<vmem>>, vector<1x128xf32>
    %146 = vector.broadcast %145 : vector<1x128xf32> to vector<288x128xf32>
    %147 = arith.addf %144, %146 : vector<288x128xf32>
    %c19_113 = arith.constant 19 : index
    %c0_114 = arith.constant 0 : index
    %148 = vector.load %arg7[%c19_113, %c0_114] : memref<328x128xf32, #tpu.memory_space<vmem>>, vector<288x128xf32>
    %149 = arith.addf %147, %148 : vector<288x128xf32>
    %cst_115 = arith.constant 0.000000e+00 : f32
    %150 = vector.broadcast %cst_115 : f32 to vector<288x128xf32>
    %151 = arith.maximumf %149, %150 : vector<288x128xf32>
    %c0_116 = arith.constant 0 : index
    %c0_117 = arith.constant 0 : index
    %c0_118 = arith.constant 0 : index
    %152 = vector.load %arg6[%c0_116, %c0_117, %c0_118] : memref<1x288x128xf32, #tpu.memory_space<vmem>>, vector<1x288x128xf32>
    %153 = vector.shape_cast %152 : vector<1x288x128xf32> to vector<288x128xf32>
    %154 = vector.shape_cast %151 : vector<288x128xf32> to vector<1x288x128xf32>
    tpu.vector_store %arg6[%c0_116, %c0_117, %c0_118], %154 {strides = array<i32>} : memref<1x288x128xf32, #tpu.memory_space<vmem>>, vector<1x288x128xf32>,
    return
  }
  func.func @transform_0(%arg0: i32) -> (i32, i32, i32) {
    %c0_i32 = arith.constant 0 : i32
    %c0_i32_0 = arith.constant 0 : i32
    %c0_i32_1 = arith.constant 0 : i32
    return %arg0, %c0_i32, %c0_i32_0 : i32, i32, i32
  }
  func.func @transform_1(%arg0: i32) -> (i32, i32, i32) {
    %c0_i32 = arith.constant 0 : i32
    %c0_i32_0 = arith.constant 0 : i32
    %c0_i32_1 = arith.constant 0 : i32
    %c0_i32_2 = arith.constant 0 : i32
    return %c0_i32, %c0_i32_0, %c0_i32_1 : i32, i32, i32
  }
  func.func @transform_2(%arg0: i32) -> (i32, i32) {
    %c0_i32 = arith.constant 0 : i32
    %c0_i32_0 = arith.constant 0 : i32
    %c0_i32_1 = arith.constant 0 : i32
    return %c0_i32, %c0_i32_0 : i32, i32
  }
  func.func @transform_3(%arg0: i32) -> (i32, i32, i32) {
    %c0_i32 = arith.constant 0 : i32
    %c0_i32_0 = arith.constant 0 : i32
    %c0_i32_1 = arith.constant 0 : i32
    %c0_i32_2 = arith.constant 0 : i32
    return %c0_i32, %c0_i32_0, %c0_i32_1 : i32, i32, i32
  }
  func.func @transform_4(%arg0: i32) -> (i32, i32) {
    %c0_i32 = arith.constant 0 : i32
    %c0_i32_0 = arith.constant 0 : i32
    %c0_i32_1 = arith.constant 0 : i32
    return %c0_i32, %c0_i32_0 : i32, i32
  }
  func.func @transform_5(%arg0: i32) -> (i32, i32, i32) {
    %c0_i32 = arith.constant 0 : i32
    %c0_i32_0 = arith.constant 0 : i32
    %c0_i32_1 = arith.constant 0 : i32
    return %arg0, %c0_i32, %c0_i32_0 : i32, i32, i32
  }
}

</mosaic_0001>

<bundles_post_ra>
// kernel: basic_block_forward.1
= control target key start
LH: loop header
LB: loop body
LE: loop exit
PB: predicated region body
PF: predicated region fallthrough
CT: control target
= control target key end

     0   :  { %s10116_s18 = smov 0   ;;  %s12180_s0 = inlined_call_operand.vmem [shape: bf16[2,328,128], index: 0, kind: input, shape index: {}]   ;;  %s12181_s1 = inlined_call_operand.vmem [shape: bf16[9,128,128], index: 1, kind: input, shape index: {}]   ;;  %s12182_s2 = inlined_call_operand.vmem [shape: f32[1,128], index: 2, kind: input, shape index: {}]   ;;  %s12183_s3 = inlined_call_operand.vmem [shape: bf16[9,128,128], index: 3, kind: input, shape index: {}]   ;;  %s12184_s4 = inlined_call_operand.vmem [shape: f32[1,128], index: 4, kind: input, shape index: {}]   ;;  %s12185_s5 = inlined_call_operand.vmem [shape: f32[2,288,128], index: 5, kind: output, shape index: {}]  }
   0x1 LB: > { %s7334_s19 = sadd.s32 4294967295, %s10082_s18   ;;  %p7338_p0 = scmp.ge.s32.totalorder %s10082_s18, 1  ;;  %s10082_s18 = sphi %s10116_s18, %s15_s18  }
   0x2   : > { %p187_p1 = scmp.lt.s32.totalorder %s10082_s18, 3 }
   0x4   : > { %p188_p2 = pnand %p7338_p0, %p187_p1 }
   0x6   : > { %191 = sbr.rel (%p188_p2) target bundleno = 1721 (0x6b9), region = 40 }
   0xd   : > { %v9907_v0 = vld [vmem:[%s12181_s1 + $0x40] sm:$0xff]   ;;  %p215_p3 = scmp.lt.s32.totalorder %s7334_s19, 1  ;;  %v9908_v1 = vld [vmem:[%s12181_s1 + $0x48] sm:$0xff]   ;;  %v9909_v2 = vld [vmem:[%s12181_s1 + $0x50] sm:$0xff]  }
   0xe   : > { %8312 = vmatprep.subr.bf16.mxu0 %v9907_v0  ;;  %v9910_v3 = vld [vmem:[%s12181_s1 + $0x58] sm:$0xff]   ;;  %v9911_v15 = vld [vmem:[%s12181_s1 + $0x60] sm:$0xff]   ;;  %v9912_v34 = vld [vmem:[%s12181_s1 + $0x68] sm:$0xff]  }
   0xf   : > { %s12415_s19 = smov (!%p215_p3, %s7334_s19), 1  ;;  %8313 = vmatpush3.bf16.msra.mxu0 %v9907_v0  ;;  %v9913_v48 = vld [vmem:[%s12181_s1 + $0x70] sm:$0xff]   ;;  %v9914_v52 = vld [vmem:[%s12181_s1 + $0x78] sm:$0xff]   ;;  %v9915_v57 = vld [vmem:[%s12181_s1] sm:$0xff]  }
  0x10   : > { %8314 = vmatprep.subr.bf16.mxu0 %v9908_v1  ;;  %s9824_s26 = smul.u32 164, %s12415_s19 }
  0x11   : > { %s9825_s20 = smul.u32 288, %s12415_s19 }
  0x12   : > { %s10139_s29 = scalar_lea.vmem %s12180_s0, %s9824_s26 }
  0x13   : > { %8315 = vmatpush3.bf16.msra.mxu0 %v9908_v1  ;;  %v7746_v4 = vld [vmem:[%s10139_s29] sm:$0xff]   ;;  %v7825_v5 = vld [vmem:[%s10139_s29 + $0x8] sm:$0xff]   ;;  %v7826_v6 = vld [vmem:[%s10139_s29 + $0x10] sm:$0xff]   ;;  %s12106_s23 = scalar_lea.vmem %s12185_s5, %s9825_s20 }
  0x14   : > { %8316 = vmatprep.subr.bf16.mxu0 %v9909_v2  ;;  %v7747_v7 = vunpack.c.l.bf16 %v7746_v4  ;;  %v7748_v8 = vunpack.c.h.bf16 %v7746_v4  ;;  %v7751_v9 = vunpack.c.l.bf16 %v7825_v5  ;;  %v7752_v10 = vunpack.c.h.bf16 %v7825_v5  ;;  %v7827_v13 = vld [vmem:[%s10139_s29 + $0x18] sm:$0xff]   ;;  %v7828_v14 = vld [vmem:[%s10139_s29 + $0x20] sm:$0xff]   ;;  %v7829_v20 = vld [vmem:[%s10139_s29 + $0x28] sm:$0xff]  }
  0x15   : > { %v7755_v11 = vunpack.c.l.bf16 %v7826_v6  ;;  %v7756_v12 = vunpack.c.h.bf16 %v7826_v6  ;;  %v7759_v16 = vunpack.c.l.bf16 %v7827_v13  ;;  %v7760_v17 = vunpack.c.h.bf16 %v7827_v13  ;;  %v7830_v23 = vld [vmem:[%s10139_s29 + $0x30] sm:$0xff]   ;;  %v7831_v26 = vld [vmem:[%s10139_s29 + $0x38] sm:$0xff]   ;;  %v7832_v27 = vld [vmem:[%s10139_s29 + $0x40] sm:$0xff]  }
  0x16   : > { %957 = vst [vmem:[#allocation2] sm:$0xff] %v7747_v7  ;;  %958 = vst [vmem:[#allocation2 + $0x8] sm:$0xff] %v7748_v8  ;;  %v7763_v18 = vunpack.c.l.bf16 %v7828_v14  ;;  %v7764_v19 = vunpack.c.h.bf16 %v7828_v14  ;;  %v7767_v21 = vunpack.c.l.bf16 %v7829_v20  ;;  %v7768_v22 = vunpack.c.h.bf16 %v7829_v20  ;;  %v7833_v32 = vld [vmem:[%s10139_s29 + $0x48] sm:$0xff]   ;;  %v7834_v33 = vld [vmem:[%s10139_s29 + $0x50] sm:$0xff]  }
  0x17   : > { %8317 = vmatpush3.bf16.msra.mxu0 %v9909_v2  ;;  %959 = vst [vmem:[#allocation2 + $0x10] sm:$0xff] %v7751_v9  ;;  %960 = vst [vmem:[#allocation2 + $0x18] sm:$0xff] %v7752_v10  ;;  %v7771_v24 = vunpack.c.l.bf16 %v7830_v23  ;;  %v7772_v25 = vunpack.c.h.bf16 %v7830_v23  ;;  %v7775_v28 = vunpack.c.l.bf16 %v7831_v26  ;;  %v7776_v29 = vunpack.c.h.bf16 %v7831_v26  ;;  %v7835_v39 = vld [vmem:[%s10139_s29 + $0x58] sm:$0xff]   ;;  %v7836_v42 = vld [vmem:[%s10139_s29 + $0x60] sm:$0xff]  }
  0x18   : > { %8318 = vmatprep.subr.bf16.mxu0 %v9910_v3  ;;  %961 = vst [vmem:[#allocation2 + $0x20] sm:$0xff] %v7755_v11  ;;  %962 = vst [vmem:[#allocation2 + $0x28] sm:$0xff] %v7756_v12  ;;  %v7779_v30 = vunpack.c.l.bf16 %v7832_v27  ;;  %v7780_v31 = vunpack.c.h.bf16 %v7832_v27  ;;  %v7783_v35 = vunpack.c.l.bf16 %v7833_v32  ;;  %v7784_v36 = vunpack.c.h.bf16 %v7833_v32  ;;  %v7837_v49 = vld [vmem:[%s10139_s29 + $0x68] sm:$0xff]   ;;  %v7838_v53 = vld [vmem:[%s10139_s29 + $0x70] sm:$0xff]  }
  0x19   : > { %963 = vst [vmem:[#allocation2 + $0x30] sm:$0xff] %v7759_v16  ;;  %964 = vst [vmem:[#allocation2 + $0x38] sm:$0xff] %v7760_v17  ;;  %v7787_v37 = vunpack.c.l.bf16 %v7834_v33  ;;  %v7788_v38 = vunpack.c.h.bf16 %v7834_v33  ;;  %v7791_v40 = vunpack.c.l.bf16 %v7835_v39  ;;  %v7792_v41 = vunpack.c.h.bf16 %v7835_v39  ;;  %v7839_v61 = vld [vmem:[%s10139_s29 + $0x78] sm:$0xff]   ;;  %v7840_v62 = vld [vmem:[%s10139_s29 + $0x80] sm:$0xff]  }
  0x1a   : > { %965 = vst [vmem:[#allocation2 + $0x40] sm:$0xff] %v7763_v18  ;;  %966 = vst [vmem:[#allocation2 + $0x48] sm:$0xff] %v7764_v19  ;;  %v7795_v45 = vunpack.c.l.bf16 %v7836_v42  ;;  %v7796_v46 = vunpack.c.h.bf16 %v7836_v42  ;;  %v7799_v50 = vunpack.c.l.bf16 %v7837_v49  ;;  %v7800_v51 = vunpack.c.h.bf16 %v7837_v49  ;;  %v10178_v7 = vld [vmem:[%s10139_s29 + $0x90] sm:$0xff]   ;;  %v9916_v10 = vld [vmem:[%s12181_s1 + $0x8] sm:$0xff]  }
  0x1b   : > { %967 = vst [vmem:[#allocation2 + $0x50] sm:$0xff] %v7767_v21  ;;  %968 = vst [vmem:[#allocation2 + $0x58] sm:$0xff] %v7768_v22  ;;  %8319 = vmatpush3.bf16.msra.mxu0 %v9910_v3  ;;  %v7803_v54 = vunpack.c.l.bf16 %v7838_v53  ;;  %v7804_v55 = vunpack.c.h.bf16 %v7838_v53  ;;  %v7807_v63 = vunpack.c.l.bf16 %v7839_v61  ;;  %v7808_v0 = vunpack.c.h.bf16 %v7839_v61  ;;  %v7841_v3 = vld [vmem:[%s10139_s29 + $0x88] sm:$0xff]   ;;  %v9917_v11 = vld [vmem:[%s12181_s1 + $0x10] sm:$0xff]  }
  0x1c   : > { %969 = vst [vmem:[#allocation2 + $0x60] sm:$0xff] %v7771_v24  ;;  %970 = vst [vmem:[#allocation2 + $0x68] sm:$0xff] %v7772_v25  ;;  %8320 = vmatprep.subr.bf16.mxu0 %v9911_v15  ;;  %v7811_v1 = vunpack.c.l.bf16 %v7840_v62  ;;  %v7812_v2 = vunpack.c.h.bf16 %v7840_v62  ;;  %v7815_v5 = vunpack.c.l.bf16 %v7841_v3  ;;  %v7816_v6 = vunpack.c.h.bf16 %v7841_v3  ;;  %v9918_v18 = vld [vmem:[%s12181_s1 + $0x18] sm:$0xff]   ;;  %v9919_v23 = vld [vmem:[%s12181_s1 + $0x20] sm:$0xff]  }
  0x1d   : > { %971 = vst [vmem:[#allocation2 + $0x70] sm:$0xff] %v7775_v28  ;;  %972 = vst [vmem:[#allocation2 + $0x78] sm:$0xff] %v7776_v29  ;;  %v1068_v43 = vld [vmem:[#allocation2 + $0x1] sm:$0xff]  ;;  %v7819_v9 = vunpack.c.l.bf16 %v10178_v7  ;;  %v9922_v33 = vld [vmem:[%s12181_s1 + $0x38] sm:$0xff]  }
  0x1e   : > { %973 = vst [vmem:[#allocation2 + $0x80] sm:$0xff] %v7779_v30  ;;  %974 = vst [vmem:[#allocation2 + $0x88] sm:$0xff] %v7780_v31  ;;  %v1069_v44 = vld [vmem:[#allocation2 + $0x9] sm:$0xff]  ;;  %v1070_v56 = vld [vmem:[#allocation2 + $0x11] sm:$0xff] }
  0x1f   : > { %975 = vst [vmem:[#allocation2 + $0x90] sm:$0xff] %v7783_v35  ;;  %976 = vst [vmem:[#allocation2 + $0x98] sm:$0xff] %v7784_v36  ;;  %8321 = vmatpush3.bf16.msra.mxu0 %v9911_v15  ;;  %v1104_v47 = vpack.c.bf16 %v1069_v44, %v1068_v43  ;;  %v1071_v58 = vld [vmem:[#allocation2 + $0x19] sm:$0xff]  ;;  %v1072_v59 = vld [vmem:[#allocation2 + $0x21] sm:$0xff] }
  0x20   : > { %977 = vst [vmem:[#allocation2 + $0xa0] sm:$0xff] %v7787_v37  ;;  %978 = vst [vmem:[#allocation2 + $0xa8] sm:$0xff] %v7788_v38  ;;  %8322 = vmatprep.subr.bf16.mxu0 %v9912_v34  ;;  %v1073_v60 = vld [vmem:[#allocation2 + $0x29] sm:$0xff]  ;;  %v1105_v4 = vpack.c.bf16 %v1071_v58, %v1070_v56  ;;  %v1074_v12 = vld [vmem:[#allocation2 + $0x31] sm:$0xff] }
  0x21   : > { %979 = vst [vmem:[#allocation2 + $0xb0] sm:$0xff] %v7791_v40  ;;  %980 = vst [vmem:[#allocation2 + $0xb8] sm:$0xff] %v7792_v41  ;;  %8328 = vmatprep.mubr.bf16.mxu0 %v1104_v47  ;;  %v1106_v8 = vpack.c.bf16 %v1073_v60, %v1072_v59  ;;  %v1075_v13 = vld [vmem:[#allocation2 + $0x39] sm:$0xff]  ;;  %v1076_v14 = vld [vmem:[#allocation2 + $0x41] sm:$0xff] }
  0x22   : > { %981 = vst [vmem:[#allocation2 + $0xc0] sm:$0xff] %v7795_v45  ;;  %982 = vst [vmem:[#allocation2 + $0xc8] sm:$0xff] %v7796_v46  ;;  %v1077_v15 = vld [vmem:[#allocation2 + $0x49] sm:$0xff]  ;;  %v1107_v16 = vpack.c.bf16 %v1075_v13, %v1074_v12  ;;  %v1078_v19 = vld [vmem:[#allocation2 + $0x51] sm:$0xff] }
  0x23   : > { %8323 = vmatpush3.bf16.msra.mxu0 %v9912_v34  ;;  %983 = vst [vmem:[#allocation2 + $0xd0] sm:$0xff] %v7799_v50  ;;  %984 = vst [vmem:[#allocation2 + $0xd8] sm:$0xff] %v7800_v51  ;;  %v1108_v17 = vpack.c.bf16 %v1077_v15, %v1076_v14  ;;  %v1079_v20 = vld [vmem:[#allocation2 + $0x59] sm:$0xff]  ;;  %v1080_v21 = vld [vmem:[#allocation2 + $0x61] sm:$0xff] }
  0x24   : > { %8324 = vmatprep.subr.bf16.mxu0 %v9913_v48  ;;  %985 = vst [vmem:[#allocation2 + $0xe0] sm:$0xff] %v7803_v54  ;;  %986 = vst [vmem:[#allocation2 + $0xe8] sm:$0xff] %v7804_v55  ;;  %v1081_v22 = vld [vmem:[#allocation2 + $0x69] sm:$0xff]  ;;  %v1109_v24 = vpack.c.bf16 %v1079_v20, %v1078_v19  ;;  %v1082_v27 = vld [vmem:[#allocation2 + $0x71] sm:$0xff] }
  0x25   : > { %987 = vst [vmem:[#allocation2 + $0xf0] sm:$0xff] %v7807_v63  ;;  %988 = vst [vmem:[#allocation2 + $0xf8] sm:$0xff] %v7808_v0  ;;  %v1110_v25 = vpack.c.bf16 %v1081_v22, %v1080_v21  ;;  %v9920_v26 = vld [vmem:[%s12181_s1 + $0x28] sm:$0xff]   ;;  %v1083_v28 = vld [vmem:[#allocation2 + $0x79] sm:$0xff] }
  0x26   : > { %989 = vst [vmem:[#allocation2 + $0x100] sm:$0xff] %v7811_v1  ;;  %990 = vst [vmem:[#allocation2 + $0x108] sm:$0xff] %v7812_v2  ;;  %v1084_v29 = vld [vmem:[#allocation2 + $0x81] sm:$0xff]  ;;  %v1085_v30 = vld [vmem:[#allocation2 + $0x89] sm:$0xff]  ;;  %v1111_v32 = vpack.c.bf16 %v1083_v28, %v1082_v27 }
  0x27   : > { %8325 = vmatpush3.bf16.msra.mxu0 %v9913_v48  ;;  %991 = vst [vmem:[#allocation2 + $0x110] sm:$0xff] %v7815_v5  ;;  %992 = vst [vmem:[#allocation2 + $0x118] sm:$0xff] %v7816_v6  ;;  %v9921_v31 = vld [vmem:[%s12181_s1 + $0x30] sm:$0xff]   ;;  %v1112_v34 = vpack.c.bf16 %v1085_v30, %v1084_v29  ;;  %v1087_v36 = vld [vmem:[#allocation2 + $0x99] sm:$0xff] }
  0x28   : > { %8326 = vmatprep.subr.bf16.mxu0 %v9914_v52  ;;  %993 = vst [vmem:[#allocation2 + $0x120] sm:$0xff] %v7819_v9  ;;  %v1086_v35 = vld [vmem:[#allocation2 + $0x91] sm:$0xff]  ;;  %v1088_v37 = vld [vmem:[#allocation2 + $0xa1] sm:$0xff]  ;;  %v1089_v38 = vld [vmem:[#allocation2 + $0xa9] sm:$0xff] }
  0x29   : > { %v9925_v39 = vld [vmem:[%s12181_s1 + $0x80] sm:$0xff]   ;;  %v1113_v40 = vpack.c.bf16 %v1087_v36, %v1086_v35  ;;  %v1114_v41 = vpack.c.bf16 %v1089_v38, %v1088_v37  ;;  %v1090_v42 = vld [vmem:[#allocation2 + $0xb1] sm:$0xff]  ;;  %v9924_v0 = vld [vmem:[%s10139_s29 + $0x8] sm:$0xff]  ;;  %v7820_v35 = vunpack.c.h.bf16 %v10178_v7 }
  0x2a   : > { %v1091_v43 = vld [vmem:[#allocation2 + $0xb9] sm:$0xff]  ;;  %v1092_v44 = vld [vmem:[#allocation2 + $0xc1] sm:$0xff]  ;;  %v1093_v45 = vld [vmem:[#allocation2 + $0xc9] sm:$0xff] }
  0x2b   : > { %8327 = vmatpush3.bf16.msra.mxu0 %v9914_v52  ;;  %v1115_v46 = vpack.c.bf16 %v1091_v43, %v1090_v42  ;;  %v1116_v47 = vpack.c.bf16 %v1093_v45, %v1092_v44  ;;  %v1094_v48 = vld [vmem:[#allocation2 + $0xd1] sm:$0xff]  ;;  %v1095_v49 = vld [vmem:[#allocation2 + $0xd9] sm:$0xff]  ;;  %v1096_v50 = vld [vmem:[#allocation2 + $0xe1] sm:$0xff]  ;;  %994 = vst [vmem:[#allocation2 + $0x128] sm:$0xff] %v7820_v35 }
  0x2c   : > { %8364 = vmatprep.subr.bf16.mxu0 %v9915_v57  ;;  %v1097_v51 = vld [vmem:[#allocation2 + $0xe9] sm:$0xff]  ;;  %v1117_v52 = vpack.c.bf16 %v1095_v49, %v1094_v48  ;;  %v1098_v54 = vld [vmem:[#allocation2 + $0xf1] sm:$0xff]  ;;  %v9923_v62 = vld [vmem:[%s10139_s29] sm:$0xff] }
  0x2d   : > { %v1118_v53 = vpack.c.bf16 %v1097_v51, %v1096_v50  ;;  %v1099_v55 = vld [vmem:[#allocation2 + $0xf9] sm:$0xff]  ;;  %v1100_v56 = vld [vmem:[#allocation2 + $0x101] sm:$0xff]  ;;  %v9926_v1 = vld [vmem:[%s10139_s29 + $0x10] sm:$0xff] }
  0x2e   : > { %8329 = vmatmul.mubr.bf16.vlgmr.msra.gmra.mrb[0].mxu0 %v1105_v4  ;;  %v1119_v58 = vpack.c.bf16 %v1099_v55, %v1098_v54  ;;  %v1102_v60 = vld [vmem:[#allocation2 + $0x111] sm:$0xff]  ;;  %v9928_v2 = vld [vmem:[%s12181_s1 + $0x88] sm:$0xff]   ;;  %v9929_v5 = vld [vmem:[%s10139_s29 + $0x20] sm:$0xff] }
  0x2f   : > { %8365 = vmatpush3.bf16.msra.mxu0 %v9915_v57  ;;  %8332 = vmatprep.mubr.bf16.mxu0 %v1106_v8  ;;  %v1101_v57 = vld [vmem:[#allocation2 + $0x109] sm:$0xff]  ;;  %v1103_v61 = vld [vmem:[#allocation2 + $0x119] sm:$0xff] }
  0x30   : > { %8366 = vmatprep.subr.bf16.mxu0 %v9916_v10  ;;  %v1120_v59 = vpack.c.bf16 %v1101_v57, %v1100_v56  ;;  %v1121_v63 = vpack.c.bf16 %v1103_v61, %v1102_v60  ;;  %v9931_v3 = vld [vmem:[%s12181_s1 + $0x90] sm:$0xff]   ;;  %v9927_v4 = vld [vmem:[%s10139_s29 + $0x18] sm:$0xff]  ;;  %v9937_v8 = vld [vmem:[%s12181_s1 + $0xa0] sm:$0xff]  }
  0x31   : > { %v9934_v6 = vld [vmem:[%s12181_s1 + $0x98] sm:$0xff]   ;;  %v9930_v9 = vld [vmem:[%s10139_s29 + $0x28] sm:$0xff]  ;;  %v9943_v12 = vld [vmem:[%s12181_s1 + $0xb0] sm:$0xff]  }
  0x32   : > { %v9933_v13 = vld [vmem:[%s10139_s29 + $0x38] sm:$0xff]  ;;  %v9935_v14 = vld [vmem:[%s10139_s29 + $0x40] sm:$0xff]  ;;  %v9942_v21 = vld [vmem:[%s10139_s29 + $0x68] sm:$0xff] }
  0x33   : > { %8367 = vmatpush3.bf16.msra.mxu0 %v9916_v10  ;;  %v9932_v10 = vld [vmem:[%s10139_s29 + $0x30] sm:$0xff]  ;;  %v9947_v15 = vld [vmem:[%s12181_s1 + $0xb8] sm:$0xff]   ;;  %v9941_v20 = vld [vmem:[%s10139_s29 + $0x60] sm:$0xff] }
  0x34   : > { %8368 = vmatprep.subr.bf16.mxu0 %v9917_v11  ;;  %v9939_v19 = vld [vmem:[%s10139_s29 + $0x58] sm:$0xff]  ;;  %v9944_v22 = vld [vmem:[%s10139_s29 + $0x70] sm:$0xff]  ;;  %v9948_v27 = vld [vmem:[%s10139_s29 + $0x88] sm:$0xff] }
  0x35   : > { %v1591_v29 = vld [vmem:[#allocation2 + $0x12] sm:$0xff]  ;;  %v1592_v30 = vld [vmem:[#allocation2 + $0x1a] sm:$0xff]  ;;  %v9950_v38 = vld [vmem:[%s12181_s1 + $0xc8] sm:$0xff]  }
  0x36   : > { %8333 = vmatmul.mubr.bf16.gmra.mrb[4].mxu0 %v1107_v16  ;;  %v9949_v16 = vld [vmem:[%s12181_s1 + $0xc0] sm:$0xff]   ;;  %v1598_v7 = vld [vmem:[#allocation2 + $0x4a] sm:$0xff]  ;;  %v9952_v45 = vld [vmem:[%s12181_s1 + $0xd8] sm:$0xff]  }
  0x37   : > { %8336 = vmatprep.mubr.bf16.mxu0 %v1108_v17  ;;  %8369 = vmatpush3.bf16.msra.mxu0 %v9917_v11  ;;  %v9940_v11 = vld [vmem:[%s12181_s1 + $0xa8] sm:$0xff]   ;;  %v9951_v42 = vld [vmem:[%s12181_s1 + $0xd0] sm:$0xff]   ;;  %v9953_v50 = vld [vmem:[%s12181_s1 + $0xe0] sm:$0xff]  }
  0x38   : > { %8370 = vmatprep.subr.bf16.mxu0 %v9918_v18  ;;  %v9936_v17 = vld [vmem:[%s10139_s29 + $0x48] sm:$0xff]  ;;  %v1603_v54 = vld [vmem:[#allocation2 + $0x72] sm:$0xff]  ;;  %v1604_v55 = vld [vmem:[#allocation2 + $0x7a] sm:$0xff] }
  0x39   : > { %v1601_v48 = vld [vmem:[#allocation2 + $0x62] sm:$0xff]  ;;  %v1602_v49 = vld [vmem:[#allocation2 + $0x6a] sm:$0xff]  ;;  %v9956_v61 = vld [vmem:[%s12181_s1 + $0xf8] sm:$0xff]  }
  0x3a   : > { %v1605_v56 = vld [vmem:[#allocation2 + $0x82] sm:$0xff]  ;;  %v1606_v57 = vld [vmem:[#allocation2 + $0x8a] sm:$0xff] }
  0x3b   : > { %8371 = vmatpush3.bf16.msra.mxu0 %v9918_v18  ;;  %v9938_v18 = vld [vmem:[%s10139_s29 + $0x50] sm:$0xff]  ;;  %v10290_v60 = vpack.c.bf16 %v1606_v57, %v1605_v56  ;;  %v9965_v35 = vld [vmem:[%s12181_s1 + $0x140] sm:$0xff]  }
  0x3c   : > { %8372 = vmatprep.subr.bf16.mxu0 %v9919_v23  ;;  %v2263_v56 = vld [vmem:[#allocation2 + $0x63] sm:$0xff]  ;;  %v2264_v57 = vld [vmem:[#allocation2 + $0x6b] sm:$0xff] }
  0x3e   : > { %8337 = vmatmul.mubr.bf16.gmra.mrb[8].mxu0 %v1109_v24  ;;  %v9946_v24 = vld [vmem:[%s10139_s29 + $0x80] sm:$0xff] }
  0x3f   : > { %8340 = vmatprep.mubr.bf16.mxu0 %v1110_v25  ;;  %8373 = vmatpush3.bf16.msra.mxu0 %v9919_v23  ;;  %v9945_v23 = vld [vmem:[%s10139_s29 + $0x78] sm:$0xff]  ;;  %v1589_v25 = vld [vmem:[#allocation2 + $0x2] sm:$0xff] }
  0x40   : > { %8374 = vmatprep.subr.bf16.mxu0 %v9920_v26 }
  0x43   : > { %8375 = vmatpush3.bf16.msra.mxu0 %v9920_v26  ;;  %v1590_v26 = vld [vmem:[#allocation2 + $0xa] sm:$0xff] }
  0x44   : > { %8376 = vmatprep.subr.bf16.mxu0 %v9921_v31  ;;  %v1625_v28 = vpack.c.bf16 %v1590_v26, %v1589_v25  ;;  %v1624_v25 = vld [vmem:[#allocation2 + $0x11a] sm:$0xff] }
  0x46   : > { %8341 = vmatmul.mubr.bf16.gmra.mrb[12].mxu0 %v1111_v32  ;;  %v1594_v32 = vld [vmem:[#allocation2 + $0x2a] sm:$0xff] }
  0x47   : > { %8344 = vmatprep.mubr.bf16.mxu0 %v1112_v34  ;;  %8377 = vmatpush3.bf16.msra.mxu0 %v9921_v31  ;;  %v1593_v31 = vld [vmem:[#allocation2 + $0x22] sm:$0xff]  ;;  %v10250_v34 = vpack.c.bf16 %v1592_v30, %v1591_v29  ;;  %v9960_v29 = vld [vmem:[%s12181_s1 + $0x118] sm:$0xff]  }
  0x48   : > { %8378 = vmatprep.subr.bf16.mxu0 %v9922_v33  ;;  %v10254_v37 = vpack.c.bf16 %v1594_v32, %v1593_v31  ;;  %v9961_v30 = vld [vmem:[%s12181_s1 + $0x120] sm:$0xff]   ;;  %v9962_v31 = vld [vmem:[%s12181_s1 + $0x128] sm:$0xff]   ;;  %v9963_v32 = vld [vmem:[%s12181_s1 + $0x130] sm:$0xff]  }
  0x4b   : > { %8379 = vmatpush3.bf16.msra.mxu0 %v9922_v33  ;;  %v10248_v33 = vld [vmem:[%s10139_s29 + $0x98] sm:$0xff]  }
  0x4c   : > { %8416 = vmatprep.subr.bf16.mxu0 %v9925_v39  ;;  %v7823_v36 = vunpack.c.l.bf16 %v10248_v33 }
  0x4e   : > { %8345 = vmatmul.mubr.bf16.gmra.mrb[16].mxu0 %v1113_v40  ;;  %995 = vst [vmem:[#allocation2 + $0x130] sm:$0xff] %v7823_v36  ;;  %v1596_v40 = vld [vmem:[#allocation2 + $0x3a] sm:$0xff]  ;;  %v1955_v36 = vld [vmem:[#allocation2 + $0x122] sm:$0xff] }
  0x4f   : > { %8348 = vmatprep.mubr.bf16.mxu0 %v1114_v41  ;;  %v1597_v41 = vld [vmem:[#allocation2 + $0x42] sm:$0xff] }
  0x50   : > { %v10266_v44 = vpack.c.bf16 %v1598_v7, %v1597_v41  ;;  %v2255_v7 = vld [vmem:[#allocation2 + $0x23] sm:$0xff] }
  0x56   : > { %8349 = vmatmul.mubr.bf16.gmra.mrb[20].mxu0 %v1115_v46  ;;  %v1599_v46 = vld [vmem:[#allocation2 + $0x52] sm:$0xff] }
  0x57   : > { %8352 = vmatprep.mubr.bf16.mxu0 %v1116_v47  ;;  %v1600_v47 = vld [vmem:[#allocation2 + $0x5a] sm:$0xff] }
  0x58   : > { %v10276_v51 = vpack.c.bf16 %v1600_v47, %v1599_v46  ;;  %v9966_v47 = vld [vmem:[%s12181_s1 + $0x148] sm:$0xff]  }
  0x5e   : > { %8353 = vmatmul.mubr.bf16.gmra.mrb[24].mxu0 %v1117_v52  ;;  %v10278_v52 = vpack.c.bf16 %v1602_v49, %v1601_v48  ;;  %v2259_v48 = vld [vmem:[#allocation2 + $0x43] sm:$0xff]  ;;  %v2260_v49 = vld [vmem:[#allocation2 + $0x4b] sm:$0xff] }
  0x5f   : > { %8356 = vmatprep.mubr.bf16.mxu0 %v1118_v53  ;;  %v9954_v53 = vld [vmem:[%s12181_s1 + $0xe8] sm:$0xff]  }
  0x66   : > { %8357 = vmatmul.mubr.bf16.gmra.mrb[28].mxu0 %v1119_v58  ;;  %v9955_v58 = vld [vmem:[%s12181_s1 + $0xf0] sm:$0xff]  }
  0x67   : > { %8360 = vmatprep.mubr.bf16.mxu0 %v1120_v59  ;;  %v10288_v59 = vpack.c.bf16 %v1604_v55, %v1603_v54  ;;  %v9968_v55 = vld [vmem:[%s12181_s1 + $0x158] sm:$0xff]  }
  0x6e   : > { %8361 = vmatmul.mubr.bf16.gmra.mrb[32].mxu0 %v1121_v63  ;;  %v1608_v63 = vld [vmem:[#allocation2 + $0x9a] sm:$0xff] }
  0x6f   : > { %8380 = vmatprep.mubr.bf16.mxu0 %v9923_v62  ;;  %v1607_v62 = vld [vmem:[#allocation2 + $0x92] sm:$0xff] }
  0x76   : > { %8381 = vmatmul.mubr.bf16.vlgmr.msra.gmra.mrb[0].mxu0 %v9924_v0  ;;  %v1609_v0 = vld [vmem:[#allocation2 + $0xa2] sm:$0xff] }
  0x77   : > { %8417 = vmatpush3.bf16.msra.mxu0 %v9925_v39  ;;  %8384 = vmatprep.mubr.bf16.mxu0 %v9926_v1  ;;  %v1595_v39 = vld [vmem:[#allocation2 + $0x32] sm:$0xff]  ;;  %v1610_v1 = vld [vmem:[#allocation2 + $0xaa] sm:$0xff] }
  0x78   : > { %8418 = vmatprep.subr.bf16.mxu0 %v9928_v2  ;;  %v10264_v43 = vpack.c.bf16 %v1596_v40, %v1595_v39  ;;  %v2254_v39 = vld [vmem:[#allocation2 + $0x1b] sm:$0xff] }
  0x7b   : > { %8419 = vmatpush3.bf16.msra.mxu0 %v9928_v2  ;;  %v9957_v2 = vld [vmem:[%s12181_s1 + $0x100] sm:$0xff]  }
  0x7c   : > { %8420 = vmatprep.subr.bf16.mxu0 %v9931_v3 }
  0x7e   : > { %8385 = vmatmul.mubr.bf16.gmra.mrb[4].mxu0 %v9927_v4  ;;  %v10300_v4 = vpack.c.bf16 %v1610_v1, %v1609_v0  ;;  %v2267_v0 = vld [vmem:[#allocation2 + $0x83] sm:$0xff]  ;;  %v2268_v1 = vld [vmem:[#allocation2 + $0x8b] sm:$0xff] }
  0x7f   : > { %8388 = vmatprep.mubr.bf16.mxu0 %v9929_v5  ;;  %8421 = vmatpush3.bf16.msra.mxu0 %v9931_v3  ;;  %v1634_v3 = vpack.c.bf16 %v1608_v63, %v1607_v62  ;;  %v1611_v5 = vld [vmem:[#allocation2 + $0xb2] sm:$0xff]  ;;  %v9970_v63 = vld [vmem:[%s12181_s1 + $0x168] sm:$0xff]  }
  0x80   : > { %8422 = vmatprep.subr.bf16.mxu0 %v9934_v6 }
  0x83   : > { %8423 = vmatpush3.bf16.msra.mxu0 %v9934_v6  ;;  %v1612_v6 = vld [vmem:[#allocation2 + $0xba] sm:$0xff] }
  0x84   : > { %8424 = vmatprep.subr.bf16.mxu0 %v9937_v8 }
  0x86   : > { %8389 = vmatmul.mubr.bf16.gmra.mrb[8].mxu0 %v9930_v9  ;;  %v1614_v9 = vld [vmem:[#allocation2 + $0xca] sm:$0xff] }
  0x87   : > { %8392 = vmatprep.mubr.bf16.mxu0 %v9932_v10  ;;  %8425 = vmatpush3.bf16.msra.mxu0 %v9937_v8  ;;  %v1613_v8 = vld [vmem:[#allocation2 + $0xc2] sm:$0xff]  ;;  %v1636_v10 = vpack.c.bf16 %v1612_v6, %v1611_v5  ;;  %v2296_v5 = vpack.c.bf16 %v2268_v1, %v2267_v0 }
  0x88   : > { %8426 = vmatprep.subr.bf16.mxu0 %v9940_v11  ;;  %v9978_v0 = vld [vmem:[%s12181_s1 + $0x1a8] sm:$0xff]  }
  0x89   : > { %v2599_v1 = vld [vmem:[#allocation2 + $0x84] sm:$0xff] }
  0x8b   : > { %8427 = vmatpush3.bf16.msra.mxu0 %v9940_v11  ;;  %v1637_v11 = vpack.c.bf16 %v1614_v9, %v1613_v8  ;;  %v9972_v8 = vld [vmem:[%s12181_s1 + $0x178] sm:$0xff]   ;;  %v2271_v9 = vld [vmem:[#allocation2 + $0xa3] sm:$0xff] }
  0x8c   : > { %8428 = vmatprep.subr.bf16.mxu0 %v9943_v12 }
  0x8e   : > { %8393 = vmatmul.mubr.bf16.gmra.mrb[12].mxu0 %v9933_v13  ;;  %v1616_v13 = vld [vmem:[#allocation2 + $0xda] sm:$0xff] }
  0x8f   : > { %8396 = vmatprep.mubr.bf16.mxu0 %v9935_v14  ;;  %8429 = vmatpush3.bf16.msra.mxu0 %v9943_v12  ;;  %v1615_v12 = vld [vmem:[#allocation2 + $0xd2] sm:$0xff]  ;;  %v1617_v14 = vld [vmem:[#allocation2 + $0xe2] sm:$0xff] }
  0x90   : > { %8430 = vmatprep.subr.bf16.mxu0 %v9947_v15 }
  0x93   : > { %8431 = vmatpush3.bf16.msra.mxu0 %v9947_v15  ;;  %v1618_v15 = vld [vmem:[#allocation2 + $0xea] sm:$0xff] }
  0x94   : > { %8468 = vmatprep.subr.bf16.mxu0 %v9949_v16 }
  0x96   : > { %8397 = vmatmul.mubr.bf16.gmra.mrb[16].mxu0 %v9936_v17  ;;  %v1639_v17 = vpack.c.bf16 %v1618_v15, %v1617_v14 }
  0x97   : > { %8400 = vmatprep.mubr.bf16.mxu0 %v9938_v18  ;;  %v1619_v18 = vld [vmem:[#allocation2 + $0xf2] sm:$0xff] }
  0x9e   : > { %8401 = vmatmul.mubr.bf16.gmra.mrb[20].mxu0 %v9939_v19  ;;  %v1620_v19 = vld [vmem:[#allocation2 + $0xfa] sm:$0xff] }
  0x9f   : > { %8404 = vmatprep.mubr.bf16.mxu0 %v9941_v20  ;;  %v1621_v20 = vld [vmem:[#allocation2 + $0x102] sm:$0xff] }
  0xa6   : > { %8405 = vmatmul.mubr.bf16.gmra.mrb[24].mxu0 %v9942_v21  ;;  %v1622_v21 = vld [vmem:[#allocation2 + $0x10a] sm:$0xff] }
  0xa7   : > { %8408 = vmatprep.mubr.bf16.mxu0 %v9944_v22  ;;  %v1640_v22 = vpack.c.bf16 %v1620_v19, %v1619_v18  ;;  %v2277_v18 = vld [vmem:[#allocation2 + $0xd3] sm:$0xff]  ;;  %v2278_v19 = vld [vmem:[#allocation2 + $0xdb] sm:$0xff] }
  0xae   : > { %8409 = vmatmul.mubr.bf16.gmra.mrb[28].mxu0 %v9945_v23  ;;  %v1641_v23 = vpack.c.bf16 %v1622_v21, %v1621_v20  ;;  %v2301_v21 = vpack.c.bf16 %v2278_v19, %v2277_v18  ;;  %v2608_v18 = vld [vmem:[#allocation2 + $0xcc] sm:$0xff]  ;;  %v2609_v19 = vld [vmem:[#allocation2 + $0xd4] sm:$0xff] }
  0xaf   : > { %8412 = vmatprep.mubr.bf16.mxu0 %v9946_v24  ;;  %v1623_v24 = vld [vmem:[#allocation2 + $0x112] sm:$0xff] }
  0xb0   : > { %v1642_v26 = vpack.c.bf16 %v1624_v25, %v1623_v24  ;;  %v2281_v24 = vld [vmem:[#allocation2 + $0xf3] sm:$0xff]  ;;  %v2282_v25 = vld [vmem:[#allocation2 + $0xfb] sm:$0xff] }
  0xb6   : > { %8413 = vmatmul.mubr.bf16.gmra.mrb[32].mxu0 %v9948_v27  ;;  %v9958_v27 = vld [vmem:[%s12181_s1 + $0x108] sm:$0xff]  }
  0xb7   : > { %8432 = vmatprep.mubr.bf16.mxu0 %v1625_v28  ;;  %v9959_v28 = vld [vmem:[%s12181_s1 + $0x110] sm:$0xff]  }
  0xbe   : > { %8433 = vmatmul.mubr.bf16.vlgmr.msra.gmra.mrb[0].mxu0 %v10250_v34 }
  0xbf   : > { %8469 = vmatpush3.bf16.msra.mxu0 %v9949_v16  ;;  %8436 = vmatprep.mubr.bf16.mxu0 %v10254_v37  ;;  %v1638_v16 = vpack.c.bf16 %v1616_v13, %v1615_v12  ;;  %v2274_v12 = vld [vmem:[#allocation2 + $0xbb] sm:$0xff] }
  0xc0   : > { %8470 = vmatprep.subr.bf16.mxu0 %v9950_v38  ;;  %v9973_v13 = vld [vmem:[%s12181_s1 + $0x180] sm:$0xff]  }
  0xc3   : > { %8471 = vmatpush3.bf16.msra.mxu0 %v9950_v38  ;;  %v2253_v38 = vld [vmem:[#allocation2 + $0x13] sm:$0xff] }
  0xc4   : > { %8472 = vmatprep.subr.bf16.mxu0 %v9951_v42  ;;  %v2289_v41 = vpack.c.bf16 %v2254_v39, %v2253_v38  ;;  %v2586_v38 = vld [vmem:[#allocation2 + $0x1c] sm:$0xff] }
  0xc6   : > { %8437 = vmatmul.mubr.bf16.gmra.mrb[4].mxu0 %v10264_v43 }
  0xc7   : > { %8440 = vmatprep.mubr.bf16.mxu0 %v10266_v44  ;;  %8473 = vmatpush3.bf16.msra.mxu0 %v9951_v42  ;;  %v2256_v42 = vld [vmem:[#allocation2 + $0x2b] sm:$0xff] }
  0xc8   : > { %8474 = vmatprep.subr.bf16.mxu0 %v9952_v45 }
  0xcb   : > { %8475 = vmatpush3.bf16.msra.mxu0 %v9952_v45  ;;  %v2290_v45 = vpack.c.bf16 %v2256_v42, %v2255_v7  ;;  %v2588_v7 = vld [vmem:[#allocation2 + $0x2c] sm:$0xff]  ;;  %v2589_v42 = vld [vmem:[#allocation2 + $0x34] sm:$0xff] }
  0xcc   : > { %8476 = vmatprep.subr.bf16.mxu0 %v9953_v50 }
  0xce   : > { %8441 = vmatmul.mubr.bf16.gmra.mrb[8].mxu0 %v10276_v51 }
  0xcf   : > { %8444 = vmatprep.mubr.bf16.mxu0 %v10278_v52  ;;  %8477 = vmatpush3.bf16.msra.mxu0 %v9953_v50  ;;  %v2261_v50 = vld [vmem:[#allocation2 + $0x53] sm:$0xff] }
  0xd0   : > { %8478 = vmatprep.subr.bf16.mxu0 %v9954_v53 }
  0xd3   : > { %8479 = vmatpush3.bf16.msra.mxu0 %v9954_v53  ;;  %v2292_v53 = vpack.c.bf16 %v2260_v49, %v2259_v48  ;;  %v9974_v49 = vld [vmem:[%s12181_s1 + $0x188] sm:$0xff]  }
  0xd4   : > { %8480 = vmatprep.subr.bf16.mxu0 %v9955_v58 }
  0xd6   : > { %8445 = vmatmul.mubr.bf16.gmra.mrb[12].mxu0 %v10288_v59 }
  0xd7   : > { %8448 = vmatprep.mubr.bf16.mxu0 %v10290_v60  ;;  %8481 = vmatpush3.bf16.msra.mxu0 %v9955_v58  ;;  %v2265_v58 = vld [vmem:[#allocation2 + $0x73] sm:$0xff] }
  0xd8   : > { %8482 = vmatprep.subr.bf16.mxu0 %v9956_v61 }
  0xdb   : > { %8483 = vmatpush3.bf16.msra.mxu0 %v9956_v61  ;;  %v2294_v61 = vpack.c.bf16 %v2264_v57, %v2263_v56  ;;  %v9976_v56 = vld [vmem:[%s12181_s1 + $0x198] sm:$0xff]   ;;  %v2595_v57 = vld [vmem:[#allocation2 + $0x64] sm:$0xff] }
  0xdc   : > { %8520 = vmatprep.subr.bf16.mxu0 %v9957_v2 }
  0xde   : > { %8449 = vmatmul.mubr.bf16.gmra.mrb[16].mxu0 %v1634_v3 }
  0xdf   : > { %8452 = vmatprep.mubr.bf16.mxu0 %v10300_v4 }
  0xe6   : > { %8453 = vmatmul.mubr.bf16.gmra.mrb[20].mxu0 %v1636_v10 }
  0xe7   : > { %8456 = vmatprep.mubr.bf16.mxu0 %v1637_v11 }
  0xee   : > { %8457 = vmatmul.mubr.bf16.gmra.mrb[24].mxu0 %v1638_v16 }
  0xef   : > { %8460 = vmatprep.mubr.bf16.mxu0 %v1639_v17 }
  0xf6   : > { %8461 = vmatmul.mubr.bf16.gmra.mrb[28].mxu0 %v1640_v22 }
  0xf7   : > { %8464 = vmatprep.mubr.bf16.mxu0 %v1641_v23 }
  0xfe   : > { %8465 = vmatmul.mubr.bf16.gmra.mrb[32].mxu0 %v1642_v26 }
  0xff   : > { %8484 = vmatprep.mubr.bf16.mxu0 %v10250_v34  ;;  %v9964_v34 = vld [vmem:[%s12181_s1 + $0x138] sm:$0xff]  }
 0x106   : > { %8485 = vmatmul.mubr.bf16.vlgmr.msra.gmra.mrb[0].mxu0 %v10254_v37  ;;  %v1956_v37 = vld [vmem:[#allocation2 + $0x12a] sm:$0xff] }
 0x107   : > { %8521 = vmatpush3.bf16.msra.mxu0 %v9957_v2  ;;  %8488 = vmatprep.mubr.bf16.mxu0 %v10264_v43  ;;  %v1974_v40 = vpack.c.bf16 %v1956_v37, %v1955_v36  ;;  %v2257_v43 = vld [vmem:[#allocation2 + $0x33] sm:$0xff]  ;;  %v2288_v36 = vld [vmem:[#allocation2 + $0x12b] sm:$0xff] }
 0x108   : > { %8522 = vmatprep.subr.bf16.mxu0 %v9958_v27  ;;  %v2269_v2 = vld [vmem:[#allocation2 + $0x93] sm:$0xff] }
 0x109   : > { %v2585_v37 = vld [vmem:[#allocation2 + $0x14] sm:$0xff] }
 0x10b   : > { %8523 = vmatpush3.bf16.msra.mxu0 %v9958_v27  ;;  %v2303_v27 = vpack.c.bf16 %v2282_v25, %v2281_v24  ;;  %v2612_v24 = vld [vmem:[#allocation2 + $0xec] sm:$0xff]  ;;  %v2613_v25 = vld [vmem:[#allocation2 + $0xf4] sm:$0xff] }
 0x10c   : > { %8524 = vmatprep.subr.bf16.mxu0 %v9959_v28 }
 0x10e   : > { %8489 = vmatmul.mubr.bf16.gmra.mrb[4].mxu0 %v10266_v44  ;;  %v2258_v44 = vld [vmem:[#allocation2 + $0x3b] sm:$0xff] }
 0x10f   : > { %8492 = vmatprep.mubr.bf16.mxu0 %v10276_v51  ;;  %8525 = vmatpush3.bf16.msra.mxu0 %v9959_v28  ;;  %v2291_v46 = vpack.c.bf16 %v2258_v44, %v2257_v43  ;;  %v2262_v51 = vld [vmem:[#allocation2 + $0x5b] sm:$0xff]  ;;  %v2283_v28 = vld [vmem:[#allocation2 + $0x103] sm:$0xff] }
 0x110   : > { %8526 = vmatprep.subr.bf16.mxu0 %v9960_v29  ;;  %v2293_v54 = vpack.c.bf16 %v2262_v51, %v2261_v50  ;;  %v2590_v43 = vld [vmem:[#allocation2 + $0x3c] sm:$0xff]  ;;  %v2591_v50 = vld [vmem:[#allocation2 + $0x44] sm:$0xff]  ;;  %v2592_v51 = vld [vmem:[#allocation2 + $0x4c] sm:$0xff] }
 0x111   : > { %v915_v44 = vld [vmem:[%s10139_s29 + $0xa0] sm:$0xf]  ;;  %v10364_v48 = vpack.c.bf16 %v2590_v43, %v2589_v42  ;;  %v9986_v42 = vld [vmem:[%s12181_s1 + $0x1e8] sm:$0xff]   ;;  %v9987_v43 = vld [vmem:[%s12181_s1 + $0x1f0] sm:$0xff]  }
 0x113   : > { %8527 = vmatpush3.bf16.msra.mxu0 %v9960_v29  ;;  %v2284_v29 = vld [vmem:[#allocation2 + $0x10b] sm:$0xff] }
 0x114   : > { %8528 = vmatprep.subr.bf16.mxu0 %v9961_v30 }
 0x116   : > { %8493 = vmatmul.mubr.bf16.gmra.mrb[8].mxu0 %v10278_v52  ;;  %v9967_v52 = vld [vmem:[%s12181_s1 + $0x150] sm:$0xff]  }
 0x117   : > { %8496 = vmatprep.mubr.bf16.mxu0 %v10288_v59  ;;  %8529 = vmatpush3.bf16.msra.mxu0 %v9961_v30  ;;  %v2266_v59 = vld [vmem:[#allocation2 + $0x7b] sm:$0xff]  ;;  %v2285_v30 = vld [vmem:[#allocation2 + $0x113] sm:$0xff] }
 0x118   : > { %8530 = vmatprep.subr.bf16.mxu0 %v9962_v31  ;;  %v2295_v62 = vpack.c.bf16 %v2266_v59, %v2265_v58  ;;  %v2596_v58 = vld [vmem:[#allocation2 + $0x6c] sm:$0xff]  ;;  %v2597_v59 = vld [vmem:[#allocation2 + $0x74] sm:$0xff] }
 0x11b   : > { %8531 = vmatpush3.bf16.msra.mxu0 %v9962_v31  ;;  %v2286_v31 = vld [vmem:[#allocation2 + $0x11b] sm:$0xff] }
 0x11c   : > { %8532 = vmatprep.subr.bf16.mxu0 %v9963_v32 }
 0x11e   : > { %8497 = vmatmul.mubr.bf16.gmra.mrb[12].mxu0 %v10290_v60  ;;  %v9969_v60 = vld [vmem:[%s12181_s1 + $0x160] sm:$0xff]  }
 0x11f   : > { %8500 = vmatprep.mubr.bf16.mxu0 %v1634_v3  ;;  %8533 = vmatpush3.bf16.msra.mxu0 %v9963_v32  ;;  %v2270_v3 = vld [vmem:[#allocation2 + $0x9b] sm:$0xff]  ;;  %v2304_v32 = vpack.c.bf16 %v2284_v29, %v2283_v28  ;;  %v2615_v29 = vld [vmem:[#allocation2 + $0x104] sm:$0xff] }
 0x120   : > { %8534 = vmatprep.subr.bf16.mxu0 %v9964_v34  ;;  %v2297_v6 = vpack.c.bf16 %v2270_v3, %v2269_v2  ;;  %v2600_v2 = vld [vmem:[#allocation2 + $0x8c] sm:$0xff]  ;;  %v2601_v3 = vld [vmem:[#allocation2 + $0x94] sm:$0xff] }
 0x123   : > { %8535 = vmatpush3.bf16.msra.mxu0 %v9964_v34  ;;  %v2305_v34 = vpack.c.bf16 %v2286_v31, %v2285_v30  ;;  %v2616_v30 = vld [vmem:[#allocation2 + $0x10c] sm:$0xff]  ;;  %v2617_v31 = vld [vmem:[#allocation2 + $0x114] sm:$0xff] }
 0x124   : > { %8572 = vmatprep.subr.bf16.mxu0 %v9965_v35 }
 0x126   : > { %8501 = vmatmul.mubr.bf16.gmra.mrb[16].mxu0 %v10300_v4  ;;  %v9971_v4 = vld [vmem:[%s12181_s1 + $0x170] sm:$0xff]  }
 0x127   : > { %8504 = vmatprep.mubr.bf16.mxu0 %v1636_v10  ;;  %v2272_v10 = vld [vmem:[#allocation2 + $0xab] sm:$0xff] }
 0x128   : > { %v2298_v14 = vpack.c.bf16 %v2272_v10, %v2271_v9  ;;  %v9980_v9 = vld [vmem:[%s12181_s1 + $0x1b8] sm:$0xff]   ;;  %v2603_v10 = vld [vmem:[#allocation2 + $0xa4] sm:$0xff] }
 0x12e   : > { %8505 = vmatmul.mubr.bf16.gmra.mrb[20].mxu0 %v1637_v11  ;;  %v2273_v11 = vld [vmem:[#allocation2 + $0xb3] sm:$0xff] }
 0x12f   : > { %8508 = vmatprep.mubr.bf16.mxu0 %v1638_v16  ;;  %v2299_v15 = vpack.c.bf16 %v2274_v12, %v2273_v11  ;;  %v2275_v16 = vld [vmem:[#allocation2 + $0xc3] sm:$0xff]  ;;  %v2604_v11 = vld [vmem:[#allocation2 + $0xac] sm:$0xff]  ;;  %v2605_v12 = vld [vmem:[#allocation2 + $0xb4] sm:$0xff] }
 0x136   : > { %8509 = vmatmul.mubr.bf16.gmra.mrb[24].mxu0 %v1639_v17  ;;  %v2276_v17 = vld [vmem:[#allocation2 + $0xcb] sm:$0xff] }
 0x137   : > { %8512 = vmatprep.mubr.bf16.mxu0 %v1640_v22  ;;  %v2300_v20 = vpack.c.bf16 %v2276_v17, %v2275_v16  ;;  %v2279_v22 = vld [vmem:[#allocation2 + $0xe3] sm:$0xff] }
 0x138   : > { %v2607_v17 = vld [vmem:[#allocation2 + $0xc4] sm:$0xff] }
 0x13e   : > { %8513 = vmatmul.mubr.bf16.gmra.mrb[28].mxu0 %v1641_v23  ;;  %v2280_v23 = vld [vmem:[#allocation2 + $0xeb] sm:$0xff] }
 0x13f   : > { %8516 = vmatprep.mubr.bf16.mxu0 %v1642_v26  ;;  %v2302_v26 = vpack.c.bf16 %v2280_v23, %v2279_v22  ;;  %v2611_v23 = vld [vmem:[#allocation2 + $0xe4] sm:$0xff] }
 0x146   : > { %8517 = vmatmul.mubr.bf16.gmra.mrb[32].mxu0 %v1974_v40  ;;  %v2621_v40 = vpack.c.bf16 %v2586_v38, %v2585_v37  ;;  %v2620_v37 = vld [vmem:[#allocation2 + $0x12c] sm:$0xff] }
 0x147   : > { %8536 = vmatprep.mubr.bf16.mxu0 %v2289_v41  ;;  %v2587_v41 = vld [vmem:[#allocation2 + $0x24] sm:$0xff] }
 0x14e   : > { %8537 = vmatmul.mubr.bf16.vlgmr.msra.gmra.mrb[0].mxu0 %v2290_v45  ;;  %v10361_v45 = vpack.c.bf16 %v2588_v7, %v2587_v41  ;;  %v9984_v41 = vld [vmem:[%s12181_s1 + $0x1d8] sm:$0xff]   ;;  %v9985_v7 = vld [vmem:[%s12181_s1 + $0x1e0] sm:$0xff]  }
 0x14f   : > { %8573 = vmatpush3.bf16.msra.mxu0 %v9965_v35  ;;  %8540 = vmatprep.mubr.bf16.mxu0 %v2291_v46  ;;  %v2287_v35 = vld [vmem:[#allocation2 + $0x123] sm:$0xff]  ;;  %v7824_v46 = vunpack.c.h.bf16 %v10248_v33  ;;  %v9975_v33 = vld [vmem:[%s12181_s1 + $0x190] sm:$0xff]  }
 0x150   : > { %8574 = vmatprep.subr.bf16.mxu0 %v9966_v47  ;;  %v2306_v39 = vpack.c.bf16 %v2288_v36, %v2287_v35  ;;  %v2619_v36 = vld [vmem:[#allocation2 + $0x124] sm:$0xff] }
 0x151   : > { %996 = vst [vmem:[#allocation2 + $0x138] sm:$0xff] %v7824_v46  ;;  %v2638_v38 = vpack.c.bf16 %v2620_v37, %v2619_v36  ;;  %v3275_v36 = vld [vmem:[#allocation2 + $0xf5] sm:$0xff]  ;;  %v3276_v37 = vld [vmem:[#allocation2 + $0xfd] sm:$0xff] }
 0x153   : > { %8575 = vmatpush3.bf16.msra.mxu0 %v9966_v47  ;;  %v956_v47 = vunpack.c.l.bf16 %v915_v44  ;;  %v9988_v44 = vld [vmem:[%s12181_s1 + $0x1f8] sm:$0xff]  }
 0x154   : > { %8576 = vmatprep.subr.bf16.mxu0 %v9967_v52 }
 0x155   : > { %997 = vst [vmem:[#allocation2 + $0x140] sm:$0xff] %v956_v47 }
 0x156   : > { %8541 = vmatmul.mubr.bf16.gmra.mrb[4].mxu0 %v2292_v53  ;;  %v2594_v53 = vld [vmem:[#allocation2 + $0x5c] sm:$0xff] }
 0x157   : > { %8544 = vmatprep.mubr.bf16.mxu0 %v2293_v54  ;;  %8577 = vmatpush3.bf16.msra.mxu0 %v9967_v52  ;;  %v2593_v52 = vld [vmem:[#allocation2 + $0x54] sm:$0xff]  ;;  %v10374_v54 = vpack.c.bf16 %v2592_v51, %v2591_v50 }
 0x158   : > { %8578 = vmatprep.subr.bf16.mxu0 %v9968_v55  ;;  %v2951_v46 = vld [vmem:[#allocation2 + $0x134] sm:$0xff] }
 0x15b   : > { %8579 = vmatpush3.bf16.msra.mxu0 %v9968_v55  ;;  %v10376_v55 = vpack.c.bf16 %v2594_v53, %v2593_v52  ;;  %v3251_v52 = vld [vmem:[#allocation2 + $0x35] sm:$0xff]  ;;  %v3252_v53 = vld [vmem:[#allocation2 + $0x3d] sm:$0xff] }
 0x15c   : > { %8580 = vmatprep.subr.bf16.mxu0 %v9969_v60  ;;  %v2952_v47 = vld [vmem:[#allocation2 + $0x13c] sm:$0xff] }
 0x15d   : > { %v2970_v50 = vpack.c.bf16 %v2952_v47, %v2951_v46  ;;  %v3283_v47 = vld [vmem:[#allocation2 + $0x135] sm:$0xff] }
 0x15e   : > { %8545 = vmatmul.mubr.bf16.gmra.mrb[8].mxu0 %v2294_v61  ;;  %v9977_v61 = vld [vmem:[%s12181_s1 + $0x1a0] sm:$0xff]  }
 0x15f   : > { %8548 = vmatprep.mubr.bf16.mxu0 %v2295_v62  ;;  %8581 = vmatpush3.bf16.msra.mxu0 %v9969_v60  ;;  %v2598_v60 = vld [vmem:[#allocation2 + $0x7c] sm:$0xff]  ;;  %v10386_v62 = vpack.c.bf16 %v2596_v58, %v2595_v57  ;;  %v9990_v57 = vld [vmem:[%s12181_s1 + $0x208] sm:$0xff]  }
 0x160   : > { %8582 = vmatprep.subr.bf16.mxu0 %v9970_v63  ;;  %v3255_v58 = vld [vmem:[#allocation2 + $0x55] sm:$0xff] }
 0x163   : > { %8583 = vmatpush3.bf16.msra.mxu0 %v9970_v63  ;;  %v10388_v63 = vpack.c.bf16 %v2598_v60, %v2597_v59  ;;  %v3256_v59 = vld [vmem:[#allocation2 + $0x5d] sm:$0xff]  ;;  %v3257_v60 = vld [vmem:[#allocation2 + $0x65] sm:$0xff] }
 0x164   : > { %8584 = vmatprep.subr.bf16.mxu0 %v9971_v4 }
 0x166   : > { %8549 = vmatmul.mubr.bf16.gmra.mrb[12].mxu0 %v2296_v5  ;;  %v9979_v5 = vld [vmem:[%s12181_s1 + $0x1b0] sm:$0xff]  }
 0x167   : > { %8552 = vmatprep.mubr.bf16.mxu0 %v2297_v6  ;;  %8585 = vmatpush3.bf16.msra.mxu0 %v9971_v4  ;;  %v2602_v4 = vld [vmem:[#allocation2 + $0x9c] sm:$0xff]  ;;  %v10398_v6 = vpack.c.bf16 %v2600_v2, %v2599_v1 }
 0x168   : > { %8586 = vmatprep.subr.bf16.mxu0 %v9972_v8  ;;  %v9992_v1 = vld [vmem:[%s12181_s1 + $0x218] sm:$0xff]   ;;  %v9997_v2 = vld [vmem:[%s12183_s3 + $0x40] sm:$0xff]  }
 0x169   : > { %8780 = vmatprep.subr.bf16.mxu1 %v9997_v2 }
 0x16a   : > { %8781 = vmatpush3.bf16.msra.mxu1 %v9997_v2  ;;  %v3593_v2 = vld [vmem:[#allocation2 + $0x86] sm:$0xff] }
 0x16b   : > { %8587 = vmatpush3.bf16.msra.mxu0 %v9972_v8  ;;  %v10400_v8 = vpack.c.bf16 %v2602_v4, %v2601_v3  ;;  %v9998_v3 = vld [vmem:[%s12183_s3 + $0x48] sm:$0xff]   ;;  %v3259_v4 = vld [vmem:[#allocation2 + $0x75] sm:$0xff] }
 0x16c   : > { %8624 = vmatprep.subr.bf16.mxu0 %v9973_v13  ;;  %8782 = vmatprep.subr.bf16.mxu1 %v9998_v3 }
 0x16e   : > { %8553 = vmatmul.mubr.bf16.gmra.mrb[16].mxu0 %v2298_v14  ;;  %v9981_v14 = vld [vmem:[%s12181_s1 + $0x1c0] sm:$0xff]   ;;  %8783 = vmatpush3.bf16.msra.mxu1 %v9998_v3  ;;  %v3594_v3 = vld [vmem:[#allocation2 + $0x8e] sm:$0xff] }
 0x16f   : > { %8556 = vmatprep.mubr.bf16.mxu0 %v2299_v15  ;;  %v2630_v15 = vpack.c.bf16 %v2604_v11, %v2603_v10  ;;  %v9999_v11 = vld [vmem:[%s12183_s3 + $0x50] sm:$0xff]  }
 0x170   : > { %8784 = vmatprep.subr.bf16.mxu1 %v9999_v11 }
 0x172   : > { %8785 = vmatpush3.bf16.msra.mxu1 %v9999_v11 }
 0x176   : > { %8557 = vmatmul.mubr.bf16.gmra.mrb[20].mxu0 %v2300_v20  ;;  %v2610_v20 = vld [vmem:[#allocation2 + $0xdc] sm:$0xff] }
 0x177   : > { %8560 = vmatprep.mubr.bf16.mxu0 %v2301_v21  ;;  %v2632_v21 = vpack.c.bf16 %v2608_v18, %v2607_v17  ;;  %v2633_v22 = vpack.c.bf16 %v2610_v20, %v2609_v19  ;;  %v3265_v17 = vld [vmem:[#allocation2 + $0xa5] sm:$0xff]  ;;  %v3266_v18 = vld [vmem:[#allocation2 + $0xad] sm:$0xff] }
 0x178   : > { %v9995_v19 = vld [vmem:[%s12181_s1 + $0x230] sm:$0xff]  }
 0x17e   : > { %8561 = vmatmul.mubr.bf16.gmra.mrb[24].mxu0 %v2302_v26  ;;  %v2614_v26 = vld [vmem:[#allocation2 + $0xfc] sm:$0xff] }
 0x17f   : > { %8564 = vmatprep.mubr.bf16.mxu0 %v2303_v27  ;;  %v2634_v27 = vpack.c.bf16 %v2612_v24, %v2611_v23  ;;  %v2635_v28 = vpack.c.bf16 %v2614_v26, %v2613_v25  ;;  %v3267_v23 = vld [vmem:[#allocation2 + $0xb5] sm:$0xff]  ;;  %v3268_v24 = vld [vmem:[#allocation2 + $0xbd] sm:$0xff]  ;;  %v3269_v25 = vld [vmem:[#allocation2 + $0xc5] sm:$0xff] }
 0x180   : > { %v3270_v26 = vld [vmem:[#allocation2 + $0xcd] sm:$0xff] }
 0x186   : > { %8565 = vmatmul.mubr.bf16.gmra.mrb[28].mxu0 %v2304_v32  ;;  %v2618_v32 = vld [vmem:[#allocation2 + $0x11c] sm:$0xff] }
 0x187   : > { %8568 = vmatprep.mubr.bf16.mxu0 %v2305_v34  ;;  %v2636_v34 = vpack.c.bf16 %v2616_v30, %v2615_v29  ;;  %v2637_v35 = vpack.c.bf16 %v2618_v32, %v2617_v31  ;;  %v3271_v29 = vld [vmem:[#allocation2 + $0xd5] sm:$0xff]  ;;  %v3272_v30 = vld [vmem:[#allocation2 + $0xdd] sm:$0xff]  ;;  %v3273_v31 = vld [vmem:[#allocation2 + $0xe5] sm:$0xff] }
 0x188   : > { %v3274_v32 = vld [vmem:[#allocation2 + $0xed] sm:$0xff] }
 0x18e   : > { %8569 = vmatmul.mubr.bf16.gmra.mrb[32].mxu0 %v2306_v39  ;;  %v9982_v39 = vld [vmem:[%s12181_s1 + $0x1c8] sm:$0xff]  }
 0x18f   : > { %8588 = vmatprep.mubr.bf16.mxu0 %v2621_v40  ;;  %v9983_v40 = vld [vmem:[%s12181_s1 + $0x1d0] sm:$0xff]  }
 0x196   : > { %8589 = vmatmul.mubr.bf16.vlgmr.msra.gmra.mrb[0].mxu0 %v10361_v45 }
 0x197   : > { %8625 = vmatpush3.bf16.msra.mxu0 %v9973_v13  ;;  %8592 = vmatprep.mubr.bf16.mxu0 %v10364_v48  ;;  %v2606_v13 = vld [vmem:[#allocation2 + $0xbc] sm:$0xff] }
 0x198   : > { %8626 = vmatprep.subr.bf16.mxu0 %v9974_v49  ;;  %v10410_v16 = vpack.c.bf16 %v2606_v13, %v2605_v12  ;;  %v9994_v13 = vld [vmem:[%s12181_s1 + $0x228] sm:$0xff]  }
 0x19b   : > { %8627 = vmatpush3.bf16.msra.mxu0 %v9974_v49  ;;  %v3250_v49 = vld [vmem:[#allocation2 + $0x2d] sm:$0xff] }
 0x19c   : > { %8628 = vmatprep.subr.bf16.mxu0 %v9975_v33 }
 0x19e   : > { %8593 = vmatmul.mubr.bf16.gmra.mrb[4].mxu0 %v10374_v54 }
 0x19f   : > { %8596 = vmatprep.mubr.bf16.mxu0 %v10376_v55  ;;  %8629 = vmatpush3.bf16.msra.mxu0 %v9975_v33  ;;  %v3253_v33 = vld [vmem:[#allocation2 + $0x45] sm:$0xff] }
 0x1a0   : > { %8630 = vmatprep.subr.bf16.mxu0 %v9976_v56 }
 0x1a3   : > { %8631 = vmatpush3.bf16.msra.mxu0 %v9976_v56 }
 0x1a4   : > { %8632 = vmatprep.subr.bf16.mxu0 %v9977_v61 }
 0x1a6   : > { %8597 = vmatmul.mubr.bf16.gmra.mrb[8].mxu0 %v10386_v62 }
 0x1a7   : > { %8600 = vmatprep.mubr.bf16.mxu0 %v10388_v63  ;;  %8633 = vmatpush3.bf16.msra.mxu0 %v9977_v61  ;;  %v3258_v61 = vld [vmem:[#allocation2 + $0x6d] sm:$0xff] }
 0x1a8   : > { %8634 = vmatprep.subr.bf16.mxu0 %v9978_v0 }
 0x1ab   : > { %8635 = vmatpush3.bf16.msra.mxu0 %v9978_v0  ;;  %v3289_v0 = vpack.c.bf16 %v3258_v61, %v3257_v60  ;;  %v3589_v60 = vld [vmem:[#allocation2 + $0x66] sm:$0xff]  ;;  %v3590_v61 = vld [vmem:[#allocation2 + $0x6e] sm:$0xff] }
 0x1ac   : > { %8636 = vmatprep.subr.bf16.mxu0 %v9979_v5 }
 0x1ae   : > { %8601 = vmatmul.mubr.bf16.gmra.mrb[12].mxu0 %v10398_v6 }
 0x1af   : > { %8604 = vmatprep.mubr.bf16.mxu0 %v10400_v8  ;;  %8637 = vmatpush3.bf16.msra.mxu0 %v9979_v5  ;;  %v3260_v5 = vld [vmem:[#allocation2 + $0x7d] sm:$0xff] }
 0x1b0   : > { %8638 = vmatprep.subr.bf16.mxu0 %v9980_v9  ;;  %v3290_v10 = vpack.c.bf16 %v3260_v5, %v3259_v4  ;;  %v3623_v5 = vpack.c.bf16 %v3594_v3, %v3593_v2 }
 0x1b3   : > { %8639 = vmatpush3.bf16.msra.mxu0 %v9980_v9  ;;  %v9993_v9 = vld [vmem:[%s12181_s1 + $0x220] sm:$0xff]  }
 0x1b4   : > { %8676 = vmatprep.subr.bf16.mxu0 %v9981_v14 }
 0x1b6   : > { %8605 = vmatmul.mubr.bf16.gmra.mrb[16].mxu0 %v2630_v15 }
 0x1b7   : > { %8608 = vmatprep.mubr.bf16.mxu0 %v10410_v16 }
 0x1be   : > { %8609 = vmatmul.mubr.bf16.gmra.mrb[20].mxu0 %v2632_v21 }
 0x1bf   : > { %8612 = vmatprep.mubr.bf16.mxu0 %v2633_v22 }
 0x1c6   : > { %8613 = vmatmul.mubr.bf16.gmra.mrb[24].mxu0 %v2634_v27 }
 0x1c7   : > { %8616 = vmatprep.mubr.bf16.mxu0 %v2635_v28 }
 0x1ce   : > { %8617 = vmatmul.mubr.bf16.gmra.mrb[28].mxu0 %v2636_v34 }
 0x1cf   : > { %8620 = vmatprep.mubr.bf16.mxu0 %v2637_v35 }
 0x1d6   : > { %8621 = vmatmul.mubr.bf16.gmra.mrb[32].mxu0 %v2638_v38 }
 0x1d7   : > { %8640 = vmatprep.mubr.bf16.mxu0 %v10361_v45  ;;  %v9989_v45 = vld [vmem:[%s12181_s1 + $0x200] sm:$0xff]  }
 0x1de   : > { %8641 = vmatmul.mubr.bf16.vlgmr.msra.gmra.mrb[0].mxu0 %v10364_v48  ;;  %v3249_v48 = vld [vmem:[#allocation2 + $0x25] sm:$0xff] }
 0x1df   : > { %8677 = vmatpush3.bf16.msra.mxu0 %v9981_v14  ;;  %8644 = vmatprep.mubr.bf16.mxu0 %v10374_v54  ;;  %v3285_v51 = vpack.c.bf16 %v3250_v49, %v3249_v48  ;;  %v3254_v54 = vld [vmem:[#allocation2 + $0x4d] sm:$0xff]  ;;  %v10000_v14 = vld [vmem:[%s12183_s3 + $0x58] sm:$0xff]  }
 0x1e0   : > { %8678 = vmatprep.subr.bf16.mxu0 %v9982_v39  ;;  %v3287_v56 = vpack.c.bf16 %v3254_v54, %v3253_v33  ;;  %8786 = vmatprep.subr.bf16.mxu1 %v10000_v14  ;;  %v3284_v48 = vld [vmem:[#allocation2 + $0x13d] sm:$0xff]  ;;  %v3581_v49 = vld [vmem:[#allocation2 + $0x26] sm:$0xff] }
 0x1e1   : > { %8787 = vmatpush3.bf16.msra.mxu1 %v10000_v14  ;;  %v3584_v33 = vld [vmem:[#allocation2 + $0x3e] sm:$0xff]  ;;  %v3585_v54 = vld [vmem:[#allocation2 + $0x46] sm:$0xff] }
 0x1e2   : > { %v3600_v14 = vld [vmem:[#allocation2 + $0xbe] sm:$0xff] }
 0x1e3   : > { %8679 = vmatpush3.bf16.msra.mxu0 %v9982_v39  ;;  %v3278_v39 = vld [vmem:[#allocation2 + $0x10d] sm:$0xff] }
 0x1e4   : > { %8680 = vmatprep.subr.bf16.mxu0 %v9983_v40 }
 0x1e6   : > { %8645 = vmatmul.mubr.bf16.gmra.mrb[4].mxu0 %v10376_v55  ;;  %v3286_v55 = vpack.c.bf16 %v3252_v53, %v3251_v52  ;;  %v3583_v53 = vld [vmem:[#allocation2 + $0x36] sm:$0xff] }
 0x1e7   : > { %8648 = vmatprep.mubr.bf16.mxu0 %v10386_v62  ;;  %8681 = vmatpush3.bf16.msra.mxu0 %v9983_v40  ;;  %v9991_v62 = vld [vmem:[%s12181_s1 + $0x210] sm:$0xff]   ;;  %v3298_v40 = vpack.c.bf16 %v3276_v37, %v3275_v36 }
 0x1e8   : > { %8682 = vmatprep.subr.bf16.mxu0 %v9984_v41 }
 0x1eb   : > { %8683 = vmatpush3.bf16.msra.mxu0 %v9984_v41 }
 0x1ec   : > { %8684 = vmatprep.subr.bf16.mxu0 %v9985_v7 }
 0x1ee   : > { %8649 = vmatmul.mubr.bf16.gmra.mrb[8].mxu0 %v10388_v63  ;;  %v3288_v63 = vpack.c.bf16 %v3256_v59, %v3255_v58  ;;  %v3587_v58 = vld [vmem:[#allocation2 + $0x56] sm:$0xff]  ;;  %v3588_v59 = vld [vmem:[#allocation2 + $0x5e] sm:$0xff] }
 0x1ef   : > { %8652 = vmatprep.mubr.bf16.mxu0 %v10398_v6  ;;  %8685 = vmatpush3.bf16.msra.mxu0 %v9985_v7  ;;  %v3261_v6 = vld [vmem:[#allocation2 + $0x85] sm:$0xff]  ;;  %v3279_v7 = vld [vmem:[#allocation2 + $0x115] sm:$0xff] }
 0x1f0   : > { %8686 = vmatprep.subr.bf16.mxu0 %v9986_v42 }
 0x1f3   : > { %8687 = vmatpush3.bf16.msra.mxu0 %v9986_v42  ;;  %v3280_v42 = vld [vmem:[#allocation2 + $0x11d] sm:$0xff] }
 0x1f4   : > { %8688 = vmatprep.subr.bf16.mxu0 %v9987_v43 }
 0x1f6   : > { %8653 = vmatmul.mubr.bf16.gmra.mrb[12].mxu0 %v10400_v8  ;;  %v3262_v8 = vld [vmem:[#allocation2 + $0x8d] sm:$0xff] }
 0x1f7   : > { %8656 = vmatprep.mubr.bf16.mxu0 %v2630_v15  ;;  %8689 = vmatpush3.bf16.msra.mxu0 %v9987_v43  ;;  %v3291_v12 = vpack.c.bf16 %v3262_v8, %v3261_v6  ;;  %v3263_v15 = vld [vmem:[#allocation2 + $0x95] sm:$0xff]  ;;  %v3281_v43 = vld [vmem:[#allocation2 + $0x125] sm:$0xff] }
 0x1f8   : > { %8690 = vmatprep.subr.bf16.mxu0 %v9988_v44  ;;  %v3595_v6 = vld [vmem:[#allocation2 + $0x96] sm:$0xff]  ;;  %v3596_v8 = vld [vmem:[#allocation2 + $0x9e] sm:$0xff] }
 0x1f9   : > { %v3624_v11 = vpack.c.bf16 %v3596_v8, %v3595_v6 }
 0x1fb   : > { %8691 = vmatpush3.bf16.msra.mxu0 %v9988_v44  ;;  %v3282_v44 = vld [vmem:[#allocation2 + $0x12d] sm:$0xff] }
 0x1fc   : > { %8728 = vmatprep.subr.bf16.mxu0 %v9989_v45  ;;  %v3301_v46 = vpack.c.bf16 %v3282_v44, %v3281_v43  ;;  %v10003_v43 = vld [vmem:[%s12183_s3 + $0x70] sm:$0xff]   ;;  %v10004_v44 = vld [vmem:[%s12183_s3 + $0x78] sm:$0xff]  }
 0x1fe   : > { %8657 = vmatmul.mubr.bf16.gmra.mrb[16].mxu0 %v10410_v16  ;;  %v3264_v16 = vld [vmem:[#allocation2 + $0x9d] sm:$0xff] }
 0x1ff   : > { %8660 = vmatprep.mubr.bf16.mxu0 %v2632_v21  ;;  %v3292_v20 = vpack.c.bf16 %v3264_v16, %v3263_v15  ;;  %v3293_v21 = vpack.c.bf16 %v3266_v18, %v3265_v17  ;;  %v3601_v15 = vld [vmem:[#allocation2 + $0xc6] sm:$0xff]  ;;  %v3602_v16 = vld [vmem:[#allocation2 + $0xce] sm:$0xff] }
 0x200   : > { %v3627_v18 = vpack.c.bf16 %v3602_v16, %v3601_v15 }
 0x206   : > { %8661 = vmatmul.mubr.bf16.gmra.mrb[20].mxu0 %v2633_v22  ;;  %v9996_v22 = vld [vmem:[%s12181_s1 + $0x238] sm:$0xff]  }
 0x207   : > { %8664 = vmatprep.mubr.bf16.mxu0 %v2634_v27  ;;  %v3294_v27 = vpack.c.bf16 %v3268_v24, %v3267_v23 }
 0x20e   : > { %8665 = vmatmul.mubr.bf16.gmra.mrb[24].mxu0 %v2635_v28  ;;  %v3295_v28 = vpack.c.bf16 %v3270_v26, %v3269_v25  ;;  %v3607_v25 = vld [vmem:[#allocation2 + $0xf6] sm:$0xff]  ;;  %v3608_v26 = vld [vmem:[#allocation2 + $0xfe] sm:$0xff] }
 0x20f   : > { %8668 = vmatprep.mubr.bf16.mxu0 %v2636_v34  ;;  %v3296_v34 = vpack.c.bf16 %v3272_v30, %v3271_v29  ;;  %v3630_v29 = vpack.c.bf16 %v3608_v26, %v3607_v25 }
 0x216   : > { %8669 = vmatmul.mubr.bf16.gmra.mrb[28].mxu0 %v2637_v35  ;;  %v3297_v35 = vpack.c.bf16 %v3274_v32, %v3273_v31  ;;  %v3611_v31 = vld [vmem:[#allocation2 + $0x116] sm:$0xff]  ;;  %v3612_v32 = vld [vmem:[#allocation2 + $0x11e] sm:$0xff] }
 0x217   : > { %8672 = vmatprep.mubr.bf16.mxu0 %v2638_v38  ;;  %v3277_v38 = vld [vmem:[#allocation2 + $0x105] sm:$0xff]  ;;  %v3632_v36 = vpack.c.bf16 %v3612_v32, %v3611_v31 }
 0x218   : > { %v3299_v41 = vpack.c.bf16 %v3278_v39, %v3277_v38  ;;  %v3615_v38 = vld [vmem:[#allocation2 + $0x136] sm:$0xff]  ;;  %v3616_v39 = vld [vmem:[#allocation2 + $0x13e] sm:$0xff] }
 0x21e   : > { %8673 = vmatmul.mubr.bf16.gmra.mrb[32].mxu0 %v2970_v50  ;;  %v3582_v50 = vld [vmem:[#allocation2 + $0x2e] sm:$0xff] }
 0x21f   : > { %8692 = vmatprep.mubr.bf16.mxu0 %v3285_v51  ;;  %v3302_v51 = vpack.c.bf16 %v3284_v48, %v3283_v47  ;;  %v3617_v52 = vpack.c.bf16 %v3582_v50, %v3581_v49  ;;  %v10494_v48 = vld [vmem:[%s12183_s3] sm:$0xff]   ;;  %v226_v49 = vlaneseq }
 0x220   : > { %12207 = vst [vmem:[#allocation4_spill] sm:$0xff] %v10494_v48 }
 0x221   : > { %v10497_v50 = vshrl.u32 %v226_v49, 7 }
 0x223   : > { %v231_v2 = vadd.s32 32, %v10497_v50  ;;  %v10533_v16 = vadd.s32 40, %v10497_v50  ;;  %v10553_v25 = vadd.s32 64, %v10497_v50  ;;  %v10556_v26 = vadd.s32 88, %v10497_v50 }
 0x226   : > { %8693 = vmatmul.mubr.bf16.vlgmr.msra.gmra.mrb[0].mxu0 %v3286_v55  ;;  %v3586_v55 = vld [vmem:[#allocation2 + $0x4e] sm:$0xff] }
 0x227   : > { %8729 = vmatpush3.bf16.msra.mxu0 %v9989_v45  ;;  %8696 = vmatprep.mubr.bf16.mxu0 %v3287_v56  ;;  %v3300_v45 = vpack.c.bf16 %v3280_v42, %v3279_v7  ;;  %v3618_v56 = vpack.c.bf16 %v3584_v33, %v3583_v53  ;;  %v10084_v7 = vmov 0.0   ;;  %v10002_v42 = vld [vmem:[%s12183_s3 + $0x68] sm:$0xff]   ;;  %v228_v53 = vadd.s32 8, %v10497_v50 }
 0x228   : > { %8730 = vmatprep.subr.bf16.mxu0 %v9990_v57  ;;  %4104 = vst [vmem:[#allocation3 + $0x20] sm:$0xff] %v10084_v7  ;;  %4105 = vst [vmem:[#allocation3 + $0x28] sm:$0xff] %v10084_v7 }
 0x229   : > { %4100 = vst [vmem:[#allocation3] sm:$0xff] %v10084_v7  ;;  %4101 = vst [vmem:[#allocation3 + $0x8] sm:$0xff] %v10084_v7 }
 0x22a   : > { %4102 = vst [vmem:[#allocation3 + $0x10] sm:$0xff] %v10084_v7  ;;  %4103 = vst [vmem:[#allocation3 + $0x18] sm:$0xff] %v10084_v7 }
 0x22b   : > { %8731 = vmatpush3.bf16.msra.mxu0 %v9990_v57  ;;  %v3619_v57 = vpack.c.bf16 %v3586_v55, %v3585_v54  ;;  %4106 = vst [vmem:[#allocation3 + $0x30] sm:$0xff] %v10084_v7  ;;  %4107 = vst [vmem:[#allocation3 + $0x38] sm:$0xff] %v10084_v7 }
 0x22c   : > { %8732 = vmatprep.subr.bf16.mxu0 %v9991_v62  ;;  %4108 = vst [vmem:[#allocation3 + $0x40] sm:$0xff] %v10084_v7  ;;  %4109 = vst [vmem:[#allocation3 + $0x48] sm:$0xff] %v10084_v7 }
 0x22d   : > { %4110 = vst [vmem:[#allocation3 + $0x50] sm:$0xff] %v10084_v7  ;;  %4111 = vst [vmem:[#allocation3 + $0x58] sm:$0xff] %v10084_v7 }
 0x22e   : > { %8697 = vmatmul.mubr.bf16.gmra.mrb[4].mxu0 %v3288_v63  ;;  %v3621_v63 = vpack.c.bf16 %v3590_v61, %v3589_v60  ;;  %4112 = vst [vmem:[#allocation3 + $0x60] sm:$0xff] %v10084_v7  ;;  %4113 = vst [vmem:[#allocation3 + $0x68] sm:$0xff] %v10084_v7  ;;  %v233_v61 = vadd.s32 48, %v10497_v50 }
 0x22f   : > { %8700 = vmatprep.mubr.bf16.mxu0 %v3289_v0  ;;  %8733 = vmatpush3.bf16.msra.mxu0 %v9991_v62  ;;  %v3620_v62 = vpack.c.bf16 %v3588_v59, %v3587_v58  ;;  %v3591_v0 = vld [vmem:[#allocation2 + $0x76] sm:$0xff]  ;;  %4114 = vst [vmem:[#allocation3 + $0x70] sm:$0xff] %v10084_v7  ;;  %4115 = vst [vmem:[#allocation3 + $0x78] sm:$0xff] %v10084_v7  ;;  %v10512_v59 = vmul.u32.u64.low 3817748708, %v228_v53  ;;  %v10513_v60 = vmul.u32.u64.high 3817748708, %v228_v53, %v10512_v59 }
 0x230   : > { %8734 = vmatprep.subr.bf16.mxu0 %v9992_v1  ;;  %4116 = vst [vmem:[#allocation3 + $0x80] sm:$0xff] %v10084_v7  ;;  %4117 = vst [vmem:[#allocation3 + $0x88] sm:$0xff] %v10084_v7 }
 0x231   : > { %4118 = vst [vmem:[#allocation3 + $0x90] sm:$0xff] %v10084_v7  ;;  %4119 = vst [vmem:[#allocation3 + $0x98] sm:$0xff] %v10084_v7 }
 0x232   : > { %4120 = vst [vmem:[#allocation3 + $0xa0] sm:$0xff] %v10084_v7  ;;  %4121 = vst [vmem:[#allocation3 + $0xa8] sm:$0xff] %v10084_v7 }
 0x233   : > { %8735 = vmatpush3.bf16.msra.mxu0 %v9992_v1  ;;  %v3592_v1 = vld [vmem:[#allocation2 + $0x7e] sm:$0xff]  ;;  %4122 = vst [vmem:[#allocation3 + $0xb0] sm:$0xff] %v10084_v7  ;;  %4123 = vst [vmem:[#allocation3 + $0xb8] sm:$0xff] %v10084_v7 }
 0x234   : > { %8736 = vmatprep.subr.bf16.mxu0 %v9993_v9  ;;  %v3622_v4 = vpack.c.bf16 %v3592_v1, %v3591_v0  ;;  %4124 = vst [vmem:[#allocation3 + $0xc0] sm:$0xff] %v10084_v7  ;;  %4125 = vst [vmem:[#allocation3 + $0xc8] sm:$0xff] %v10084_v7 }
 0x235   : > { %4126 = vst [vmem:[#allocation3 + $0xd0] sm:$0xff] %v10084_v7  ;;  %4127 = vst [vmem:[#allocation3 + $0xd8] sm:$0xff] %v10084_v7 }
 0x236   : > { %8701 = vmatmul.mubr.bf16.gmra.mrb[8].mxu0 %v3290_v10  ;;  %v3598_v10 = vld [vmem:[#allocation2 + $0xae] sm:$0xff]  ;;  %4128 = vst [vmem:[#allocation3 + $0xe0] sm:$0xff] %v10084_v7  ;;  %4129 = vst [vmem:[#allocation3 + $0xe8] sm:$0xff] %v10084_v7 }
 0x237   : > { %8704 = vmatprep.mubr.bf16.mxu0 %v3291_v12  ;;  %8737 = vmatpush3.bf16.msra.mxu0 %v9993_v9  ;;  %v3597_v9 = vld [vmem:[#allocation2 + $0xa6] sm:$0xff]  ;;  %4130 = vst [vmem:[#allocation3 + $0xf0] sm:$0xff] %v10084_v7  ;;  %4131 = vst [vmem:[#allocation3 + $0xf8] sm:$0xff] %v10084_v7 }
 0x238   : > { %8738 = vmatprep.subr.bf16.mxu0 %v9994_v13  ;;  %v3625_v12 = vpack.c.bf16 %v3598_v10, %v3597_v9  ;;  %4132 = vst [vmem:[#allocation3 + $0x100] sm:$0xff] %v10084_v7  ;;  %4133 = vst [vmem:[#allocation3 + $0x108] sm:$0xff] %v10084_v7  ;;  %v10525_v9 = vmul.u32.u64.low 3817748708, %v231_v2  ;;  %v10526_v10 = vmul.u32.u64.high 3817748708, %v231_v2, %v10525_v9 }
 0x239   : > { %4134 = vst [vmem:[#allocation3 + $0x110] sm:$0xff] %v10084_v7  ;;  %4135 = vst [vmem:[#allocation3 + $0x118] sm:$0xff] %v10084_v7 }
 0x23a   : > { %4136 = vst [vmem:[#allocation3 + $0x120] sm:$0xff] %v10084_v7  ;;  %4137 = vst [vmem:[#allocation3 + $0x128] sm:$0xff] %v10084_v7 }
 0x23b   : > { %8739 = vmatpush3.bf16.msra.mxu0 %v9994_v13  ;;  %v3599_v13 = vld [vmem:[#allocation2 + $0xb6] sm:$0xff]  ;;  %4138 = vst [vmem:[#allocation3 + $0x130] sm:$0xff] %v10084_v7  ;;  %4139 = vst [vmem:[#allocation3 + $0x138] sm:$0xff] %v10084_v7 }
 0x23c   : > { %8740 = vmatprep.subr.bf16.mxu0 %v9995_v19  ;;  %v3626_v17 = vpack.c.bf16 %v3600_v14, %v3599_v13  ;;  %4140 = vst [vmem:[#allocation3 + $0x140] sm:$0xff] %v10084_v7 }
 0x23e   : > { %8705 = vmatmul.mubr.bf16.gmra.mrb[12].mxu0 %v3292_v20  ;;  %v3604_v20 = vld [vmem:[#allocation2 + $0xde] sm:$0xff] }
 0x23f   : > { %8708 = vmatprep.mubr.bf16.mxu0 %v3293_v21  ;;  %8741 = vmatpush3.bf16.msra.mxu0 %v9995_v19  ;;  %v3603_v19 = vld [vmem:[#allocation2 + $0xd6] sm:$0xff]  ;;  %v3605_v21 = vld [vmem:[#allocation2 + $0xe6] sm:$0xff] }
 0x240   : > { %8742 = vmatprep.subr.bf16.mxu0 %v9996_v22  ;;  %v3628_v23 = vpack.c.bf16 %v3604_v20, %v3603_v19 }
 0x243   : > { %8743 = vmatpush3.bf16.msra.mxu0 %v9996_v22  ;;  %v3606_v22 = vld [vmem:[#allocation2 + $0xee] sm:$0xff] }
 0x244   : > { %v3629_v24 = vpack.c.bf16 %v3606_v22, %v3605_v21 }
 0x246   : > { %8709 = vmatmul.mubr.bf16.gmra.mrb[16].mxu0 %v3294_v27  ;;  %v3609_v27 = vld [vmem:[#allocation2 + $0x106] sm:$0xff] }
 0x247   : > { %8712 = vmatprep.mubr.bf16.mxu0 %v3295_v28  ;;  %v3610_v28 = vld [vmem:[#allocation2 + $0x10e] sm:$0xff] }
 0x248   : > { %v3631_v30 = vpack.c.bf16 %v3610_v28, %v3609_v27  ;;  %v313_v27 = vshrl.u32 %v10526_v10, 4 }
 0x24e   : > { %8713 = vmatmul.mubr.bf16.gmra.mrb[20].mxu0 %v3296_v34  ;;  %v3613_v34 = vld [vmem:[#allocation2 + $0x126] sm:$0xff] }
 0x24f   : > { %8716 = vmatprep.mubr.bf16.mxu0 %v3297_v35  ;;  %v3614_v35 = vld [vmem:[#allocation2 + $0x12e] sm:$0xff] }
 0x250   : > { %v3633_v37 = vpack.c.bf16 %v3614_v35, %v3613_v34  ;;  %v10580_v34 = vmul.u32.u64.low 3817748708, %v10553_v25  ;;  %v10581_v35 = vmul.u32.u64.high 3817748708, %v10553_v25, %v10580_v34 }
 0x256   : > { %8717 = vmatmul.mubr.bf16.gmra.mrb[24].mxu0 %v3298_v40  ;;  %v3634_v40 = vpack.c.bf16 %v3616_v39, %v3615_v38 }
 0x257   : > { %8720 = vmatprep.mubr.bf16.mxu0 %v3299_v41  ;;  %v10001_v41 = vld [vmem:[%s12183_s3 + $0x60] sm:$0xff]  }
 0x258   : > { %8788 = vmatprep.subr.bf16.mxu1 %v10001_v41 }
 0x259   : > { %8789 = vmatpush3.bf16.msra.mxu1 %v10001_v41  ;;  %v314_v41 = vmul.u32 18, %v313_v27 }
 0x25a   : > { %8790 = vmatprep.subr.bf16.mxu1 %v10002_v42 }
 0x25d   : > { %8791 = vmatpush3.bf16.msra.mxu1 %v10002_v42 }
 0x25e   : > { %8721 = vmatmul.mubr.bf16.gmra.mrb[28].mxu0 %v3300_v45  ;;  %8792 = vmatprep.subr.bf16.mxu1 %v10003_v43  ;;  %v4247_v45 = vld [vmem:[#allocation3 + $0x1] sm:$0xff] }
 0x25f   : > { %8724 = vmatprep.mubr.bf16.mxu0 %v3301_v46  ;;  %v4248_v46 = vld [vmem:[#allocation3 + $0x9] sm:$0xff] }
 0x260   : > { %v4283_v47 = vpack.c.bf16 %v4248_v46, %v4247_v45 }
 0x261   : > { %8793 = vmatpush3.bf16.msra.mxu1 %v10003_v43 }
 0x262   : > { %8794 = vmatprep.subr.bf16.mxu1 %v10004_v44  ;;  %8796 = vmatprep.mubr.bf16.mxu1 %v4283_v47  ;;  %v10623_v47 = vadd.s32 72, %v10497_v50 }
 0x265   : > { %8795 = vmatpush3.bf16.msra.mxu1 %v10004_v44 }
 0x266   : > { %8725 = vmatmul.mubr.bf16.gmra.mrb[32].mxu0 %v3302_v51  ;;  %8832 = vmatprep.subr.bf16.mxu1 %v10494_v48  ;;  %v229_v51 = vadd.s32 16, %v10497_v50 }
 0x267   : > { %8744 = vmatprep.mubr.bf16.mxu0 %v3617_v52  ;;  %v230_v52 = vadd.s32 24, %v10497_v50 }
 0x268   : > { %v10502_v33 = vmul.u32.u64.low 3817748708, %v229_v51  ;;  %v10503_v54 = vmul.u32.u64.high 3817748708, %v229_v51, %v10502_v33 }
 0x26a   : > { %v291_v0 = vshrl.u32 %v10503_v54, 4 }
 0x26c   : > { %v292_v6 = vmul.u32 18, %v291_v0 }
 0x26e   : > { %8745 = vmatmul.mubr.bf16.vlgmr.msra.gmra.mrb[0].mxu0 %v3618_v56  ;;  %v10506_v55 = vmul.u32.u64.low 3817748708, %v10497_v50  ;;  %v10507_v56 = vmul.u32.u64.high 3817748708, %v10497_v50, %v10506_v55 }
 0x26f   : > { %8748 = vmatprep.mubr.bf16.mxu0 %v3619_v57  ;;  %v10509_v57 = vmul.u32.u64.low 3817748708, %v230_v52  ;;  %v10510_v58 = vmul.u32.u64.high 3817748708, %v230_v52, %v10509_v57  ;;  %v10647_v55 = vadd.s32 112, %v10497_v50 }
 0x270   : > { %v269_v1 = vshrl.u32 %v10507_v56, 4  ;;  %v12216_v56 = vmov 0 }
 0x271   : > { %v302_v3 = vshrl.u32 %v10510_v58, 4 }
 0x272   : > { %v270_v8 = vmul.u32 18, %v269_v1  ;;  %v10668_v1 = vadd.s32 120, %v10497_v50 }
 0x276   : > { %8749 = vmatmul.mubr.bf16.gmra.mrb[4].mxu0 %v3620_v62 }
 0x277   : > { %8752 = vmatprep.mubr.bf16.mxu0 %v3621_v63  ;;  %v10516_v62 = vmul.u32.u64.low 3817748708, %v233_v61  ;;  %v10517_v63 = vmul.u32.u64.high 3817748708, %v233_v61, %v10516_v62 }
 0x279   : > { %v335_v13 = vshrl.u32 %v10517_v63, 4  ;;  %v10662_v63 = vmul.u32.u64.low 3817748708, %v10623_v47  ;;  %v10663_v0 = vmul.u32.u64.high 3817748708, %v10623_v47, %v10662_v63 }
 0x27b   : > { %v336_v21 = vmul.u32 18, %v335_v13 }
 0x27d   : > { %v10566_v28 = vsub.s32 %v233_v61, %v336_v21  ;;  %v357_v61 = vshrl.u32 %v10581_v35, 4  ;;  %v10699_v21 = vadd.s32 128, %v10497_v50 }
 0x27e   : > { %8753 = vmatmul.mubr.bf16.gmra.mrb[8].mxu0 %v3622_v4  ;;  %v280_v4 = vshrl.u32 %v10513_v60, 4  ;;  %v10657_v60 = vadd.s32 96, %v10497_v50 }
 0x27f   : > { %8756 = vmatprep.mubr.bf16.mxu0 %v3623_v5  ;;  %v234_v5 = vadd.s32 56, %v10497_v50  ;;  %vm665_vm12 = vcmp.ne.s32.totalorder %v10566_v28, 0  ;;  %vm701_vm13 = vcmp.lt.s32.totalorder %v10566_v28, 0  ;;  %v10644_v54 = vadd.s32 18, %v10566_v28 }
 0x280   : > { %vm10649_vm14 = vmand %vm701_vm13, %vm665_vm12 }
 0x281   : > { %v10529_v14 = vmul.u32.u64.low 3817748708, %v234_v5  ;;  %v10530_v15 = vmul.u32.u64.high 3817748708, %v234_v5, %v10529_v14  ;;  %v12217_v56 = vsel %vm10649_vm14, 4294967295, %v12216_v56 }
 0x282   : > { %v358_v14 = vmul.u32 18, %v357_v61 }
 0x286   : > { %8757 = vmatmul.mubr.bf16.gmra.mrb[12].mxu0 %v3624_v11  ;;  %v303_v11 = vmul.u32 18, %v302_v3 }
 0x287   : > { %8760 = vmatprep.mubr.bf16.mxu0 %v3625_v12  ;;  %v281_v12 = vmul.u32 18, %v280_v4 }
 0x288   : > { %v10540_v19 = vsub.s32 %v230_v52, %v303_v11  ;;  %v10633_v52 = vsub.s32 %v231_v2, %v314_v41  ;;  %v10671_v2 = vadd.s32 104, %v10497_v50  ;;  %v368_v41 = vshrl.u32 %v10663_v0, 4 }
 0x289   : > { %v10542_v20 = vsub.s32 %v228_v53, %v281_v12  ;;  %v10688_v10 = vmul.u32.u64.low 3817748708, %v10657_v60  ;;  %v10689_v11 = vmul.u32.u64.high 3817748708, %v10657_v60, %v10688_v10  ;;  %v12218_v12 = vmov 0 }
 0x28a   : > { %vm662_vm4 = vcmp.ne.s32.totalorder %v10540_v19, 0  ;;  %vm698_vm5 = vcmp.lt.s32.totalorder %v10540_v19, 0  ;;  %v10606_v42 = vadd.s32 18, %v10540_v19  ;;  %vm663_vm15 = vcmp.ne.s32.totalorder %v10633_v52, 0 }
 0x28b   : > { %vm660_vm6 = vcmp.ne.s32.totalorder %v10542_v20, 0  ;;  %vm696_vm7 = vcmp.lt.s32.totalorder %v10542_v20, 0  ;;  %vm10601_vm10 = vmand %vm698_vm5, %vm662_vm4  ;;  %v10609_v43 = vadd.s32 18, %v10542_v20  ;;  %v401_v0 = vshrl.u32 %v10689_v11, 4 }
 0x28c   : > { %vm10615_vm11 = vmand %vm696_vm7, %vm660_vm6  ;;  %v12222_v11 = vmov 0 }
 0x28d   : > { %v12264_v7 = vsel %vm10615_vm11, %v10609_v43, %v10542_v20  ;;  %v12268_v20 = vmov 0 }
 0x28e   : > { %8761 = vmatmul.mubr.bf16.gmra.mrb[16].mxu0 %v3626_v17  ;;  %v10535_v17 = vsub.s32 %v229_v51, %v292_v6  ;;  %v10682_v6 = vadd.s32 144, %v10497_v50 }
 0x28f   : > { %8764 = vmatprep.mubr.bf16.mxu0 %v3627_v18  ;;  %v10538_v18 = vsub.s32 %v10497_v50, %v270_v8  ;;  %v10685_v8 = vadd.s32 18, %v10633_v52 }
 0x290   : > { %vm661_vm0 = vcmp.ne.s32.totalorder %v10535_v17, 0  ;;  %vm697_vm1 = vcmp.lt.s32.totalorder %v10535_v17, 0  ;;  %v10588_v38 = vadd.s32 18, %v10535_v17 }
 0x291   : > { %vm659_vm2 = vcmp.ne.s32.totalorder %v10538_v18, 0  ;;  %vm695_vm3 = vcmp.lt.s32.totalorder %v10538_v18, 0  ;;  %vm10575_vm8 = vmand %vm697_vm1, %vm661_vm0  ;;  %vm699_vm0 = vcmp.lt.s32.totalorder %v10633_v52, 0 }
 0x292   : > { %vm10592_vm9 = vmand %vm695_vm3, %vm659_vm2  ;;  %v805_v49 = vsel %vm10575_vm8, %v10588_v38, %v10535_v17 }
 0x293   : > { %vm10691_vm1 = vmand %vm699_vm0, %vm663_vm15 }
 0x294   : > { %v12219_v12 = vsel %vm10691_vm1, 4294967295, %v12218_v12 }
 0x296   : > { %8765 = vmatmul.mubr.bf16.gmra.mrb[20].mxu0 %v3628_v23  ;;  %v10545_v22 = vmul.u32.u64.low 3817748708, %v10533_v16  ;;  %v10546_v23 = vmul.u32.u64.high 3817748708, %v10533_v16, %v10545_v22 }
 0x297   : > { %8768 = vmatprep.mubr.bf16.mxu0 %v3629_v24  ;;  %v10549_v24 = vadd.s32 80, %v10497_v50 }
 0x298   : > { %v324_v46 = vshrl.u32 %v10546_v23, 4  ;;  %v10702_v22 = vmul.u32.u64.low 3817748708, %v10668_v1  ;;  %v10703_v23 = vmul.u32.u64.high 3817748708, %v10668_v1, %v10702_v22 }
 0x29a   : > { %v325_v58 = vmul.u32 18, %v324_v46 }
 0x29c   : > { %v10696_v13 = vsub.s32 %v10533_v16, %v325_v58  ;;  %v10715_v16 = vadd.s32 152, %v10497_v50 }
 0x29e   : > { %8769 = vmatmul.mubr.bf16.gmra.mrb[24].mxu0 %v3630_v29  ;;  %v346_v29 = vshrl.u32 %v10530_v15, 4  ;;  %vm664_vm4 = vcmp.ne.s32.totalorder %v10696_v13, 0  ;;  %vm700_vm5 = vcmp.lt.s32.totalorder %v10696_v13, 0  ;;  %v10739_v58 = vadd.s32 18, %v10696_v13 }
 0x29f   : > { %8772 = vmatprep.mubr.bf16.mxu0 %v3631_v30  ;;  %v10570_v30 = vmul.u32.u64.low 3817748708, %v10549_v24  ;;  %v10571_v31 = vmul.u32.u64.high 3817748708, %v10549_v24, %v10570_v30  ;;  %vm10779_vm13 = vmand %vm700_vm5, %vm664_vm4 }
 0x2a0   : > { %v347_v45 = vmul.u32 18, %v346_v29  ;;  %v10706_v27 = vmul.u32.u64.low 3817748708, %v10671_v2  ;;  %v10707_v29 = vmul.u32.u64.high 3817748708, %v10671_v2, %v10706_v27  ;;  %v12223_v11 = vsel %vm10779_vm13, 4294967295, %v12222_v11 }
 0x2a1   : > { %v379_v59 = vshrl.u32 %v10571_v31, 4  ;;  %v10711_v30 = vmul.u32.u64.low 3817748708, %v10682_v6  ;;  %v10712_v31 = vmul.u32.u64.high 3817748708, %v10682_v6, %v10711_v30 }
 0x2a2   : > { %v10653_v57 = vsub.s32 %v234_v5, %v347_v45  ;;  %v10678_v4 = vmul.u32.u64.low 3817748708, %v10647_v55  ;;  %v10679_v5 = vmul.u32.u64.high 3817748708, %v10647_v55, %v10678_v4  ;;  %v412_v10 = vshrl.u32 %v10707_v29, 4 }
 0x2a3   : > { %v380_v9 = vmul.u32 18, %v379_v59  ;;  %v10733_v45 = vmul.u32.u64.low 3817748708, %v10699_v21  ;;  %v10734_v46 = vmul.u32.u64.high 3817748708, %v10699_v21, %v10733_v45  ;;  %v10761_v4 = vadd.s32 176, %v10497_v50 }
 0x2a4   : > { %vm666_vm2 = vcmp.ne.s32.totalorder %v10653_v57, 0  ;;  %vm702_vm3 = vcmp.lt.s32.totalorder %v10653_v57, 0  ;;  %v10723_v35 = vadd.s32 18, %v10653_v57  ;;  %v12228_v45 = vmov 0 }
 0x2a5   : > { %vm10767_vm15 = vmand %vm702_vm3, %vm666_vm2 }
 0x2a6   : > { %8773 = vmatmul.mubr.bf16.gmra.mrb[28].mxu0 %v3632_v36 }
 0x2a7   : > { %8776 = vmatprep.mubr.bf16.mxu0 %v3633_v37  ;;  %v10584_v36 = vmul.u32.u64.low 3817748708, %v10556_v26  ;;  %v10585_v37 = vmul.u32.u64.high 3817748708, %v10556_v26, %v10584_v36 }
 0x2a8   : > { %v10726_v36 = vsub.s32 %v10549_v24, %v380_v9  ;;  %v423_v24 = vshrl.u32 %v10679_v5, 4  ;;  %v12220_v5 = vmov 0  ;;  %v434_v9 = vshrl.u32 %v10703_v23, 4 }
 0x2a9   : > { %v390_v62 = vshrl.u32 %v10585_v37, 4  ;;  %v10729_v37 = vsub.s32 %v10553_v25, %v358_v14  ;;  %v10746_v25 = vmul.u32.u64.low 3817748708, %v10715_v16  ;;  %v10747_v61 = vmul.u32.u64.high 3817748708, %v10715_v16, %v10746_v25 }
 0x2aa   : > { %vm669_vm6 = vcmp.ne.s32.totalorder %v10726_v36, 0  ;;  %v10755_v63 = vadd.s32 18, %v10726_v36  ;;  %v12221_v5 = vsel %vm10767_vm15, 4294967295, %v12220_v5  ;;  %v424_v14 = vmul.u32 18, %v423_v24 }
 0x2ab   : > { %v391_v15 = vmul.u32 18, %v390_v62  ;;  %v10750_v62 = vadd.s32 136, %v10497_v50  ;;  %vm667_vm12 = vcmp.ne.s32.totalorder %v10729_v37, 0  ;;  %vm12224_vm2 = vcmp.lt.s32.totalorder %v10726_v36, 0 }
 0x2ac   : > { %vm10792_vm3 = vmand %vm12224_vm2, %vm669_vm6  ;;  %v12225_v23 = vmov 0  ;;  %v10797_v29 = vadd.s32 18, %v10729_v37  ;;  %vm12227_vm4 = vcmp.lt.s32.totalorder %v10729_v37, 0  ;;  %v445_v25 = vshrl.u32 %v10734_v46, 4 }
 0x2ad   : > { %v10742_v59 = vsub.s32 %v10556_v26, %v391_v15  ;;  %v369_v26 = vmul.u32 18, %v368_v41  ;;  %v467_v15 = vshrl.u32 %v10712_v31, 4  ;;  %v12226_v23 = vsel %vm10792_vm3, 4294967295, %v12225_v23  ;;  %vm10809_vm5 = vmand %vm12227_vm4, %vm667_vm12 }
 0x2ae   : > { %8777 = vmatmul.mubr.bf16.gmra.mrb[32].mxu0 %v3634_v40  ;;  %v10597_v40 = vadd.s32 18, %v10538_v18  ;;  %v10785_v22 = vmul.u32.u64.low 3817748708, %v10750_v62  ;;  %v10786_v27 = vmul.u32.u64.high 3817748708, %v10750_v62, %v10785_v22  ;;  %v402_v41 = vmul.u32 18, %v401_v0 }
 0x2af   : > { %vm670_vm0 = vcmp.ne.s32.totalorder %v10742_v59, 0  ;;  %vm706_vm7 = vcmp.lt.s32.totalorder %v10742_v59, 0  ;;  %v10800_v30 = vadd.s32 18, %v10742_v59  ;;  %v10803_v31 = vadd.s32 160, %v10497_v50 }
 0x2b0   : > { %v12229_v45 = vsel %vm10809_vm5, 4294967295, %v12228_v45  ;;  %v10814_v24 = vsub.s32 %v10623_v47, %v369_v26  ;;  %v10818_v22 = vmul.u32.u64.low 3817748708, %v10761_v4  ;;  %v10819_v34 = vmul.u32.u64.high 3817748708, %v10761_v4, %v10818_v22  ;;  %vm10833_vm6 = vmand %vm706_vm7, %vm670_vm0 }
 0x2b1   : > { %v12230_v47 = vmov 0  ;;  %v435_v46 = vmul.u32 18, %v434_v9  ;;  %v413_v26 = vmul.u32 18, %v412_v10  ;;  %v10842_v0 = vsub.s32 %v10647_v55, %v424_v14 }
 0x2b2   : > { %v12231_v47 = vsel %vm10833_vm6, 4294967295, %v12230_v47  ;;  %v468_v33 = vmul.u32 18, %v467_v15  ;;  %v478_v3 = vshrl.u32 %v10747_v61, 4  ;;  %v10850_v51 = vsub.s32 %v10657_v60, %v402_v41 }
 0x2b3   : > { %12232 = vst [vmem:[#allocation5_spill] sm:$0xff] %v10842_v0  ;;  %v10853_v9 = vmul.u32.u64.low 3817748708, %v10803_v31  ;;  %v10854_v10 = vmul.u32.u64.high 3817748708, %v10803_v31, %v10853_v9  ;;  %vm668_vm7 = vcmp.ne.s32.totalorder %v10814_v24, 0  ;;  %v446_v61 = vmul.u32 18, %v445_v25 }
 0x2b4   : > { %v10862_v14 = vadd.s32 184, %v10497_v50  ;;  %v10866_v60 = vadd.s32 18, %v10814_v24  ;;  %v10869_v15 = vsub.s32 %v10668_v1, %v435_v46  ;;  %v10872_v41 = vsub.s32 %v10671_v2, %v413_v26 }
 0x2b5   : > { %v10876_v9 = vsub.s32 %v10682_v6, %v468_v33  ;;  %v479_v25 = vmul.u32 18, %v478_v3  ;;  %v456_v55 = vshrl.u32 %v10786_v27, 4  ;;  %vm709_vm2 = vcmp.lt.s32.totalorder %v10842_v0, 0 }
 0x2b6   : > { %v10883_v1 = vadd.s32 168, %v10497_v50  ;;  %v10886_v2 = vsub.s32 %v10699_v21, %v446_v61  ;;  %v511_v46 = vshrl.u32 %v10819_v34, 4  ;;  %vm12235_vm0 = vcmp.lt.s32.totalorder %v10814_v24, 0 }
 0x2b7   : > { %12233 = vst [vmem:[#allocation6_spill] sm:$0xff] %v10876_v9  ;;  %v10890_v33 = vmul.u32.u64.low 3817748708, %v10862_v14  ;;  %v10891_v6 = vmul.u32.u64.high 3817748708, %v10862_v14, %v10890_v33  ;;  %vm10897_vm6 = vmand %vm12235_vm0, %vm668_vm7  ;;  %v10902_v27 = vadd.s32 18, %v10842_v0  ;;  %vm674_vm12 = vcmp.ne.s32.totalorder %v10869_v15, 0 }
 0x2b8   : > { %12234 = vst [vmem:[#allocation7_spill] sm:$0xff] %v10886_v2  ;;  %vm710_vm4 = vcmp.lt.s32.totalorder %v10869_v15, 0  ;;  %vm672_vm5 = vcmp.ne.s32.totalorder %v10872_v41, 0  ;;  %vm12239_vm3 = vcmp.ne.s32.totalorder %v10842_v0, 0  ;;  %vm708_vm7 = vcmp.lt.s32.totalorder %v10872_v41, 0 }
 0x2b9   : > { %12238 = vst [vmem:[#allocation8_spill] sm:$0xff] %v10902_v27  ;;  %vm10909_vm13 = vmand %vm709_vm2, %vm12239_vm3  ;;  %vm677_vm0 = vcmp.ne.s32.totalorder %v10876_v9, 0  ;;  %v10916_v34 = vsub.s32 %v10715_v16, %v479_v25  ;;  %v457_v26 = vmul.u32 18, %v456_v55  ;;  %vm12242_vm15 = vcmp.ne.s32.totalorder %v10850_v51, 0 }
 0x2ba   : > { %vm12243_vm1 = vcmp.lt.s32.totalorder %v10850_v51, 0  ;;  %v489_v33 = vshrl.u32 %v10854_v10, 4  ;;  %v10929_v53 = vmul.u32.u64.low 3817748708, %v10883_v1  ;;  %v10930_v22 = vmul.u32.u64.high 3817748708, %v10883_v1, %v10929_v53 }
 0x2bb   : > { %vm10922_vm14 = vmand %vm12243_vm1, %vm12242_vm15  ;;  %vm10937_vm2 = vcmp.lt.s32.totalorder %v805_v49, 16  ;;  %v12248_v55 = vmov 0  ;;  %vm675_vm15 = vcmp.ne.s32.totalorder %v10886_v2, 0  ;;  %v512_v10 = vmul.u32 18, %v511_v46 }
 0x2bc   : > { %vm10941_vm1 = vmand %vm710_vm4, %vm674_vm12  ;;  %v10948_v53 = vadd.s32 208, %v10497_v50  ;;  %v12250_v17 = vsel %vm10592_vm9, %v10597_v40, %v10538_v18  ;;  %v10960_v38 = vadd.s32 18, %v10850_v51  ;;  %v10963_v49 = vadd.s32 18, %v10869_v15 }
 0x2bd   : > { %v12249_v55 = vsel %vm10941_vm1, 4294967295, %v12248_v55  ;;  %vm10955_vm8 = vcmp.lt.s32.totalorder %v12250_v17, 16  ;;  %vm10969_vm12 = vmand %vm708_vm7, %vm672_vm5  ;;  %v12253_v25 = vmov 0  ;;  %v10974_v18 = vadd.s32 18, %v10872_v41 }
 0x2be   : > { %v12254_v25 = vsel %vm10969_vm12, 4294967295, %v12253_v25  ;;  %v10977_v39 = vadd.s32 18, %v10876_v9  ;;  %v12256_v40 = vsel %vm10601_vm10, %v10606_v42, %v10540_v19  ;;  %vm12259_vm5 = vcmp.lt.s32.totalorder %v10876_v9, 0 }
 0x2bf   : > { %vm10984_vm9 = vcmp.lt.s32.totalorder %v12256_v40, 16  ;;  %vm10992_vm4 = vmand %vm12259_vm5, %vm677_vm0  ;;  %v12260_v17 = vmov 0  ;;  %v10997_v48 = vadd.s32 18, %v10886_v2  ;;  %vm678_vm7 = vcmp.ne.s32.totalorder %v10916_v34, 0 }
 0x2c0   : > { %12255 = vst [vmem:[#allocation9_spill] sm:$0xff] %v10977_v39  ;;  %v12261_v17 = vsel %vm10992_vm4, 4294967295, %v12260_v17  ;;  %vm714_vm3 = vcmp.lt.s32.totalorder %v10916_v34, 0  ;;  %v11002_v19 = vsub.s32 %v10750_v62, %v457_v26  ;;  %vm11009_vm10 = vcmp.lt.s32.totalorder %v12264_v7, 16  ;;  %v11035_v26 = vld [vmem:[%s12182_s2] ss:$0 sm:$0xff] }
 0x2c1   : > { %12262 = vst [vmem:[#allocation10_spill] sm:$0xff] %v12261_v17  ;;  %12263 = vst [vmem:[#allocation11_spill] sm:$0xff] %v10997_v48  ;;  %vm12267_vm0 = vcmp.lt.s32.totalorder %v10886_v2, 0  ;;  %v11030_v43 = vadd.s32 18, %v10916_v34  ;;  %v490_v44 = vmul.u32 18, %v489_v33  ;;  %v11038_v7 = vsub.s32 %v10761_v4, %v512_v10 }
 0x2c2   : > { %vm11025_vm5 = vmand %vm12267_vm0, %vm675_vm15  ;;  %v522_v62 = vshrl.u32 %v10891_v6, 4  ;;  %v11042_v40 = vmul.u32.u64.low 3817748708, %v10948_v53  ;;  %v11043_v0 = vmul.u32.u64.high 3817748708, %v10948_v53, %v11042_v40  ;;  %v11076_v6 = vadd.s32 192, %v10497_v50 }
 0x2c3   : > { %v12269_v20 = vsel %vm11025_vm5, 4294967295, %v12268_v20  ;;  %vm11065_vm11 = vmand %vm714_vm3, %vm678_vm7  ;;  %v11080_v9 = vadd.s32 18, %v11002_v19  ;;  %v11083_v39 = vsub.s32 %v10803_v31, %v490_v44  ;;  %v500_v17 = vshrl.u32 %v10930_v22, 4 }
 0x2c4   : > { %12270 = vst [vmem:[#allocation12_spill] sm:$0xff] %v12269_v20  ;;  %vm12273_vm3 = vnez %v12217_v56  ;;  %v822_v31 = vsel %vm11065_vm11, %v11030_v43, %v10916_v34  ;;  %v523_v22 = vmul.u32 18, %v522_v62  ;;  %vm12277_vm15 = vnez %v12219_v12 }
 0x2c5   : > { %v12274_v48 = vsel %vm12273_vm3, %v10644_v54, %v10566_v28  ;;  %v11113_v54 = vadd.s32 216, %v10497_v50  ;;  %vm12281_vm0 = vnez %v12221_v5  ;;  %vm12290_vm4 = vcmp.lt.s32.totalorder %v11002_v19, 0 }
 0x2c6   : > { %vm11092_vm7 = vcmp.lt.s32.totalorder %v12274_v48, 16  ;;  %v12278_v48 = vsel %vm12277_vm15, %v10685_v8, %v10633_v52  ;;  %v12282_v12 = vsel %vm12281_vm0, %v10723_v35, %v10653_v57  ;;  %vm12285_vm15 = vnez %v12223_v11 }
 0x2c7   : > { %vm11107_vm3 = vcmp.lt.s32.totalorder %v12278_v48, 16  ;;  %vm11121_vm11 = vcmp.lt.s32.totalorder %v12282_v12, 16  ;;  %v11126_v52 = vmul.u32.u64.low 3817748708, %v11076_v6  ;;  %v11127_v8 = vmul.u32.u64.high 3817748708, %v11076_v6, %v11126_v52 }
 0x2c8   : > { %v12286_v5 = vsel %vm12285_vm15, %v10739_v58, %v10696_v13  ;;  %vm12289_vm0 = vcmp.ne.s32.totalorder %v11002_v19, 0  ;;  %v11149_v35 = vadd.s32 18, %v11038_v7  ;;  %v501_v16 = vmul.u32 18, %v500_v17 }
 0x2c9   : > { %vm11136_vm5 = vcmp.lt.s32.totalorder %v12286_v5, 16  ;;  %vm11144_vm12 = vmand %vm12290_vm4, %vm12289_vm0  ;;  %vm12294_vm15 = vcmp.lt.s32.totalorder %v11038_v7, 0  ;;  %vm12297_vm4 = vnez %v12226_v23  ;;  %v11260_v3 = vadd.s32 224, %v10497_v50 }
 0x2ca   : > { %v11191_v52 = vsub.s32 %v10883_v1, %v501_v16  ;;  %v12298_v5 = vsel %vm12297_vm4, %v10755_v63, %v10726_v36  ;;  %vm12305_vm4 = vnez %v12231_v47  ;;  %v12309_v47 = vsel %vm10897_vm6, %v10866_v60, %v10814_v24 }
 0x2cb   : > { %v12320_v21 = vsel %vm10922_vm14, %v10960_v38, %v10850_v51 }
 0x341   : > { %v8746_v40 = vpop.f32.mrb[0].mxu0 }
 0x342   : > { %v3922_v4 = vadd.f32 %v8746_v40, %v11035_v26  ;;  %v3734_v27 = vpop.f32.mrb[1].mxu0 }
 0x343   : > { %v3920_v33 = vadd.f32 %v11035_v26, %v3734_v27  ;;  %v8747_v2 = vpop.f32.mrb[2].mxu0 }
 0x344   : > { %v3958_v44 = vmax.f32 %v3922_v4, 0.0  ;;  %v3923_v27 = vadd.f32 %v8747_v2, %v11035_v26  ;;  %v3737_v40 = vpop.f32.mrb[3].mxu0 }
 0x345   : > { %v3956_v56 = vmax.f32 %v3920_v33, 0.0  ;;  %v3921_v62 = vadd.f32 %v11035_v26, %v3737_v40  ;;  %v11168_v32 = vmul.u32.u64.low 3817748708, %v11113_v54  ;;  %v11169_v40 = vmul.u32.u64.high 3817748708, %v11113_v54, %v11168_v32 }
 0x346   : > { %v4066_v4 = vsel %vm10937_vm2, %v3958_v44, 0.0  ;;  %v3959_v48 = vmax.f32 %v3923_v27, 0.0  ;;  %vm12293_vm2 = vcmp.ne.s32.totalorder %v11038_v7, 0  ;;  %v11162_v44 = vsub.s32 %v10862_v14, %v523_v22 }
 0x347   : > { %4143 = vst [vmem:[#allocation3 + $0x23] sm:$0xff] %v4066_v4  ;;  %v4064_v13 = vsel %vm10955_vm8, %v3956_v56, 0.0  ;;  %v3957_v58 = vmax.f32 %v3921_v62, 0.0  ;;  %vm11157_vm1 = vmand %vm12294_vm15, %vm12293_vm2  ;;  %v555_v27 = vshrl.u32 %v11043_v0, 4  ;;  %v11172_v56 = vadd.s32 200, %v10497_v50 }
 0x348   : > { %4141 = vst [vmem:[#allocation3 + $0x13] sm:$0xff] %v4064_v13  ;;  %v4067_v17 = vsel %vm10984_vm9, %v3959_v48, 0.0  ;;  %v820_v0 = vsel %vm11144_vm12, %v11080_v9, %v11002_v19  ;;  %vm679_vm8 = vcmp.ne.s32.totalorder %v11083_v39, 0  ;;  %v825_v42 = vsel %vm11157_vm1, %v11149_v35, %v11038_v7  ;;  %v10009_v9 = vld [vmem:[%s12183_s3 + $0x20] sm:$0xff]  }
 0x349   : > { %4144 = vst [vmem:[#allocation3 + $0x2b] sm:$0xff] %v4067_v17  ;;  %v4065_v62 = vsel %vm11009_vm10, %v3957_v58, 0.0  ;;  %v8750_v12 = vpop.f32.mrb[4].mxu0  ;;  %v11188_v22 = vadd.s32 18, %v11083_v39  ;;  %vm11199_vm10 = vcmp.lt.s32.totalorder %v12298_v5, 16  ;;  %v556_v58 = vmul.u32 18, %v555_v27 }
 0x34a   : > { %4142 = vst [vmem:[#allocation3 + $0x1b] sm:$0xff] %v4065_v62  ;;  %v3926_v14 = vadd.f32 %v8750_v12, %v11035_v26  ;;  %v3750_v46 = vpop.f32.mrb[5].mxu0  ;;  %v11205_v17 = vadd.s32 240, %v10497_v50  ;;  %vm12301_vm2 = vnez %v12229_v45  ;;  %vm11240_vm9 = vcmp.lt.s32.totalorder %v12309_v47, 16 }
 0x34b   : > { %v3924_v4 = vadd.f32 %v11035_v26, %v3750_v46  ;;  %v8751_v48 = vpop.f32.mrb[6].mxu0  ;;  %v12302_v23 = vsel %vm12301_vm2, %v10797_v29, %v10729_v37  ;;  %v11218_v63 = vmul.u32.u64.low 3817748708, %v11172_v56  ;;  %v11219_v62 = vmul.u32.u64.high 3817748708, %v11172_v56, %v11218_v63 }
 0x34c   : > { %v3962_v1 = vmax.f32 %v3926_v14, 0.0  ;;  %v3927_v16 = vadd.f32 %v8751_v48, %v11035_v26  ;;  %v3753_v32 = vpop.f32.mrb[7].mxu0  ;;  %vm11213_vm15 = vcmp.lt.s32.totalorder %v12302_v23, 16  ;;  %v12306_v14 = vsel %vm12305_vm4, %v10800_v30, %v10742_v59 }
 0x34d   : > { %v3960_v27 = vmax.f32 %v3924_v4, 0.0  ;;  %v3925_v12 = vadd.f32 %v11035_v26, %v3753_v32  ;;  %vm11227_vm0 = vcmp.lt.s32.totalorder %v12306_v14, 16  ;;  %v533_v37 = vshrl.u32 %v11127_v8, 4 }
 0x34e   : > { %v4070_v29 = vsel %vm11092_vm7, %v3962_v1, 0.0  ;;  %v3963_v46 = vmax.f32 %v3927_v16, 0.0  ;;  %vm12312_vm4 = vcmp.lt.s32.totalorder %v11083_v39, 0  ;;  %v11253_v30 = vadd.s32 18, %v11162_v44 }
 0x34f   : > { %vm11248_vm2 = vmand %vm12312_vm4, %vm679_vm8  ;;  %4147 = vst [vmem:[#allocation3 + $0x43] sm:$0xff] %v4070_v29  ;;  %v4068_v24 = vsel %vm11107_vm3, %v3960_v27, 0.0  ;;  %v3961_v60 = vmax.f32 %v3925_v12, 0.0  ;;  %v566_v48 = vshrl.u32 %v11169_v40, 4  ;;  %v4249_v32 = vld [vmem:[#allocation3 + $0x11] sm:$0xff]  ;;  %v11276_v27 = vsub.s32 %v10948_v53, %v556_v58  ;;  %v12315_v53 = vld [vmem:[#allocation8_spill] sm:$0xff] }
 0x350   : > { %4145 = vst [vmem:[#allocation3 + $0x33] sm:$0xff] %v4068_v24  ;;  %v4071_v20 = vsel %vm11121_vm11, %v3963_v46, 0.0  ;;  %v4252_v8 = vld [vmem:[#allocation3 + $0x29] sm:$0xff]  ;;  %v11266_v5 = vmul.u32.u64.low 3817748708, %v11205_v17  ;;  %v11267_v1 = vmul.u32.u64.high 3817748708, %v11205_v17, %v11266_v5  ;;  %v823_v2 = vsel %vm11248_vm2, %v11188_v22, %v11083_v39  ;;  %v10006_v46 = vld [vmem:[%s12183_s3 + $0x8] sm:$0xff]  }
 0x351   : > { %4148 = vst [vmem:[#allocation3 + $0x4b] sm:$0xff] %v4071_v20  ;;  %v4069_v28 = vsel %vm11136_vm5, %v3961_v60, 0.0  ;;  %v8754_v16 = vpop.f32.mrb[8].mxu0  ;;  %v4250_v23 = vld [vmem:[#allocation3 + $0x19] sm:$0xff]  ;;  %v4251_v63 = vld [vmem:[#allocation3 + $0x21] sm:$0xff]  ;;  %v534_v40 = vmul.u32 18, %v533_v37  ;;  %vm12324_vm11 = vnez %v12249_v55 }
 0x352   : > { %4146 = vst [vmem:[#allocation3 + $0x3b] sm:$0xff] %v4069_v28  ;;  %v3930_v12 = vadd.f32 %v8754_v16, %v11035_v26  ;;  %v3766_v14 = vpop.f32.mrb[9].mxu0  ;;  %v4284_v29 = vpack.c.bf16 %v4250_v23, %v4249_v32  ;;  %v4285_v33 = vpack.c.bf16 %v4252_v8, %v4251_v63  ;;  %v11283_v47 = vadd.s32 248, %v10497_v50  ;;  %v12316_v58 = vld [vmem:[#allocation5_spill] sm:$0xff] }
 0x353   : > { %v3928_v24 = vadd.f32 %v11035_v26, %v3766_v14  ;;  %v8755_v60 = vpop.f32.mrb[10].mxu0  ;;  %v12317_v37 = vsel %vm10909_vm13, %v12315_v53, %v12316_v58  ;;  %v11296_v8 = vadd.s32 18, %v11191_v52  ;;  %vm11308_vm13 = vcmp.lt.s32.totalorder %v12320_v21, 16 }
 0x354   : > { %vm11291_vm5 = vcmp.lt.s32.totalorder %v12317_v37, 16  ;;  %v11299_v5 = vmul.u32.u64.low 3817748708, %v11260_v3  ;;  %v11300_v28 = vmul.u32.u64.high 3817748708, %v11260_v3, %v11299_v5  ;;  %v3966_v16 = vmax.f32 %v3930_v12, 0.0  ;;  %v3769_v23 = vpop.f32.mrb[11].mxu0  ;;  %8797 = vmatmul.mubr.bf16.vlgmr.msra.gmra.mrb[0].mxu1 %v4284_v29  ;;  %v12323_v12 = vld [vmem:[#allocation4_spill] sm:$0xff] }
 0x355   : > { %v3931_v32 = vadd.f32 %v8755_v60, %v11035_v26  ;;  %v567_v14 = vmul.u32 18, %v566_v48  ;;  %v544_v53 = vshrl.u32 %v11219_v62, 4  ;;  %v3964_v58 = vmax.f32 %v3928_v24, 0.0  ;;  %8800 = vmatprep.mubr.bf16.mxu1 %v4285_v33  ;;  %8833 = vmatpush3.bf16.msra.mxu1 %v12323_v12  ;;  %v10007_v29 = vld [vmem:[%s12183_s3 + $0x10] sm:$0xff]  }
 0x356   : > { %v3929_v37 = vadd.f32 %v11035_v26, %v3769_v23  ;;  %v12325_v61 = vsel %vm12324_vm11, %v10963_v49, %v10869_v15  ;;  %vm12328_vm14 = vcmp.ne.s32.totalorder %v11162_v44, 0  ;;  %vm12329_vm8 = vcmp.lt.s32.totalorder %v11162_v44, 0  ;;  %8834 = vmatprep.subr.bf16.mxu1 %v10006_v46 }
 0x357   : > { %vm11320_vm3 = vcmp.lt.s32.totalorder %v12325_v61, 16  ;;  %vm11328_vm4 = vmand %vm12329_vm8, %vm12328_vm14  ;;  %vm685_vm6 = vcmp.ne.s32.totalorder %v11276_v27, 0  ;;  %v11334_v62 = vsub.s32 %v11076_v6, %v534_v40  ;;  %v4074_v15 = vsel %vm11199_vm10, %v3966_v16, 0.0  ;;  %v4253_v23 = vld [vmem:[#allocation3 + $0x31] sm:$0xff] }
 0x358   : > { %v3967_v55 = vmax.f32 %v3931_v32, 0.0  ;;  %vm12332_vm11 = vnez %v12254_v25  ;;  %vm12336_vm14 = vcmp.ne.s32.totalorder %v11191_v52, 0  ;;  %vm12337_vm8 = vcmp.lt.s32.totalorder %v11191_v52, 0  ;;  %4151 = vst [vmem:[#allocation3 + $0x63] sm:$0xff] %v4074_v15  ;;  %v4256_v24 = vld [vmem:[#allocation3 + $0x49] sm:$0xff] }
 0x359   : > { %v12333_v49 = vsel %vm12332_vm11, %v10974_v18, %v10872_v41  ;;  %vm11354_vm10 = vmand %vm12337_vm8, %vm12336_vm14  ;;  %v11359_v25 = vmul.u32.u64.low 3817748708, %v11283_v47  ;;  %v11360_v41 = vmul.u32.u64.high 3817748708, %v11283_v47, %v11359_v25  ;;  %v4072_v18 = vsel %vm11213_vm15, %v3964_v58, 0.0  ;;  %v8758_v32 = vpop.f32.mrb[12].mxu0  ;;  %v4254_v21 = vld [vmem:[#allocation3 + $0x39] sm:$0xff]  ;;  %v4255_v58 = vld [vmem:[#allocation3 + $0x41] sm:$0xff]  ;;  %8835 = vmatpush3.bf16.msra.mxu1 %v10006_v46 }
 0x35a   : > { %vm11343_vm7 = vcmp.lt.s32.totalorder %v12333_v49, 16  ;;  %v3965_v13 = vmax.f32 %v3929_v37, 0.0  ;;  %v11366_v40 = vadd.s32 232, %v10497_v50  ;;  %4149 = vst [vmem:[#allocation3 + $0x53] sm:$0xff] %v4072_v18  ;;  %v4075_v33 = vsel %vm11227_vm0, %v3967_v55, 0.0  ;;  %8836 = vmatprep.subr.bf16.mxu1 %v10007_v29  ;;  %v10008_v46 = vld [vmem:[%s12183_s3 + $0x18] sm:$0xff]  }
 0x35b   : > { %v11371_v60 = vadd.s32 18, %v11276_v27  ;;  %v11374_v5 = vsub.s32 %v11113_v54, %v567_v14  ;;  %v545_v16 = vmul.u32 18, %v544_v53  ;;  %4152 = vst [vmem:[#allocation3 + $0x6b] sm:$0xff] %v4075_v33  ;;  %v826_v45 = vsel %vm11328_vm4, %v11253_v30, %v11162_v44  ;;  %v3782_v53 = vpop.f32.mrb[13].mxu0  ;;  %v12340_v55 = vld [vmem:[#allocation10_spill] sm:$0xff]  ;;  %v12342_v49 = vld [vmem:[#allocation9_spill] sm:$0xff] }
 0x35c   : > { %v4073_v36 = vsel %vm11240_vm9, %v3965_v13, 0.0  ;;  %v824_v54 = vsel %vm11354_vm10, %v11296_v8, %v11191_v52  ;;  %v599_v14 = vshrl.u32 %v11267_v1, 4  ;;  %v3934_v4 = vadd.f32 %v8758_v32, %v11035_v26  ;;  %v8759_v15 = vpop.f32.mrb[14].mxu0  ;;  %v12343_v25 = vld [vmem:[#allocation6_spill] sm:$0xff]  ;;  %v10011_v52 = vld [vmem:[%s12183_s3 + $0x30] sm:$0xff]  }
 0x35d   : > { %4150 = vst [vmem:[#allocation3 + $0x5b] sm:$0xff] %v4073_v36  ;;  %v4286_v37 = vpack.c.bf16 %v4254_v21, %v4253_v23  ;;  %v4287_v12 = vpack.c.bf16 %v4256_v24, %v4255_v58  ;;  %v11394_v61 = vadd.s32 18, %v11334_v62  ;;  %v3932_v1 = vadd.f32 %v11035_v26, %v3782_v53  ;;  %v3785_v21 = vpop.f32.mrb[15].mxu0  ;;  %v12347_v58 = vld [vmem:[#allocation12_spill] sm:$0xff]  ;;  %v12349_v53 = vld [vmem:[#allocation11_spill] sm:$0xff]  ;;  %8837 = vmatpush3.bf16.msra.mxu1 %v10007_v29 }
 0x35e   : > { %vm12341_vm15 = vnez %v12340_v55  ;;  %v577_v33 = vshrl.u32 %v11300_v28, 4  ;;  %v11408_v24 = vmul.u32.u64.low 3817748708, %v11366_v40  ;;  %v11409_v36 = vmul.u32.u64.high 3817748708, %v11366_v40, %v11408_v24  ;;  %v12350_v55 = vld [vmem:[#allocation7_spill] sm:$0xff]  ;;  %8838 = vmatprep.subr.bf16.mxu1 %v10008_v46 }
 0x35f   : > { %v12344_v18 = vsel %vm12341_vm15, %v12342_v49, %v12343_v25  ;;  %v3970_v32 = vmax.f32 %v3934_v4, 0.0  ;;  %v3935_v23 = vadd.f32 %v8759_v15, %v11035_v26  ;;  %8801 = vmatmul.mubr.bf16.gmra.mrb[4].mxu1 %v4286_v37  ;;  %vm12348_vm8 = vnez %v12347_v58 }
 0x360   : > { %vm11402_vm14 = vcmp.lt.s32.totalorder %v12344_v18, 16  ;;  %v12351_v49 = vsel %vm12348_vm8, %v12349_v53, %v12350_v55  ;;  %v11423_v28 = vadd.s32 272, %v10497_v50  ;;  %v3968_v18 = vmax.f32 %v3932_v1, 0.0  ;;  %8804 = vmatprep.mubr.bf16.mxu1 %v4287_v12 }
 0x361   : > { %vm11417_vm15 = vcmp.lt.s32.totalorder %v12351_v49, 16  ;;  %v3933_v4 = vadd.f32 %v11035_v26, %v3785_v21  ;;  %vm11431_vm11 = vcmp.lt.s32.totalorder %v822_v31, 16  ;;  %v11436_v15 = vsub.s32 %v11172_v56, %v545_v16  ;;  %v8762_v12 = vpop.f32.mrb[16].mxu0  ;;  %8839 = vmatpush3.bf16.msra.mxu1 %v10008_v46  ;;  %v10010_v46 = vld [vmem:[%s12183_s3 + $0x28] sm:$0xff]  }
 0x362   : > { %v600_v24 = vmul.u32 18, %v599_v14  ;;  %v4078_v1 = vsel %vm11291_vm5, %v3970_v32, 0.0  ;;  %v3971_v58 = vmax.f32 %v3935_v23, 0.0  ;;  %vm11445_vm8 = vcmp.lt.s32.totalorder %v820_v0, 16  ;;  %v4260_v20 = vld [vmem:[#allocation3 + $0x69] sm:$0xff]  ;;  %v3798_v48 = vpop.f32.mrb[17].mxu0  ;;  %8840 = vmatprep.subr.bf16.mxu1 %v10009_v9 }
 0x363   : > { %vm12359_vm9 = vcmp.lt.s32.totalorder %v11276_v27, 0  ;;  %vm722_vm5 = vcmp.lt.s32.totalorder %v11374_v5, 0  ;;  %v11459_v10 = vadd.s32 18, %v11374_v5  ;;  %4155 = vst [vmem:[#allocation3 + $0x83] sm:$0xff] %v4078_v1  ;;  %v4076_v19 = vsel %vm11308_vm13, %v3968_v18, 0.0  ;;  %v8763_v18 = vpop.f32.mrb[18].mxu0 }
 0x364   : > { %vm11453_vm0 = vmand %vm12359_vm9, %vm685_vm6  ;;  %v3969_v31 = vmax.f32 %v3933_v4, 0.0  ;;  %v578_v57 = vmul.u32 18, %v577_v33  ;;  %v610_v56 = vshrl.u32 %v11360_v41, 4  ;;  %4153 = vst [vmem:[#allocation3 + $0x73] sm:$0xff] %v4076_v19  ;;  %v4079_v0 = vsel %vm11320_vm3, %v3971_v58, 0.0  ;;  %v4257_v33 = vld [vmem:[#allocation3 + $0x51] sm:$0xff] }
 0x365   : > { %v11470_v29 = vmul.u32.u64.low 3817748708, %v11423_v28  ;;  %v11471_v16 = vmul.u32.u64.high 3817748708, %v11423_v28, %v11470_v29  ;;  %v11474_v14 = vadd.s32 256, %v10497_v50  ;;  %4156 = vst [vmem:[#allocation3 + $0x8b] sm:$0xff] %v4079_v0  ;;  %v4258_v32 = vld [vmem:[#allocation3 + $0x59] sm:$0xff]  ;;  %v4259_v41 = vld [vmem:[#allocation3 + $0x61] sm:$0xff]  ;;  %v829_v51 = vsel %vm11453_vm0, %v11371_v60, %v11276_v27  ;;  %8841 = vmatpush3.bf16.msra.mxu1 %v10009_v9 }
 0x366   : > { %v4077_v63 = vsel %vm11343_vm7, %v3969_v31, 0.0  ;;  %vm684_vm12 = vcmp.ne.s32.totalorder %v11436_v15, 0  ;;  %v11484_v23 = vsub.s32 %v11205_v17, %v600_v24  ;;  %v3938_v21 = vadd.f32 %v8762_v12, %v11035_v26  ;;  %v3801_v11 = vpop.f32.mrb[19].mxu0  ;;  %8842 = vmatprep.subr.bf16.mxu1 %v10010_v46  ;;  %v11658_v17 = vld [vmem:[%s12183_s3 + $0x80] sm:$0xff]  }
 0x367   : > { %4154 = vst [vmem:[#allocation3 + $0x7b] sm:$0xff] %v4077_v63  ;;  %v4288_v53 = vpack.c.bf16 %v4258_v32, %v4257_v33  ;;  %v4289_v55 = vpack.c.bf16 %v4260_v20, %v4259_v41  ;;  %v3936_v49 = vadd.f32 %v11035_v26, %v3798_v48  ;;  %vm11497_vm6 = vcmp.lt.s32.totalorder %v825_v42, 16 }
 0x368   : > { %v11502_v4 = vadd.s32 18, %v11436_v15  ;;  %v11505_v24 = vsub.s32 %v11260_v3, %v578_v57  ;;  %v11508_v1 = vadd.s32 280, %v10497_v50  ;;  %v3974_v58 = vmax.f32 %v3938_v21, 0.0 }
 0x369   : > { %v3939_v19 = vadd.f32 %v8763_v18, %v11035_v26  ;;  %8805 = vmatmul.mubr.bf16.gmra.mrb[8].mxu1 %v4288_v53  ;;  %vm11516_vm1 = vcmp.lt.s32.totalorder %v823_v2, 16  ;;  %v611_v35 = vmul.u32 18, %v610_v56  ;;  %v11521_v42 = vadd.s32 264, %v10497_v50  ;;  %v8766_v20 = vpop.f32.mrb[20].mxu0 }
 0x36a   : > { %v3972_v3 = vmax.f32 %v3936_v49, 0.0  ;;  %v3937_v31 = vadd.f32 %v11035_v26, %v3801_v11  ;;  %8808 = vmatprep.mubr.bf16.mxu1 %v4289_v55  ;;  %vm11529_vm13 = vcmp.lt.s32.totalorder %v826_v45, 16  ;;  %vm12368_vm2 = vcmp.ne.s32.totalorder %v11334_v62, 0  ;;  %8843 = vmatpush3.bf16.msra.mxu1 %v10010_v46  ;;  %v3814_v33 = vpop.f32.mrb[21].mxu0 }
 0x36b   : > { %vm12369_vm3 = vcmp.lt.s32.totalorder %v11334_v62, 0  ;;  %vm689_vm7 = vcmp.ne.s32.totalorder %v11484_v23, 0  ;;  %v588_v39 = vshrl.u32 %v11409_v36, 4  ;;  %v4082_v44 = vsel %vm11402_vm14, %v3974_v58, 0.0  ;;  %v4261_v29 = vld [vmem:[#allocation3 + $0x71] sm:$0xff]  ;;  %8844 = vmatprep.subr.bf16.mxu1 %v10011_v52  ;;  %v8767_v21 = vpop.f32.mrb[22].mxu0 }
 0x36c   : > { %vm11537_vm9 = vmand %vm12369_vm3, %vm12368_vm2  ;;  %v3975_v22 = vmax.f32 %v3939_v19, 0.0  ;;  %vm11550_vm4 = vcmp.lt.s32.totalorder %v824_v54, 16  ;;  %vm12374_vm2 = vcmp.ne.s32.totalorder %v11374_v5, 0  ;;  %4159 = vst [vmem:[#allocation3 + $0xa3] sm:$0xff] %v4082_v44  ;;  %v4080_v8 = vsel %vm11417_vm15, %v3972_v3, 0.0  ;;  %v4264_v9 = vld [vmem:[#allocation3 + $0x89] sm:$0xff] }
 0x36d   : > { %vm11558_vm3 = vmand %vm722_vm5, %vm12374_vm2  ;;  %v11563_v38 = vmul.u32.u64.low 3817748708, %v11474_v14  ;;  %v11564_v45 = vmul.u32.u64.high 3817748708, %v11474_v14, %v11563_v38  ;;  %v3973_v6 = vmax.f32 %v3937_v31, 0.0  ;;  %4157 = vst [vmem:[#allocation3 + $0x93] sm:$0xff] %v4080_v8  ;;  %v11578_v57 = vsub.s32 %v11283_v47, %v611_v35  ;;  %v3817_v46 = vpop.f32.mrb[23].mxu0 }
 0x36e   : > { %v11572_v54 = vmul.u32.u64.low 3817748708, %v11508_v1  ;;  %v11573_v13 = vmul.u32.u64.high 3817748708, %v11508_v1, %v11572_v54  ;;  %v4083_v36 = vsel %vm11431_vm11, %v3975_v22, 0.0  ;;  %v4262_v63 = vld [vmem:[#allocation3 + $0x79] sm:$0xff]  ;;  %v4263_v12 = vld [vmem:[#allocation3 + $0x81] sm:$0xff]  ;;  %v827_v37 = vsel %vm11537_vm9, %v11394_v61, %v11334_v62  ;;  %v10012_v62 = vld [vmem:[%s12183_s3 + $0x38] sm:$0xff]   ;;  %8845 = vmatpush3.bf16.msra.mxu1 %v10011_v52 }
 0x36f   : > { %v11581_v56 = vmul.u32.u64.low 3817748708, %v11521_v42  ;;  %v11582_v0 = vmul.u32.u64.high 3817748708, %v11521_v42, %v11581_v56  ;;  %4160 = vst [vmem:[#allocation3 + $0xab] sm:$0xff] %v4083_v36  ;;  %v4081_v25 = vsel %vm11445_vm8, %v3973_v6, 0.0  ;;  %v830_v47 = vsel %vm11558_vm3, %v11459_v10, %v11374_v5  ;;  %8846 = vmatprep.subr.bf16.mxu1 %v10012_v62  ;;  %v5767_v5 = vld [vmem:[#allocation3 + $0x2c] sm:$0xff] }
 0x370   : > { %vm725_vm10 = vcmp.lt.s32.totalorder %v11484_v23, 0  ;;  %4158 = vst [vmem:[#allocation3 + $0x9b] sm:$0xff] %v4081_v25  ;;  %v3942_v34 = vadd.f32 %v8766_v20, %v11035_v26  ;;  %v4290_v32 = vpack.c.bf16 %v4262_v63, %v4261_v29  ;;  %v4291_v41 = vpack.c.bf16 %v4264_v9, %v4263_v12 }
 0x371   : > { %vm687_vm11 = vcmp.ne.s32.totalorder %v11505_v24, 0  ;;  %v3940_v61 = vadd.f32 %v11035_v26, %v3814_v33  ;;  %vm11606_vm14 = vcmp.lt.s32.totalorder %v829_v51, 16  ;;  %vm723_vm15 = vcmp.lt.s32.totalorder %v11505_v24, 0  ;;  %vm11632_vm3 = vmand %vm725_vm10, %vm689_vm7  ;;  %v8770_v6 = vpop.f32.mrb[24].mxu0 }
 0x372   : > { %v589_v10 = vmul.u32 18, %v588_v39  ;;  %v643_v48 = vshrl.u32 %v11471_v16, 4  ;;  %v3978_v53 = vmax.f32 %v3942_v34, 0.0  ;;  %v3943_v55 = vadd.f32 %v8767_v21, %v11035_v26  ;;  %8809 = vmatmul.mubr.bf16.gmra.mrb[12].mxu1 %v4290_v32  ;;  %vm11650_vm7 = vmand %vm723_vm15, %vm687_vm11 }
 0x373   : > { %vm11613_vm8 = vcmp.lt.s32.totalorder %v827_v37, 16  ;;  %vm12381_vm0 = vcmp.lt.s32.totalorder %v11436_v15, 0  ;;  %vm690_vm9 = vcmp.ne.s32.totalorder %v11578_v57, 0  ;;  %vm726_vm2 = vcmp.lt.s32.totalorder %v11578_v57, 0  ;;  %8812 = vmatprep.mubr.bf16.mxu1 %v4291_v41  ;;  %8847 = vmatpush3.bf16.msra.mxu1 %v10012_v62  ;;  %v5771_v62 = vld [vmem:[#allocation3 + $0x4c] sm:$0xff] }
 0x374   : > { %vm11621_vm5 = vmand %vm12381_vm0, %vm684_vm12  ;;  %v3976_v60 = vmax.f32 %v3940_v61, 0.0  ;;  %v3941_v43 = vadd.f32 %v11035_v26, %v3817_v46  ;;  %v797_v51 = vadd.s32 18, %v11484_v23  ;;  %v11638_v18 = vadd.s32 18, %v11505_v24  ;;  %v4265_v54 = vld [vmem:[#allocation3 + $0x91] sm:$0xff]  ;;  %8884 = vmatprep.subr.bf16.mxu1 %v11658_v17 }
 0x375   : > { %v4086_v58 = vsel %vm11497_vm6, %v3978_v53, 0.0  ;;  %v3979_v19 = vmax.f32 %v3943_v55, 0.0  ;;  %vm11642_vm12 = vcmp.lt.s32.totalorder %v830_v47, 16  ;;  %v798_v3 = vadd.s32 18, %v11578_v57  ;;  %vm11666_vm6 = vmand %vm726_vm2, %vm690_vm9 }
 0x376   : > { %4163 = vst [vmem:[#allocation3 + $0xc3] sm:$0xff] %v4086_v58  ;;  %v4084_v31 = vsel %vm11516_vm1, %v3976_v60, 0.0  ;;  %v3977_v50 = vmax.f32 %v3941_v43, 0.0  ;;  %v11671_v44 = vsub.s32 %v11366_v40, %v589_v10  ;;  %v621_v22 = vshrl.u32 %v11564_v45, 4  ;;  %v4268_v38 = vld [vmem:[#allocation3 + $0xa9] sm:$0xff] }
 0x377   : > { %4161 = vst [vmem:[#allocation3 + $0xb3] sm:$0xff] %v4084_v31  ;;  %v4087_v2 = vsel %vm11529_vm13, %v3979_v19, 0.0  ;;  %v828_v7 = vsel %vm11621_vm5, %v11502_v4, %v11436_v15  ;;  %v644_v52 = vmul.u32 18, %v643_v48  ;;  %v654_v8 = vshrl.u32 %v11573_v13, 4  ;;  %v4266_v45 = vld [vmem:[#allocation3 + $0x99] sm:$0xff]  ;;  %v4267_v36 = vld [vmem:[#allocation3 + $0xa1] sm:$0xff] }
 0x378   : > { %4164 = vst [vmem:[#allocation3 + $0xcb] sm:$0xff] %v4087_v2  ;;  %v4085_v40 = vsel %vm11550_vm4, %v3977_v50, 0.0  ;;  %v833_v59 = vsel %vm11632_vm3, %v797_v51, %v11484_v23  ;;  %v831_v15 = vsel %vm11650_vm7, %v11638_v18, %v11505_v24  ;;  %v632_v4 = vshrl.u32 %v11582_v0, 4  ;;  %v3830_v13 = vpop.f32.mrb[25].mxu0  ;;  %v4183_v2 = vld [vmem:[#allocation3 + $0x30] sm:$0xff] }
 0x379   : > { %4162 = vst [vmem:[#allocation3 + $0xbb] sm:$0xff] %v4085_v40  ;;  %v3946_v30 = vadd.f32 %v8770_v6, %v11035_v26  ;;  %v4292_v9 = vpack.c.bf16 %v4266_v45, %v4265_v54  ;;  %v4293_v56 = vpack.c.bf16 %v4268_v38, %v4267_v36  ;;  %v834_v25 = vsel %vm11666_vm6, %v798_v3, %v11578_v57  ;;  %v8771_v20 = vpop.f32.mrb[26].mxu0  ;;  %v4187_v54 = vld [vmem:[#allocation3 + $0x50] sm:$0xff] }
 0x37a   : > { %v3944_v23 = vadd.f32 %v11035_v26, %v3830_v13  ;;  %vm688_vm1 = vcmp.ne.s32.totalorder %v11671_v44, 0  ;;  %vm724_vm13 = vcmp.lt.s32.totalorder %v11671_v44, 0  ;;  %v622_v24 = vmul.u32 18, %v621_v22  ;;  %v3833_v63 = vpop.f32.mrb[27].mxu0 }
 0x37b   : > { %v3982_v0 = vmax.f32 %v3946_v30, 0.0  ;;  %v3947_v29 = vadd.f32 %v8771_v20, %v11035_v26  ;;  %8813 = vmatmul.mubr.bf16.gmra.mrb[16].mxu1 %v4292_v9  ;;  %v11701_v12 = vsub.s32 %v11423_v28, %v644_v52  ;;  %v655_v37 = vmul.u32 18, %v654_v8  ;;  %vm11715_vm11 = vmand %vm724_vm13, %vm688_vm1  ;;  %v8774_v27 = vpop.f32.mrb[28].mxu0 }
 0x37c   : > { %v3980_v57 = vmax.f32 %v3944_v23, 0.0  ;;  %v3945_v47 = vadd.f32 %v11035_v26, %v3833_v63  ;;  %8816 = vmatprep.mubr.bf16.mxu1 %v4293_v56  ;;  %v796_v34 = vadd.s32 18, %v11671_v44  ;;  %v633_v33 = vmul.u32 18, %v632_v4 }
 0x37d   : > { %v4090_v32 = vsel %vm11606_vm14, %v3982_v0, 0.0  ;;  %v3983_v41 = vmax.f32 %v3947_v29, 0.0  ;;  %vm864_vm4 = vcmp.lt.s32.totalorder %v828_v7, 16  ;;  %vm11707_vm10 = vcmp.lt.s32.totalorder %v833_v59, 16 }
 0x37e   : > { %4167 = vst [vmem:[#allocation3 + $0xe3] sm:$0xff] %v4090_v32  ;;  %v4088_v61 = vsel %vm11613_vm8, %v3980_v57, 0.0  ;;  %v3981_v21 = vmax.f32 %v3945_v47, 0.0  ;;  %vm11721_vm14 = vcmp.lt.s32.totalorder %v831_v15, 16  ;;  %v11726_v10 = vsub.s32 %v11474_v14, %v622_v24  ;;  %v4269_v60 = vld [vmem:[#allocation3 + $0xb1] sm:$0xff]  ;;  %v10019_v15 = vld [vmem:[%s12183_s3 + $0xb0] sm:$0xff]  }
 0x37f   : > { %4165 = vst [vmem:[#allocation3 + $0xd3] sm:$0xff] %v4088_v61  ;;  %v4091_v48 = vsel %vm11642_vm12, %v3983_v41, 0.0  ;;  %vm11730_vm15 = vcmp.lt.s32.totalorder %v834_v25, 16  ;;  %v4272_v55 = vld [vmem:[#allocation3 + $0xc9] sm:$0xff]  ;;  %vm693_vm0 = vcmp.ne.s32.totalorder %v11701_v12, 0  ;;  %v11736_v46 = vsub.s32 %v11508_v1, %v655_v37  ;;  %v3846_v1 = vpop.f32.mrb[29].mxu0 }
 0x380   : > { %4168 = vst [vmem:[#allocation3 + $0xeb] sm:$0xff] %v4091_v48  ;;  %v4089_v49 = vsel %vm864_vm4, %v3981_v21, 0.0  ;;  %v832_v14 = vsel %vm11715_vm11, %v796_v34, %v11671_v44  ;;  %v4270_v43 = vld [vmem:[#allocation3 + $0xb9] sm:$0xff]  ;;  %v4271_v16 = vld [vmem:[#allocation3 + $0xc1] sm:$0xff]  ;;  %vm729_vm8 = vcmp.lt.s32.totalorder %v11701_v12, 0  ;;  %v11743_v51 = vsub.s32 %v11521_v42, %v633_v33  ;;  %v8775_v3 = vpop.f32.mrb[30].mxu0 }
 0x381   : > { %4166 = vst [vmem:[#allocation3 + $0xdb] sm:$0xff] %v4089_v49  ;;  %v3950_v18 = vadd.f32 %v8774_v27, %v11035_v26  ;;  %v4294_v58 = vpack.c.bf16 %v4270_v43, %v4269_v60  ;;  %v4295_v19 = vpack.c.bf16 %v4272_v55, %v4271_v16  ;;  %v801_v11 = vadd.s32 18, %v11701_v12  ;;  %v3849_v39 = vpop.f32.mrb[31].mxu0  ;;  %vm11759_vm12 = vmand %vm729_vm8, %vm693_vm0 }
 0x382   : > { %v3948_v35 = vadd.f32 %v11035_v26, %v3846_v1  ;;  %vm691_vm5 = vcmp.ne.s32.totalorder %v11726_v10, 0  ;;  %vm727_vm9 = vcmp.lt.s32.totalorder %v11726_v10, 0  ;;  %v799_v31 = vadd.s32 18, %v11726_v10  ;;  %v8778_v13 = vpop.f32.mrb[32].mxu0 }
 0x383   : > { %v3986_v50 = vmax.f32 %v3950_v18, 0.0  ;;  %v3951_v42 = vadd.f32 %v8775_v3, %v11035_v26  ;;  %8817 = vmatmul.mubr.bf16.gmra.mrb[20].mxu1 %v4294_v58  ;;  %vm694_vm2 = vcmp.ne.s32.totalorder %v11736_v46, 0  ;;  %vm730_vm3 = vcmp.lt.s32.totalorder %v11736_v46, 0  ;;  %vm11771_vm13 = vmand %vm727_vm9, %vm691_vm5  ;;  %v3862_v24 = vpop.f32.mrb[33].mxu0  ;;  %v4180_v58 = vld [vmem:[#allocation3 + $0x18] sm:$0xff] }
 0x384   : > { %v3984_v44 = vmax.f32 %v3948_v35, 0.0  ;;  %v3949_v22 = vadd.f32 %v11035_v26, %v3849_v39  ;;  %8820 = vmatprep.mubr.bf16.mxu1 %v4295_v19  ;;  %vm692_vm7 = vcmp.ne.s32.totalorder %v11743_v51, 0  ;;  %vm728_vm6 = vcmp.lt.s32.totalorder %v11743_v51, 0  ;;  %vm11782_vm4 = vmand %vm730_vm3, %vm694_vm2  ;;  %v8779_v37 = vpop.f32.mrb[34].mxu0  ;;  %v4181_v19 = vld [vmem:[#allocation3 + $0x20] sm:$0xff]  ;;  %v4179_v35 = vld [vmem:[#allocation3 + $0x10] sm:$0xff] }
 0x385   : > { %v4094_v7 = vsel %vm11707_vm10, %v3986_v50, 0.0  ;;  %v3987_v38 = vmax.f32 %v3951_v42, 0.0  ;;  %vm868_vm1 = vcmp.lt.s32.totalorder %v832_v14, 16  ;;  %v802_v8 = vadd.s32 18, %v11736_v46  ;;  %vm11794_vm10 = vmand %vm728_vm6, %vm692_vm7  ;;  %v3865_v32 = vpop.f32.mrb[35].mxu0  ;;  %v10015_v42 = vld [vmem:[%s12183_s3 + $0x90] sm:$0xff]  }
 0x386   : > { %4171 = vst [vmem:[#allocation3 + $0x103] sm:$0xff] %v4094_v7  ;;  %v4092_v40 = vsel %vm11721_vm14, %v3984_v44, 0.0  ;;  %v3985_v6 = vmax.f32 %v3949_v22, 0.0  ;;  %v800_v45 = vadd.s32 18, %v11743_v51  ;;  %v837_v59 = vsel %vm11759_vm12, %v801_v11, %v11701_v12  ;;  %v4273_v56 = vld [vmem:[#allocation3 + $0xd1] sm:$0xff]  ;;  %v4182_v11 = vld [vmem:[#allocation3 + $0x28] sm:$0xff] }
 0x387   : > { %4169 = vst [vmem:[#allocation3 + $0xf3] sm:$0xff] %v4092_v40  ;;  %v4095_v36 = vsel %vm11730_vm15, %v3987_v38, 0.0  ;;  %v4276_v4 = vld [vmem:[#allocation3 + $0xe9] sm:$0xff]  ;;  %v835_v9 = vsel %vm11771_vm13, %v799_v31, %v11726_v10  ;;  %v3954_v20 = vadd.f32 %v8778_v13, %v11035_v26  ;;  %v838_v0 = vsel %vm11782_vm4, %v802_v8, %v11736_v46  ;;  %v10014_v31 = vld [vmem:[%s12183_s3 + $0x88] sm:$0xff]   ;;  %v4184_v39 = vld [vmem:[#allocation3 + $0x38] sm:$0xff] }
 0x388   : > { %4172 = vst [vmem:[#allocation3 + $0x10b] sm:$0xff] %v4095_v36  ;;  %v4093_v30 = vsel %vm868_vm1, %v3985_v6, 0.0  ;;  %v4274_v25 = vld [vmem:[#allocation3 + $0xd9] sm:$0xff]  ;;  %v4275_v23 = vld [vmem:[#allocation3 + $0xe1] sm:$0xff]  ;;  %vm873_vm11 = vcmp.lt.s32.totalorder %v837_v59, 16  ;;  %v11806_v12 = vadd.f32 %v11035_v26, %v3862_v24  ;;  %v836_v57 = vsel %vm11794_vm10, %v800_v45, %v11743_v51  ;;  %v10016_v38 = vld [vmem:[%s12183_s3 + $0x98] sm:$0xff]  }
 0x389   : > { %4170 = vst [vmem:[#allocation3 + $0xfb] sm:$0xff] %v4093_v30  ;;  %v4296_v29 = vpack.c.bf16 %v4274_v25, %v4273_v56  ;;  %v4297_v63 = vpack.c.bf16 %v4276_v4, %v4275_v23  ;;  %v3990_v47 = vmax.f32 %v3954_v20, 0.0  ;;  %vm11811_vm14 = vcmp.lt.s32.totalorder %v835_v9, 16  ;;  %v10069_v51 = vld [vmem:[#allocation3] sm:$0xff]  ;;  %v4186_v22 = vld [vmem:[#allocation3 + $0x48] sm:$0xff]  ;;  %v4188_v8 = vld [vmem:[#allocation3 + $0x58] sm:$0xff] }
 0x38a   : > { %v11816_v33 = vadd.f32 %v8779_v37, %v11035_v26  ;;  %v3988_v41 = vmax.f32 %v11806_v12, 0.0  ;;  %vm11819_vm15 = vcmp.lt.s32.totalorder %v838_v0, 16  ;;  %v11824_v28 = vadd.f32 %v11035_v26, %v3865_v32  ;;  %v4185_v44 = vld [vmem:[#allocation3 + $0x40] sm:$0xff]  ;;  %v4190_v6 = vld [vmem:[#allocation3 + $0x68] sm:$0xff]  ;;  %v4192_v4 = vld [vmem:[#allocation3 + $0x78] sm:$0xff] }
 0x38b   : > { %8821 = vmatmul.mubr.bf16.gmra.mrb[24].mxu1 %v4296_v29  ;;  %v4098_v61 = vsel %vm873_vm11, %v3990_v47, 0.0  ;;  %vm11827_vm0 = vcmp.lt.s32.totalorder %v836_v57, 16  ;;  %v4213_v18 = vpack.c.bf16 %v10069_v51, %v10069_v51  ;;  %v4214_v3 = vpack.c.bf16 %v4180_v58, %v4179_v35  ;;  %v4189_v40 = vld [vmem:[#allocation3 + $0x60] sm:$0xff]  ;;  %v4194_v13 = vld [vmem:[#allocation3 + $0x88] sm:$0xff]  ;;  %v4191_v9 = vld [vmem:[#allocation3 + $0x70] sm:$0xff] }
 0x38c   : > { %8824 = vmatprep.mubr.bf16.mxu1 %v4297_v63  ;;  %v3991_v21 = vmax.f32 %v11816_v33, 0.0  ;;  %4175 = vst [vmem:[#allocation3 + $0x123] sm:$0xff] %v4098_v61  ;;  %v4096_v10 = vsel %vm11811_vm14, %v3988_v41, 0.0  ;;  %v3989_v48 = vmax.f32 %v11824_v28, 0.0  ;;  %v4215_v50 = vpack.c.bf16 %v4182_v11, %v4181_v19  ;;  %v10018_v36 = vld [vmem:[%s12183_s3 + $0xa8] sm:$0xff]   ;;  %v10020_v25 = vld [vmem:[%s12183_s3 + $0xb8] sm:$0xff]   ;;  %vm10070_vm8 = vmpackc.low %vm11827_vm0, %vm11811_vm14 }
 0x38d   : > { %4173 = vst [vmem:[#allocation3 + $0x113] sm:$0xff] %v4096_v10  ;;  %v4216_v7 = vpack.c.bf16 %v4184_v39, %v4183_v2  ;;  %v4217_v52 = vpack.c.bf16 %v4186_v22, %v4185_v44  ;;  %v4218_v45 = vpack.c.bf16 %v4188_v8, %v4187_v54  ;;  %v4219_v59 = vpack.c.bf16 %v4190_v6, %v4189_v40  ;;  %v4193_v30 = vld [vmem:[#allocation3 + $0x80] sm:$0xff]  ;;  %v10021_v20 = vld [vmem:[%s12183_s3 + $0xc0] sm:$0xff]   ;;  %v4198_v29 = vld [vmem:[#allocation3 + $0xa8] sm:$0xff] }
 0x38e   : > { %v4099_v26 = vsel %vm11819_vm15, %v3991_v21, 0.0  ;;  %v4097_v55 = vsel %vm11827_vm0, %v3989_v48, 0.0  ;;  %v4277_v46 = vld [vmem:[#allocation3 + $0xf1] sm:$0xff]  ;;  %v4220_v56 = vpack.c.bf16 %v4192_v4, %v4191_v9  ;;  %v4221_v23 = vpack.c.bf16 %v4194_v13, %v4193_v30  ;;  %v4197_v0 = vld [vmem:[#allocation3 + $0xa0] sm:$0xff]  ;;  %v4202_v61 = vld [vmem:[#allocation3 + $0xc8] sm:$0xff] }
 0x38f   : > { %v4280_v53 = vld [vmem:[#allocation3 + $0x109] sm:$0xff]  ;;  %4176 = vst [vmem:[#allocation3 + $0x12b] sm:$0xff] %v4099_v26  ;;  %4174 = vst [vmem:[#allocation3 + $0x11b] sm:$0xff] %v4097_v55  ;;  %v4196_v24 = vld [vmem:[#allocation3 + $0x98] sm:$0xff]  ;;  %v4223_v57 = vpack.c.bf16 %v4198_v29, %v4197_v0  ;;  %vm10085_vm5 = vmmov 1  }
 0x390   : > { %v4278_v49 = vld [vmem:[#allocation3 + $0xf9] sm:$0xff]  ;;  %v4279_v27 = vld [vmem:[#allocation3 + $0x101] sm:$0xff]  ;;  %v4195_v63 = vld [vmem:[#allocation3 + $0x90] sm:$0xff] }
 0x391   : > { %v4298_v14 = vpack.c.bf16 %v4278_v49, %v4277_v46  ;;  %v4299_v60 = vpack.c.bf16 %v4280_v53, %v4279_v27  ;;  %v4222_v37 = vpack.c.bf16 %v4196_v24, %v4195_v63  ;;  %v4200_v47 = vld [vmem:[#allocation3 + $0xb8] sm:$0xff]  ;;  %v4201_v32 = vld [vmem:[#allocation3 + $0xc0] sm:$0xff]  ;;  %v4199_v10 = vld [vmem:[#allocation3 + $0xb0] sm:$0xff] }
 0x392   : > { %v4224_v26 = vpack.c.bf16 %v4200_v47, %v4199_v10  ;;  %v4225_v53 = vpack.c.bf16 %v4202_v61, %v4201_v32  ;;  %v4204_v55 = vld [vmem:[#allocation3 + $0xd8] sm:$0xff]  ;;  %v4205_v46 = vld [vmem:[#allocation3 + $0xe0] sm:$0xff]  ;;  %v4206_v49 = vld [vmem:[#allocation3 + $0xe8] sm:$0xff] }
 0x393   : > { %8825 = vmatmul.mubr.bf16.gmra.mrb[28].mxu1 %v4298_v14  ;;  %v4203_v27 = vld [vmem:[#allocation3 + $0xd0] sm:$0xff]  ;;  %v4210_v51 = vld [vmem:[#allocation3 + $0x108] sm:$0xff]  ;;  %v10029_v47 = vld [vmem:[%s12183_s3 + $0x100] sm:$0xff]  }
 0x394   : > { %8828 = vmatprep.mubr.bf16.mxu1 %v4299_v60  ;;  %v4281_v43 = vld [vmem:[#allocation3 + $0x111] sm:$0xff]  ;;  %v4226_v14 = vpack.c.bf16 %v4204_v55, %v4203_v27  ;;  %v4227_v60 = vpack.c.bf16 %v4206_v49, %v4205_v46  ;;  %v4768_v19 = vld [vmem:[#allocation3 + $0x2] sm:$0xff]  ;;  %v4787_v32 = vld [vmem:[#allocation3 + $0x9a] sm:$0xff] }
 0x395   : > { %v4769_v11 = vld [vmem:[#allocation3 + $0xa] sm:$0xff]  ;;  %v4772_v39 = vld [vmem:[#allocation3 + $0x22] sm:$0xff]  ;;  %v4770_v22 = vld [vmem:[#allocation3 + $0x12] sm:$0xff] }
 0x396   : > { %v4282_v16 = vld [vmem:[#allocation3 + $0x119] sm:$0xff]  ;;  %v4773_v44 = vld [vmem:[#allocation3 + $0x2a] sm:$0xff]  ;;  %v4776_v8 = vld [vmem:[#allocation3 + $0x42] sm:$0xff] }
 0x397   : > { %v4300_v1 = vpack.c.bf16 %v4282_v16, %v4281_v43  ;;  %v4208_v43 = vld [vmem:[#allocation3 + $0xf8] sm:$0xff]  ;;  %v4209_v16 = vld [vmem:[#allocation3 + $0x100] sm:$0xff]  ;;  %v4777_v40 = vld [vmem:[#allocation3 + $0x4a] sm:$0xff] }
 0x398   : > { %v4229_v58 = vpack.c.bf16 %v4210_v51, %v4209_v16  ;;  %v4212_v35 = vld [vmem:[#allocation3 + $0x118] sm:$0xff]  ;;  %v4780_v4 = vld [vmem:[#allocation3 + $0x62] sm:$0xff]  ;;  %v4781_v30 = vld [vmem:[#allocation3 + $0x6a] sm:$0xff] }
 0x399   : > { %v4774_v6 = vld [vmem:[#allocation3 + $0x32] sm:$0xff]  ;;  %v4784_v24 = vld [vmem:[#allocation3 + $0x82] sm:$0xff]  ;;  %v4785_v0 = vld [vmem:[#allocation3 + $0x8a] sm:$0xff] }
 0x39a   : > { %v4778_v13 = vld [vmem:[#allocation3 + $0x52] sm:$0xff]  ;;  %v4788_v61 = vld [vmem:[#allocation3 + $0xa2] sm:$0xff]  ;;  %v4789_v10 = vld [vmem:[#allocation3 + $0xaa] sm:$0xff] }
 0x39b   : > { %8829 = vmatmul.mubr.bf16.gmra.mrb[32].mxu1 %v4300_v1  ;;  %v4782_v29 = vld [vmem:[#allocation3 + $0x72] sm:$0xff]  ;;  %v11917_v55 = vpack.c.bf16 %v4789_v10, %v4788_v61  ;;  %v4791_v46 = vld [vmem:[#allocation3 + $0xba] sm:$0xff]  ;;  %v4792_v49 = vld [vmem:[#allocation3 + $0xc2] sm:$0xff] }
 0x39c   : > { %8848 = vmatprep.mubr.bf16.mxu1 %v4213_v18  ;;  %v4207_v18 = vld [vmem:[#allocation3 + $0xf0] sm:$0xff]  ;;  %v4795_v16 = vld [vmem:[#allocation3 + $0xda] sm:$0xff]  ;;  %v4796_v51 = vld [vmem:[#allocation3 + $0xe2] sm:$0xff] }
 0x39d   : > { %v4228_v1 = vpack.c.bf16 %v4208_v43, %v4207_v18  ;;  %v4793_v27 = vld [vmem:[#allocation3 + $0xca] sm:$0xff]  ;;  %v10041_v61 = vld [vmem:[%s12183_s3 + $0x160] sm:$0xff]   ;;  %vm10073_vm9 = vmpackc.low %vm11819_vm15, %vm10085_vm5 }
 0x39e   : > { %v4816_v43 = vpack.c.bf16 %v4793_v27, %v4792_v49  ;;  %v4797_v18 = vld [vmem:[#allocation3 + $0xea] sm:$0xff]  ;;  %v10042_v49 = vld [vmem:[%s12183_s3 + $0x168] sm:$0xff]  }
 0x39f   : > { %v5443_v10 = vld [vmem:[#allocation3 + $0x6b] sm:$0xff]  ;;  %v5769_v12 = vld [vmem:[#allocation3 + $0x3c] sm:$0xff] }
 0x3a0   : > { %v10047_v33 = vld [vmem:[%s12183_s3 + $0x190] sm:$0xff]  }
 0x3a3   : > { %8849 = vmatmul.mubr.bf16.vlgmr.msra.gmra.mrb[0].mxu1 %v4214_v3  ;;  %v4211_v3 = vld [vmem:[#allocation3 + $0x110] sm:$0xff] }
 0x3a4   : > { %8852 = vmatprep.mubr.bf16.mxu1 %v4215_v50  ;;  %8885 = vmatpush3.bf16.msra.mxu1 %v11658_v17  ;;  %v10017_v17 = vld [vmem:[%s12183_s3 + $0xa0] sm:$0xff]   ;;  %v4230_v50 = vpack.c.bf16 %v4212_v35, %v4211_v3  ;;  %v4800_v35 = vld [vmem:[#allocation3 + $0x102] sm:$0xff]  ;;  %v4801_v3 = vld [vmem:[#allocation3 + $0x10a] sm:$0xff] }
 0x3a5   : > { %8886 = vmatprep.subr.bf16.mxu1 %v10014_v31 }
 0x3a8   : > { %8887 = vmatpush3.bf16.msra.mxu1 %v10014_v31  ;;  %v4804_v31 = vpack.c.bf16 %v4769_v11, %v4768_v19  ;;  %v4818_v19 = vpack.c.bf16 %v4797_v18, %v4796_v51  ;;  %v4799_v11 = vld [vmem:[#allocation3 + $0xfa] sm:$0xff] }
 0x3a9   : > { %8888 = vmatprep.subr.bf16.mxu1 %v10015_v42  ;;  %v5448_v18 = vld [vmem:[#allocation3 + $0x93] sm:$0xff] }
 0x3ab   : > { %8853 = vmatmul.mubr.bf16.gmra.mrb[4].mxu1 %v4216_v7  ;;  %v10022_v7 = vld [vmem:[%s12183_s3 + $0xc8] sm:$0xff]  }
 0x3ac   : > { %8856 = vmatprep.mubr.bf16.mxu1 %v4217_v52  ;;  %8889 = vmatpush3.bf16.msra.mxu1 %v10015_v42  ;;  %v4771_v42 = vld [vmem:[#allocation3 + $0x1a] sm:$0xff]  ;;  %v10023_v52 = vld [vmem:[%s12183_s3 + $0xd0] sm:$0xff]  }
 0x3ad   : > { %8890 = vmatprep.subr.bf16.mxu1 %v10016_v38  ;;  %v11869_v2 = vpack.c.bf16 %v4771_v42, %v4770_v22  ;;  %v4820_v42 = vpack.c.bf16 %v4801_v3, %v4800_v35  ;;  %v5453_v35 = vld [vmem:[#allocation3 + $0xbb] sm:$0xff]  ;;  %v5450_v3 = vld [vmem:[#allocation3 + $0xa3] sm:$0xff] }
 0x3b0   : > { %8891 = vmatpush3.bf16.msra.mxu1 %v10016_v38  ;;  %v11874_v38 = vpack.c.bf16 %v4773_v44, %v4772_v39  ;;  %v4803_v39 = vld [vmem:[#allocation3 + $0x11a] sm:$0xff]  ;;  %v4802_v44 = vld [vmem:[#allocation3 + $0x112] sm:$0xff] }
 0x3b1   : > { %8892 = vmatprep.subr.bf16.mxu1 %v10017_v17  ;;  %v4821_v22 = vpack.c.bf16 %v4803_v39, %v4802_v44  ;;  %v5455_v39 = vld [vmem:[#allocation3 + $0xcb] sm:$0xff]  ;;  %v5457_v44 = vld [vmem:[#allocation3 + $0xdb] sm:$0xff] }
 0x3b3   : > { %8857 = vmatmul.mubr.bf16.gmra.mrb[8].mxu1 %v4218_v45  ;;  %v10024_v45 = vld [vmem:[%s12183_s3 + $0xd8] sm:$0xff]  }
 0x3b4   : > { %8860 = vmatprep.mubr.bf16.mxu1 %v4219_v59  ;;  %8893 = vmatpush3.bf16.msra.mxu1 %v10017_v17  ;;  %v4775_v17 = vld [vmem:[#allocation3 + $0x3a] sm:$0xff] }
 0x3b5   : > { %8894 = vmatprep.subr.bf16.mxu1 %v10018_v36  ;;  %v11881_v54 = vpack.c.bf16 %v4775_v17, %v4774_v6  ;;  %v10025_v59 = vld [vmem:[%s12183_s3 + $0xe0] sm:$0xff]   ;;  %v10034_v17 = vld [vmem:[%s12183_s3 + $0x128] sm:$0xff]  }
 0x3b6   : > { %v10037_v6 = vld [vmem:[%s12183_s3 + $0x140] sm:$0xff]  }
 0x3b8   : > { %8895 = vmatpush3.bf16.msra.mxu1 %v10018_v36  ;;  %v11886_v36 = vpack.c.bf16 %v4777_v40, %v4776_v8  ;;  %v10035_v8 = vld [vmem:[%s12183_s3 + $0x130] sm:$0xff]   ;;  %v10036_v40 = vld [vmem:[%s12183_s3 + $0x138] sm:$0xff]  }
 0x3b9   : > { %8896 = vmatprep.subr.bf16.mxu1 %v10019_v15 }
 0x3bb   : > { %8861 = vmatmul.mubr.bf16.gmra.mrb[12].mxu1 %v4220_v56  ;;  %v10026_v56 = vld [vmem:[%s12183_s3 + $0xe8] sm:$0xff]  }
 0x3bc   : > { %8864 = vmatprep.mubr.bf16.mxu1 %v4221_v23  ;;  %8897 = vmatpush3.bf16.msra.mxu1 %v10019_v15  ;;  %v4779_v15 = vld [vmem:[#allocation3 + $0x5a] sm:$0xff]  ;;  %v10027_v23 = vld [vmem:[%s12183_s3 + $0xf0] sm:$0xff]  }
 0x3bd   : > { %8898 = vmatprep.subr.bf16.mxu1 %v10020_v25  ;;  %v11893_v9 = vpack.c.bf16 %v4779_v15, %v4778_v13  ;;  %v5432_v15 = vld [vmem:[#allocation3 + $0x13] sm:$0xff]  ;;  %v5437_v13 = vld [vmem:[#allocation3 + $0x3b] sm:$0xff] }
 0x3c0   : > { %8899 = vmatpush3.bf16.msra.mxu1 %v10020_v25  ;;  %v11898_v25 = vpack.c.bf16 %v4781_v30, %v4780_v4  ;;  %v5435_v30 = vld [vmem:[#allocation3 + $0x2b] sm:$0xff] }
 0x3c1   : > { %8936 = vmatprep.subr.bf16.mxu1 %v10021_v20 }
 0x3c3   : > { %8865 = vmatmul.mubr.bf16.gmra.mrb[16].mxu1 %v4222_v37  ;;  %v10028_v37 = vld [vmem:[%s12183_s3 + $0xf8] sm:$0xff]  }
 0x3c4   : > { %8868 = vmatprep.mubr.bf16.mxu1 %v4223_v57  ;;  %v11910_v57 = vpack.c.bf16 %v4785_v0, %v4784_v24  ;;  %v10039_v24 = vld [vmem:[%s12183_s3 + $0x150] sm:$0xff]  }
 0x3c5   : > { %v5439_v0 = vld [vmem:[#allocation3 + $0x4b] sm:$0xff] }
 0x3cb   : > { %8869 = vmatmul.mubr.bf16.gmra.mrb[20].mxu1 %v4224_v26  ;;  %v4786_v26 = vld [vmem:[#allocation3 + $0x92] sm:$0xff] }
 0x3cc   : > { %8872 = vmatprep.mubr.bf16.mxu1 %v4225_v53  ;;  %v4813_v53 = vpack.c.bf16 %v4787_v32, %v4786_v26  ;;  %v5445_v26 = vld [vmem:[#allocation3 + $0x7b] sm:$0xff] }
 0x3d3   : > { %8873 = vmatmul.mubr.bf16.gmra.mrb[24].mxu1 %v4226_v14  ;;  %v4790_v14 = vld [vmem:[#allocation3 + $0xb2] sm:$0xff] }
 0x3d4   : > { %8876 = vmatprep.mubr.bf16.mxu1 %v4227_v60  ;;  %v4815_v60 = vpack.c.bf16 %v4791_v46, %v4790_v14  ;;  %v5444_v46 = vld [vmem:[#allocation3 + $0x73] sm:$0xff]  ;;  %v10043_v14 = vld [vmem:[%s12183_s3 + $0x170] sm:$0xff]  }
 0x3d5   : > { %v5474_v27 = vpack.c.bf16 %v5445_v26, %v5444_v46  ;;  %v5780_v46 = vld [vmem:[#allocation3 + $0x94] sm:$0xff] }
 0x3db   : > { %8877 = vmatmul.mubr.bf16.gmra.mrb[28].mxu1 %v4228_v1  ;;  %v4794_v1 = vld [vmem:[#allocation3 + $0xd2] sm:$0xff] }
 0x3dc   : > { %8880 = vmatprep.mubr.bf16.mxu1 %v4229_v58  ;;  %v4817_v58 = vpack.c.bf16 %v4795_v16, %v4794_v1  ;;  %v5446_v16 = vld [vmem:[#allocation3 + $0x83] sm:$0xff]  ;;  %v10044_v1 = vld [vmem:[%s12183_s3 + $0x178] sm:$0xff]  }
 0x3e3   : > { %8881 = vmatmul.mubr.bf16.gmra.mrb[32].mxu1 %v4230_v50 }
 0x3e4   : > { %8900 = vmatprep.mubr.bf16.mxu1 %v4804_v31  ;;  %v4798_v31 = vld [vmem:[#allocation3 + $0xf2] sm:$0xff] }
 0x3e5   : > { %v4819_v50 = vpack.c.bf16 %v4799_v11, %v4798_v31  ;;  %v5451_v11 = vld [vmem:[#allocation3 + $0xab] sm:$0xff] }
 0x3e6   : > { %v5477_v31 = vpack.c.bf16 %v5451_v11, %v5450_v3  ;;  %v5788_v3 = vld [vmem:[#allocation3 + $0xd4] sm:$0xff] }
 0x3eb   : > { %8901 = vmatmul.mubr.bf16.vlgmr.msra.gmra.mrb[0].mxu1 %v11869_v2 }
 0x3ec   : > { %8904 = vmatprep.mubr.bf16.mxu1 %v11874_v38  ;;  %8937 = vmatpush3.bf16.msra.mxu1 %v10021_v20  ;;  %v4783_v20 = vld [vmem:[#allocation3 + $0x7a] sm:$0xff] }
 0x3ed   : > { %8938 = vmatprep.subr.bf16.mxu1 %v10022_v7  ;;  %v11905_v63 = vpack.c.bf16 %v4783_v20, %v4782_v29  ;;  %v5441_v29 = vld [vmem:[#allocation3 + $0x5b] sm:$0xff] }
 0x3f0   : > { %8939 = vmatpush3.bf16.msra.mxu1 %v10022_v7  ;;  %v10030_v7 = vld [vmem:[%s12183_s3 + $0x108] sm:$0xff]  }
 0x3f1   : > { %8940 = vmatprep.subr.bf16.mxu1 %v10023_v52 }
 0x3f3   : > { %8905 = vmatmul.mubr.bf16.gmra.mrb[4].mxu1 %v11881_v54 }
 0x3f4   : > { %8908 = vmatprep.mubr.bf16.mxu1 %v11886_v36  ;;  %8941 = vmatpush3.bf16.msra.mxu1 %v10023_v52  ;;  %v10031_v52 = vld [vmem:[%s12183_s3 + $0x110] sm:$0xff]  }
 0x3f5   : > { %8942 = vmatprep.subr.bf16.mxu1 %v10024_v45 }
 0x3f8   : > { %8943 = vmatpush3.bf16.msra.mxu1 %v10024_v45  ;;  %v5135_v45 = vld [vmem:[#allocation3 + $0x12a] sm:$0xff] }
 0x3f9   : > { %8944 = vmatprep.subr.bf16.mxu1 %v10025_v59 }
 0x3fb   : > { %8909 = vmatmul.mubr.bf16.gmra.mrb[8].mxu1 %v11893_v9 }
 0x3fc   : > { %8912 = vmatprep.mubr.bf16.mxu1 %v11898_v25  ;;  %8945 = vmatpush3.bf16.msra.mxu1 %v10025_v59 }
 0x3fd   : > { %8946 = vmatprep.subr.bf16.mxu1 %v10026_v56 }
 0x400   : > { %8947 = vmatpush3.bf16.msra.mxu1 %v10026_v56 }
 0x401   : > { %8948 = vmatprep.subr.bf16.mxu1 %v10027_v23 }
 0x403   : > { %8913 = vmatmul.mubr.bf16.gmra.mrb[12].mxu1 %v11905_v63 }
 0x404   : > { %8916 = vmatprep.mubr.bf16.mxu1 %v11910_v57  ;;  %8949 = vmatpush3.bf16.msra.mxu1 %v10027_v23  ;;  %v10038_v23 = vld [vmem:[%s12183_s3 + $0x148] sm:$0xff]  }
 0x405   : > { %8950 = vmatprep.subr.bf16.mxu1 %v10028_v37 }
 0x408   : > { %8951 = vmatpush3.bf16.msra.mxu1 %v10028_v37 }
 0x409   : > { %8988 = vmatprep.subr.bf16.mxu1 %v10029_v47 }
 0x40b   : > { %8917 = vmatmul.mubr.bf16.gmra.mrb[16].mxu1 %v4813_v53 }
 0x40c   : > { %8920 = vmatprep.mubr.bf16.mxu1 %v11917_v55 }
 0x413   : > { %8921 = vmatmul.mubr.bf16.gmra.mrb[20].mxu1 %v4815_v60 }
 0x414   : > { %8924 = vmatprep.mubr.bf16.mxu1 %v4816_v43 }
 0x41b   : > { %8925 = vmatmul.mubr.bf16.gmra.mrb[24].mxu1 %v4817_v58 }
 0x41c   : > { %8928 = vmatprep.mubr.bf16.mxu1 %v4818_v19 }
 0x423   : > { %8929 = vmatmul.mubr.bf16.gmra.mrb[28].mxu1 %v4819_v50 }
 0x424   : > { %8932 = vmatprep.mubr.bf16.mxu1 %v4820_v42 }
 0x42b   : > { %8933 = vmatmul.mubr.bf16.gmra.mrb[32].mxu1 %v4821_v22 }
 0x42c   : > { %8952 = vmatprep.mubr.bf16.mxu1 %v11869_v2  ;;  %v10032_v2 = vld [vmem:[%s12183_s3 + $0x118] sm:$0xff]  }
 0x433   : > { %8953 = vmatmul.mubr.bf16.vlgmr.msra.gmra.mrb[0].mxu1 %v11874_v38  ;;  %v10033_v38 = vld [vmem:[%s12183_s3 + $0x120] sm:$0xff]  }
 0x434   : > { %8956 = vmatprep.mubr.bf16.mxu1 %v11881_v54  ;;  %8989 = vmatpush3.bf16.msra.mxu1 %v10029_v47  ;;  %v5134_v54 = vld [vmem:[#allocation3 + $0x122] sm:$0xff]  ;;  %v10040_v47 = vld [vmem:[%s12183_s3 + $0x158] sm:$0xff]  }
 0x435   : > { %8990 = vmatprep.subr.bf16.mxu1 %v10030_v7  ;;  %v5153_v59 = vpack.c.bf16 %v5135_v45, %v5134_v54  ;;  %v5463_v45 = vld [vmem:[#allocation3 + $0x10b] sm:$0xff] }
 0x438   : > { %8991 = vmatpush3.bf16.msra.mxu1 %v10030_v7 }
 0x439   : > { %8992 = vmatprep.subr.bf16.mxu1 %v10031_v52 }
 0x43b   : > { %8957 = vmatmul.mubr.bf16.gmra.mrb[4].mxu1 %v11886_v36  ;;  %v5433_v36 = vld [vmem:[#allocation3 + $0x1b] sm:$0xff] }
 0x43c   : > { %8960 = vmatprep.mubr.bf16.mxu1 %v11893_v9  ;;  %8993 = vmatpush3.bf16.msra.mxu1 %v10031_v52  ;;  %v5468_v4 = vpack.c.bf16 %v5433_v36, %v5432_v15  ;;  %v5434_v9 = vld [vmem:[#allocation3 + $0x23] sm:$0xff]  ;;  %v5456_v52 = vld [vmem:[#allocation3 + $0xd3] sm:$0xff]  ;;  %v10071_v15 = vpack.c.bf16 %v3989_v48, %v3988_v41 }
 0x43d   : > { %8994 = vmatprep.subr.bf16.mxu1 %v10032_v2  ;;  %v5469_v56 = vpack.c.bf16 %v5435_v30, %v5434_v9  ;;  %v5462_v36 = vld [vmem:[#allocation3 + $0x103] sm:$0xff]  ;;  %v5764_v30 = vld [vmem:[#allocation3 + $0x14] sm:$0xff] }
 0x43e   : > { %v10046_v41 = vld [vmem:[%s12183_s3 + $0x188] sm:$0xff]  }
 0x440   : > { %8995 = vmatpush3.bf16.msra.mxu1 %v10032_v2  ;;  %v5480_v2 = vpack.c.bf16 %v5457_v44, %v5456_v52  ;;  %v5791_v44 = vld [vmem:[#allocation3 + $0xec] sm:$0xff]  ;;  %v5790_v52 = vld [vmem:[#allocation3 + $0xe4] sm:$0xff] }
 0x441   : > { %8996 = vmatprep.subr.bf16.mxu1 %v10033_v38 }
 0x443   : > { %8961 = vmatmul.mubr.bf16.gmra.mrb[8].mxu1 %v11898_v25  ;;  %v5436_v25 = vld [vmem:[#allocation3 + $0x33] sm:$0xff] }
 0x444   : > { %8964 = vmatprep.mubr.bf16.mxu1 %v11905_v63  ;;  %8997 = vmatpush3.bf16.msra.mxu1 %v10033_v38  ;;  %v5470_v20 = vpack.c.bf16 %v5437_v13, %v5436_v25  ;;  %v5438_v63 = vld [vmem:[#allocation3 + $0x43] sm:$0xff]  ;;  %v5459_v38 = vld [vmem:[#allocation3 + $0xeb] sm:$0xff] }
 0x445   : > { %8998 = vmatprep.subr.bf16.mxu1 %v10034_v17  ;;  %v5471_v37 = vpack.c.bf16 %v5439_v0, %v5438_v63  ;;  %v5765_v13 = vld [vmem:[#allocation3 + $0x1c] sm:$0xff]  ;;  %v5766_v25 = vld [vmem:[#allocation3 + $0x24] sm:$0xff]  ;;  %v10048_v0 = vld [vmem:[%s12183_s3 + $0x198] sm:$0xff]  }
 0x446   : > { %v5800_v9 = vpack.c.bf16 %v5765_v13, %v5764_v30  ;;  %v11989_v28 = vpack.c.bf16 %v5767_v5, %v5766_v25  ;;  %v10049_v63 = vld [vmem:[%s12183_s3 + $0x1a0] sm:$0xff]   ;;  %v10055_v30 = vld [vmem:[%s12183_s3 + $0x1d0] sm:$0xff]   ;;  %v10056_v13 = vld [vmem:[%s12183_s3 + $0x1d8] sm:$0xff]  }
 0x447   : > { %v10059_v5 = vld [vmem:[%s12183_s3 + $0x1f0] sm:$0xff]   ;;  %v6130_v25 = vld [vmem:[#allocation3 + $0x134] sm:$0xff] }
 0x448   : > { %8999 = vmatpush3.bf16.msra.mxu1 %v10034_v17  ;;  %v5461_v17 = vld [vmem:[#allocation3 + $0xfb] sm:$0xff] }
 0x449   : > { %9000 = vmatprep.subr.bf16.mxu1 %v10035_v8 }
 0x44b   : > { %8965 = vmatmul.mubr.bf16.gmra.mrb[12].mxu1 %v11910_v57  ;;  %v5440_v57 = vld [vmem:[#allocation3 + $0x53] sm:$0xff] }
 0x44c   : > { %8968 = vmatprep.mubr.bf16.mxu1 %v4813_v53  ;;  %9001 = vmatpush3.bf16.msra.mxu1 %v10035_v8  ;;  %v5472_v32 = vpack.c.bf16 %v5441_v29, %v5440_v57  ;;  %v5442_v53 = vld [vmem:[#allocation3 + $0x63] sm:$0xff]  ;;  %v5776_v57 = vld [vmem:[#allocation3 + $0x74] sm:$0xff] }
 0x44d   : > { %9002 = vmatprep.subr.bf16.mxu1 %v10036_v40  ;;  %v5458_v8 = vld [vmem:[#allocation3 + $0xe3] sm:$0xff] }
 0x450   : > { %9003 = vmatpush3.bf16.msra.mxu1 %v10036_v40  ;;  %v5481_v40 = vpack.c.bf16 %v5459_v38, %v5458_v8  ;;  %v5796_v8 = vld [vmem:[#allocation3 + $0x114] sm:$0xff] }
 0x451   : > { %9040 = vmatprep.subr.bf16.mxu1 %v10037_v6 }
 0x453   : > { %8969 = vmatmul.mubr.bf16.gmra.mrb[16].mxu1 %v11917_v55  ;;  %v5473_v55 = vpack.c.bf16 %v5443_v10, %v5442_v53  ;;  %v10050_v10 = vld [vmem:[%s12183_s3 + $0x1a8] sm:$0xff]   ;;  %v10051_v53 = vld [vmem:[%s12183_s3 + $0x1b0] sm:$0xff]  }
 0x454   : > { %8972 = vmatprep.mubr.bf16.mxu1 %v4815_v60  ;;  %v5447_v60 = vld [vmem:[#allocation3 + $0x8b] sm:$0xff] }
 0x455   : > { %v5475_v51 = vpack.c.bf16 %v5447_v60, %v5446_v16  ;;  %v10052_v60 = vld [vmem:[%s12183_s3 + $0x1b8] sm:$0xff]   ;;  %v10053_v16 = vld [vmem:[%s12183_s3 + $0x1c0] sm:$0xff]  }
 0x45b   : > { %8973 = vmatmul.mubr.bf16.gmra.mrb[20].mxu1 %v4816_v43  ;;  %v5449_v43 = vld [vmem:[#allocation3 + $0x9b] sm:$0xff] }
 0x45c   : > { %8976 = vmatprep.mubr.bf16.mxu1 %v4817_v58  ;;  %v5476_v58 = vpack.c.bf16 %v5449_v43, %v5448_v18  ;;  %v5784_v18 = vld [vmem:[#allocation3 + $0xb4] sm:$0xff] }
 0x463   : > { %8977 = vmatmul.mubr.bf16.gmra.mrb[24].mxu1 %v4818_v19  ;;  %v10045_v19 = vld [vmem:[%s12183_s3 + $0x180] sm:$0xff]  }
 0x464   : > { %8980 = vmatprep.mubr.bf16.mxu1 %v4819_v50  ;;  %v5452_v50 = vld [vmem:[#allocation3 + $0xb3] sm:$0xff] }
 0x46b   : > { %8981 = vmatmul.mubr.bf16.gmra.mrb[28].mxu1 %v4820_v42  ;;  %v5478_v42 = vpack.c.bf16 %v5453_v35, %v5452_v50  ;;  %v5787_v35 = vld [vmem:[#allocation3 + $0xcc] sm:$0xff]  ;;  %v5786_v50 = vld [vmem:[#allocation3 + $0xc4] sm:$0xff] }
 0x46c   : > { %8984 = vmatprep.mubr.bf16.mxu1 %v4821_v22  ;;  %v5454_v22 = vld [vmem:[#allocation3 + $0xc3] sm:$0xff] }
 0x46d   : > { %v5479_v7 = vpack.c.bf16 %v5455_v39, %v5454_v22  ;;  %v5792_v22 = vld [vmem:[#allocation3 + $0xf4] sm:$0xff] }
 0x473   : > { %8985 = vmatmul.mubr.bf16.gmra.mrb[32].mxu1 %v5153_v59  ;;  %v5483_v59 = vpack.c.bf16 %v5463_v45, %v5462_v36  ;;  %v5798_v36 = vld [vmem:[#allocation3 + $0x124] sm:$0xff] }
 0x474   : > { %9004 = vmatprep.mubr.bf16.mxu1 %v5468_v4  ;;  %v5466_v4 = vld [vmem:[#allocation3 + $0x123] sm:$0xff] }
 0x475   : > { %v10074_v34 = vpack.c.bf16 %v3991_v21, %v5466_v4  ;;  %v5772_v21 = vld [vmem:[#allocation3 + $0x54] sm:$0xff]  ;;  %v10054_v4 = vld [vmem:[%s12183_s3 + $0x1c8] sm:$0xff]  }
 0x47b   : > { %9005 = vmatmul.mubr.bf16.vlgmr.msra.gmra.mrb[0].mxu1 %v5469_v56  ;;  %v5768_v56 = vld [vmem:[#allocation3 + $0x34] sm:$0xff] }
 0x47c   : > { %9008 = vmatprep.mubr.bf16.mxu1 %v5470_v20  ;;  %9041 = vmatpush3.bf16.msra.mxu1 %v10037_v6  ;;  %v5460_v6 = vld [vmem:[#allocation3 + $0xf3] sm:$0xff]  ;;  %v11994_v48 = vpack.c.bf16 %v5769_v12, %v5768_v56  ;;  %v5770_v20 = vld [vmem:[#allocation3 + $0x44] sm:$0xff] }
 0x47d   : > { %9042 = vmatprep.subr.bf16.mxu1 %v10038_v23  ;;  %v5482_v54 = vpack.c.bf16 %v5461_v17, %v5460_v6  ;;  %v5795_v17 = vld [vmem:[#allocation3 + $0x10c] sm:$0xff]  ;;  %v5794_v6 = vld [vmem:[#allocation3 + $0x104] sm:$0xff]  ;;  %v10061_v12 = vld [vmem:[%s12183_s3 + $0x200] sm:$0xff]  }
 0x47e   : > { %v10060_v56 = vld [vmem:[%s12183_s3 + $0x1f8] sm:$0xff]  }
 0x480   : > { %9043 = vmatpush3.bf16.msra.mxu1 %v10038_v23  ;;  %v5773_v23 = vld [vmem:[#allocation3 + $0x5c] sm:$0xff] }
 0x481   : > { %9044 = vmatprep.subr.bf16.mxu1 %v10039_v24  ;;  %v12006_v29 = vpack.c.bf16 %v5773_v23, %v5772_v21  ;;  %v6430_v21 = vld [vmem:[#allocation3 + $0x35] sm:$0xff]  ;;  %v6431_v23 = vld [vmem:[#allocation3 + $0x3d] sm:$0xff] }
 0x483   : > { %9009 = vmatmul.mubr.bf16.gmra.mrb[4].mxu1 %v5471_v37  ;;  %v5775_v37 = vld [vmem:[#allocation3 + $0x6c] sm:$0xff] }
 0x484   : > { %9012 = vmatprep.mubr.bf16.mxu1 %v5472_v32  ;;  %9045 = vmatpush3.bf16.msra.mxu1 %v10039_v24  ;;  %v12001_v24 = vpack.c.bf16 %v5771_v62, %v5770_v20  ;;  %v5774_v32 = vld [vmem:[#allocation3 + $0x64] sm:$0xff]  ;;  %v6433_v20 = vld [vmem:[#allocation3 + $0x4d] sm:$0xff] }
 0x485   : > { %9046 = vmatprep.subr.bf16.mxu1 %v10040_v47 }
 0x488   : > { %9047 = vmatpush3.bf16.msra.mxu1 %v10040_v47  ;;  %v5777_v47 = vld [vmem:[#allocation3 + $0x7c] sm:$0xff] }
 0x489   : > { %9048 = vmatprep.subr.bf16.mxu1 %v10041_v61  ;;  %v12018_v26 = vpack.c.bf16 %v5777_v47, %v5776_v57  ;;  %v6434_v57 = vld [vmem:[#allocation3 + $0x55] sm:$0xff]  ;;  %v6435_v47 = vld [vmem:[#allocation3 + $0x5d] sm:$0xff] }
 0x48b   : > { %9013 = vmatmul.mubr.bf16.gmra.mrb[8].mxu1 %v5473_v55  ;;  %v5779_v55 = vld [vmem:[#allocation3 + $0x8c] sm:$0xff] }
 0x48c   : > { %9016 = vmatprep.mubr.bf16.mxu1 %v5474_v27  ;;  %9049 = vmatpush3.bf16.msra.mxu1 %v10041_v61  ;;  %v12013_v61 = vpack.c.bf16 %v5775_v37, %v5774_v32  ;;  %v5778_v27 = vld [vmem:[#allocation3 + $0x84] sm:$0xff]  ;;  %v6437_v32 = vld [vmem:[#allocation3 + $0x6d] sm:$0xff] }
 0x48d   : > { %9050 = vmatprep.subr.bf16.mxu1 %v10042_v49  ;;  %v10063_v37 = vld [vmem:[%s12183_s3 + $0x210] sm:$0xff]  }
 0x490   : > { %9051 = vmatpush3.bf16.msra.mxu1 %v10042_v49  ;;  %v5781_v49 = vld [vmem:[#allocation3 + $0x9c] sm:$0xff] }
 0x491   : > { %9052 = vmatprep.subr.bf16.mxu1 %v10043_v14  ;;  %v12030_v43 = vpack.c.bf16 %v5781_v49, %v5780_v46  ;;  %v6438_v46 = vld [vmem:[#allocation3 + $0x75] sm:$0xff]  ;;  %v6439_v49 = vld [vmem:[#allocation3 + $0x7d] sm:$0xff] }
 0x493   : > { %9017 = vmatmul.mubr.bf16.gmra.mrb[12].mxu1 %v5475_v51  ;;  %v5783_v51 = vld [vmem:[#allocation3 + $0xac] sm:$0xff] }
 0x494   : > { %9020 = vmatprep.mubr.bf16.mxu1 %v5476_v58  ;;  %9053 = vmatpush3.bf16.msra.mxu1 %v10043_v14  ;;  %v12025_v14 = vpack.c.bf16 %v5779_v55, %v5778_v27  ;;  %v5782_v58 = vld [vmem:[#allocation3 + $0xa4] sm:$0xff]  ;;  %v10065_v55 = vld [vmem:[%s12183_s3 + $0x220] sm:$0xff]   ;;  %v6441_v27 = vld [vmem:[#allocation3 + $0x8d] sm:$0xff] }
 0x495   : > { %9054 = vmatprep.subr.bf16.mxu1 %v10044_v1 }
 0x498   : > { %9055 = vmatpush3.bf16.msra.mxu1 %v10044_v1  ;;  %v5785_v1 = vld [vmem:[#allocation3 + $0xbc] sm:$0xff] }
 0x499   : > { %9092 = vmatprep.subr.bf16.mxu1 %v10045_v19  ;;  %v12037_v11 = vpack.c.bf16 %v5785_v1, %v5784_v18  ;;  %v6442_v18 = vld [vmem:[#allocation3 + $0x95] sm:$0xff]  ;;  %v6443_v1 = vld [vmem:[#allocation3 + $0x9d] sm:$0xff] }
 0x49b   : > { %9021 = vmatmul.mubr.bf16.gmra.mrb[16].mxu1 %v5477_v31  ;;  %v5789_v31 = vld [vmem:[#allocation3 + $0xdc] sm:$0xff] }
 0x49c   : > { %9024 = vmatprep.mubr.bf16.mxu1 %v5478_v42  ;;  %v5811_v42 = vpack.c.bf16 %v5787_v35, %v5786_v50  ;;  %v5812_v39 = vpack.c.bf16 %v5789_v31, %v5788_v3  ;;  %v10068_v35 = vld [vmem:[%s12183_s3 + $0x238] sm:$0xff]   ;;  %v6447_v50 = vld [vmem:[#allocation3 + $0xbd] sm:$0xff] }
 0x49d   : > { %v6446_v31 = vld [vmem:[#allocation3 + $0xb5] sm:$0xff] }
 0x4a3   : > { %9025 = vmatmul.mubr.bf16.gmra.mrb[20].mxu1 %v5479_v7  ;;  %v5793_v7 = vld [vmem:[#allocation3 + $0xfc] sm:$0xff] }
 0x4a4   : > { %9028 = vmatprep.mubr.bf16.mxu1 %v5480_v2  ;;  %v5813_v2 = vpack.c.bf16 %v5791_v44, %v5790_v52  ;;  %v5814_v38 = vpack.c.bf16 %v5793_v7, %v5792_v22  ;;  %v6448_v44 = vld [vmem:[#allocation3 + $0xc5] sm:$0xff]  ;;  %v6450_v7 = vld [vmem:[#allocation3 + $0xd5] sm:$0xff]  ;;  %v6451_v52 = vld [vmem:[#allocation3 + $0xdd] sm:$0xff] }
 0x4ab   : > { %9029 = vmatmul.mubr.bf16.gmra.mrb[24].mxu1 %v5481_v40  ;;  %v5797_v40 = vld [vmem:[#allocation3 + $0x11c] sm:$0xff] }
 0x4ac   : > { %9032 = vmatprep.mubr.bf16.mxu1 %v5482_v54  ;;  %v5815_v54 = vpack.c.bf16 %v5795_v17, %v5794_v6  ;;  %v5816_v45 = vpack.c.bf16 %v5797_v40, %v5796_v8  ;;  %v6452_v17 = vld [vmem:[#allocation3 + $0xe5] sm:$0xff]  ;;  %v6454_v40 = vld [vmem:[#allocation3 + $0xf5] sm:$0xff]  ;;  %v6455_v6 = vld [vmem:[#allocation3 + $0xfd] sm:$0xff] }
 0x4b3   : > { %9033 = vmatmul.mubr.bf16.gmra.mrb[28].mxu1 %v5483_v59  ;;  %v5799_v59 = vld [vmem:[#allocation3 + $0x12c] sm:$0xff] }
 0x4b4   : > { %10072 = vmatprep.mubr.msk.bf16.mxu1 %vm10070_vm8, %v10071_v15  ;;  %v5817_v15 = vpack.c.bf16 %v5799_v59, %v5798_v36  ;;  %v6456_v36 = vld [vmem:[#allocation3 + $0x105] sm:$0xff] }
 0x4bb   : > { %10075 = vmatmul.mubr.msk.bf16.gmra.mrb[32].mxu1 %vm10073_vm9, %v10074_v34  ;;  %v10058_v34 = vld [vmem:[%s12183_s3 + $0x1e8] sm:$0xff]  }
 0x4bc   : > { %9056 = vmatprep.mubr.bf16.mxu1 %v5800_v9  ;;  %v10057_v9 = vld [vmem:[%s12183_s3 + $0x1e0] sm:$0xff]  }
 0x4c3   : > { %9057 = vmatmul.mubr.bf16.vlgmr.msra.gmra.mrb[0].mxu1 %v11989_v28 }
 0x4c4   : > { %9060 = vmatprep.mubr.bf16.mxu1 %v11994_v48  ;;  %9093 = vmatpush3.bf16.msra.mxu1 %v10045_v19  ;;  %v5809_v19 = vpack.c.bf16 %v5783_v51, %v5782_v58  ;;  %v10067_v51 = vld [vmem:[%s12183_s3 + $0x230] sm:$0xff]  }
 0x4c5   : > { %9094 = vmatprep.subr.bf16.mxu1 %v10046_v41  ;;  %v6445_v58 = vld [vmem:[#allocation3 + $0xad] sm:$0xff] }
 0x4c8   : > { %9095 = vmatpush3.bf16.msra.mxu1 %v10046_v41 }
 0x4c9   : > { %9096 = vmatprep.subr.bf16.mxu1 %v10047_v33 }
 0x4cb   : > { %9061 = vmatmul.mubr.bf16.gmra.mrb[4].mxu1 %v12001_v24 }
 0x4cc   : > { %9064 = vmatprep.mubr.bf16.mxu1 %v12006_v29  ;;  %9097 = vmatpush3.bf16.msra.mxu1 %v10047_v33  ;;  %v6428_v33 = vld [vmem:[#allocation3 + $0x25] sm:$0xff] }
 0x4cd   : > { %9098 = vmatprep.subr.bf16.mxu1 %v10048_v0 }
 0x4d0   : > { %9099 = vmatpush3.bf16.msra.mxu1 %v10048_v0  ;;  %v6432_v0 = vld [vmem:[#allocation3 + $0x45] sm:$0xff] }
 0x4d1   : > { %9100 = vmatprep.subr.bf16.mxu1 %v10049_v63 }
 0x4d3   : > { %9065 = vmatmul.mubr.bf16.gmra.mrb[8].mxu1 %v12013_v61 }
 0x4d4   : > { %9068 = vmatprep.mubr.bf16.mxu1 %v12018_v26  ;;  %9101 = vmatpush3.bf16.msra.mxu1 %v10049_v63  ;;  %v6466_v63 = vpack.c.bf16 %v6433_v20, %v6432_v0  ;;  %v6767_v0 = vld [vmem:[#allocation3 + $0x5e] sm:$0xff] }
 0x4d5   : > { %9102 = vmatprep.subr.bf16.mxu1 %v10050_v10 }
 0x4d8   : > { %9103 = vmatpush3.bf16.msra.mxu1 %v10050_v10  ;;  %v6436_v10 = vld [vmem:[#allocation3 + $0x65] sm:$0xff] }
 0x4d9   : > { %9104 = vmatprep.subr.bf16.mxu1 %v10051_v53 }
 0x4db   : > { %9069 = vmatmul.mubr.bf16.gmra.mrb[12].mxu1 %v12025_v14 }
 0x4dc   : > { %9072 = vmatprep.mubr.bf16.mxu1 %v12030_v43  ;;  %9105 = vmatpush3.bf16.msra.mxu1 %v10051_v53  ;;  %v6468_v53 = vpack.c.bf16 %v6437_v32, %v6436_v10  ;;  %v6771_v32 = vld [vmem:[#allocation3 + $0x7e] sm:$0xff] }
 0x4dd   : > { %9106 = vmatprep.subr.bf16.mxu1 %v10052_v60 }
 0x4e0   : > { %9107 = vmatpush3.bf16.msra.mxu1 %v10052_v60  ;;  %v6440_v60 = vld [vmem:[#allocation3 + $0x85] sm:$0xff] }
 0x4e1   : > { %9144 = vmatprep.subr.bf16.mxu1 %v10053_v16 }
 0x4e3   : > { %9073 = vmatmul.mubr.bf16.gmra.mrb[16].mxu1 %v5809_v19 }
 0x4e4   : > { %9076 = vmatprep.mubr.bf16.mxu1 %v12037_v11 }
 0x4eb   : > { %9077 = vmatmul.mubr.bf16.gmra.mrb[20].mxu1 %v5811_v42 }
 0x4ec   : > { %9080 = vmatprep.mubr.bf16.mxu1 %v5812_v39 }
 0x4f3   : > { %9081 = vmatmul.mubr.bf16.gmra.mrb[24].mxu1 %v5813_v2 }
 0x4f4   : > { %9084 = vmatprep.mubr.bf16.mxu1 %v5814_v38 }
 0x4fb   : > { %9085 = vmatmul.mubr.bf16.gmra.mrb[28].mxu1 %v5815_v54 }
 0x4fc   : > { %9088 = vmatprep.mubr.bf16.mxu1 %v5816_v45 }
 0x503   : > { %9089 = vmatmul.mubr.bf16.gmra.mrb[32].mxu1 %v5817_v15 }
 0x504   : > { %9108 = vmatprep.mubr.bf16.mxu1 %v11989_v28  ;;  %v6131_v28 = vld [vmem:[#allocation3 + $0x13c] sm:$0xff] }
 0x505   : > { %v6149_v41 = vpack.c.bf16 %v6131_v28, %v6130_v25  ;;  %v6761_v25 = vld [vmem:[#allocation3 + $0x2e] sm:$0xff]  ;;  %v6760_v28 = vld [vmem:[#allocation3 + $0x26] sm:$0xff] }
 0x50b   : > { %9109 = vmatmul.mubr.bf16.vlgmr.msra.gmra.mrb[0].mxu1 %v11994_v48  ;;  %v6429_v48 = vld [vmem:[#allocation3 + $0x2d] sm:$0xff] }
 0x50c   : > { %9112 = vmatprep.mubr.bf16.mxu1 %v12001_v24  ;;  %9145 = vmatpush3.bf16.msra.mxu1 %v10053_v16  ;;  %v6464_v62 = vpack.c.bf16 %v6429_v48, %v6428_v33  ;;  %v6465_v24 = vpack.c.bf16 %v6431_v23, %v6430_v21  ;;  %v6470_v16 = vpack.c.bf16 %v6441_v27, %v6440_v60  ;;  %v6762_v48 = vld [vmem:[#allocation3 + $0x36] sm:$0xff]  ;;  %v6763_v33 = vld [vmem:[#allocation3 + $0x3e] sm:$0xff]  ;;  %v6764_v23 = vld [vmem:[#allocation3 + $0x46] sm:$0xff] }
 0x50d   : > { %9146 = vmatprep.subr.bf16.mxu1 %v10054_v4  ;;  %v6797_v21 = vpack.c.bf16 %v6763_v33, %v6762_v48 }
 0x510   : > { %9147 = vmatpush3.bf16.msra.mxu1 %v10054_v4  ;;  %v6459_v4 = vld [vmem:[#allocation3 + $0x11d] sm:$0xff] }
 0x511   : > { %9148 = vmatprep.subr.bf16.mxu1 %v10055_v30 }
 0x513   : > { %9113 = vmatmul.mubr.bf16.gmra.mrb[4].mxu1 %v12006_v29  ;;  %v10062_v29 = vld [vmem:[%s12183_s3 + $0x208] sm:$0xff]  }
 0x514   : > { %9116 = vmatprep.mubr.bf16.mxu1 %v12013_v61  ;;  %9149 = vmatpush3.bf16.msra.mxu1 %v10055_v30  ;;  %v6467_v61 = vpack.c.bf16 %v6435_v47, %v6434_v57  ;;  %v6460_v30 = vld [vmem:[#allocation3 + $0x125] sm:$0xff]  ;;  %v6770_v47 = vld [vmem:[#allocation3 + $0x76] sm:$0xff] }
 0x515   : > { %9150 = vmatprep.subr.bf16.mxu1 %v10056_v13  ;;  %v6801_v10 = vpack.c.bf16 %v6771_v32, %v6770_v47  ;;  %v7139_v47 = vld [vmem:[#allocation2 + $0x33] sm:$0xff] }
 0x518   : > { %9151 = vmatpush3.bf16.msra.mxu1 %v10056_v13  ;;  %v6461_v13 = vld [vmem:[#allocation3 + $0x12d] sm:$0xff] }
 0x519   : > { %9152 = vmatprep.subr.bf16.mxu1 %v10057_v9 }
 0x51b   : > { %9117 = vmatmul.mubr.bf16.gmra.mrb[8].mxu1 %v12018_v26  ;;  %v10064_v26 = vld [vmem:[%s12183_s3 + $0x218] sm:$0xff]  }
 0x51c   : > { %9120 = vmatprep.mubr.bf16.mxu1 %v12025_v14  ;;  %9153 = vmatpush3.bf16.msra.mxu1 %v10057_v9  ;;  %v6469_v14 = vpack.c.bf16 %v6439_v49, %v6438_v46  ;;  %v6775_v46 = vld [vmem:[#allocation3 + $0x9e] sm:$0xff]  ;;  %v6777_v49 = vld [vmem:[#allocation3 + $0xae] sm:$0xff] }
 0x51d   : > { %9154 = vmatprep.subr.bf16.mxu1 %v10058_v34 }
 0x520   : > { %9155 = vmatpush3.bf16.msra.mxu1 %v10058_v34  ;;  %v6480_v34 = vpack.c.bf16 %v6461_v13, %v6460_v30 }
 0x521   : > { %9156 = vmatprep.subr.bf16.mxu1 %v10059_v5 }
 0x523   : > { %9121 = vmatmul.mubr.bf16.gmra.mrb[12].mxu1 %v12030_v43  ;;  %v10066_v43 = vld [vmem:[%s12183_s3 + $0x228] sm:$0xff]  }
 0x524   : > { %9124 = vmatprep.mubr.bf16.mxu1 %v5809_v19  ;;  %9157 = vmatpush3.bf16.msra.mxu1 %v10059_v5  ;;  %v6471_v19 = vpack.c.bf16 %v6443_v1, %v6442_v18  ;;  %v6462_v5 = vld [vmem:[#allocation3 + $0x135] sm:$0xff]  ;;  %v6780_v1 = vld [vmem:[#allocation3 + $0xc6] sm:$0xff] }
 0x525   : > { %9158 = vmatprep.subr.bf16.mxu1 %v10060_v56 }
 0x528   : > { %9159 = vmatpush3.bf16.msra.mxu1 %v10060_v56  ;;  %v6463_v56 = vld [vmem:[#allocation3 + $0x13d] sm:$0xff] }
 0x529   : > { %9196 = vmatprep.subr.bf16.mxu1 %v10061_v12 }
 0x52b   : > { %9125 = vmatmul.mubr.bf16.gmra.mrb[16].mxu1 %v12037_v11  ;;  %v6444_v11 = vld [vmem:[#allocation3 + $0xa5] sm:$0xff] }
 0x52c   : > { %9128 = vmatprep.mubr.bf16.mxu1 %v5811_v42  ;;  %v6472_v3 = vpack.c.bf16 %v6445_v58, %v6444_v11  ;;  %v6449_v42 = vld [vmem:[#allocation3 + $0xcd] sm:$0xff]  ;;  %v6783_v11 = vld [vmem:[#allocation3 + $0xde] sm:$0xff] }
 0x52d   : > { %v6474_v22 = vpack.c.bf16 %v6449_v42, %v6448_v44  ;;  %v6786_v42 = vld [vmem:[#allocation3 + $0xf6] sm:$0xff]  ;;  %v6789_v44 = vld [vmem:[#allocation3 + $0x10e] sm:$0xff] }
 0x533   : > { %9129 = vmatmul.mubr.bf16.gmra.mrb[20].mxu1 %v5812_v39  ;;  %v6473_v39 = vpack.c.bf16 %v6447_v50, %v6446_v31  ;;  %v6784_v31 = vld [vmem:[#allocation3 + $0xe6] sm:$0xff] }
 0x534   : > { %9132 = vmatprep.mubr.bf16.mxu1 %v5813_v2  ;;  %v6453_v2 = vld [vmem:[#allocation3 + $0xed] sm:$0xff] }
 0x535   : > { %v6476_v8 = vpack.c.bf16 %v6453_v2, %v6452_v17  ;;  %v6790_v2 = vld [vmem:[#allocation3 + $0x116] sm:$0xff]  ;;  %v6792_v17 = vld [vmem:[#allocation3 + $0x126] sm:$0xff] }
 0x53b   : > { %9133 = vmatmul.mubr.bf16.gmra.mrb[24].mxu1 %v5814_v38  ;;  %v6475_v38 = vpack.c.bf16 %v6451_v52, %v6450_v7  ;;  %v6788_v7 = vld [vmem:[#allocation3 + $0x106] sm:$0xff] }
 0x53c   : > { %9136 = vmatprep.mubr.bf16.mxu1 %v5815_v54  ;;  %v6457_v54 = vld [vmem:[#allocation3 + $0x10d] sm:$0xff]  ;;  %v6810_v52 = vpack.c.bf16 %v6789_v44, %v6788_v7 }
 0x53d   : > { %v6478_v59 = vpack.c.bf16 %v6457_v54, %v6456_v36  ;;  %v6794_v54 = vld [vmem:[#allocation3 + $0x136] sm:$0xff] }
 0x543   : > { %9137 = vmatmul.mubr.bf16.gmra.mrb[28].mxu1 %v5816_v45  ;;  %v6477_v45 = vpack.c.bf16 %v6455_v6, %v6454_v40 }
 0x544   : > { %9140 = vmatprep.mubr.bf16.mxu1 %v5817_v15  ;;  %v6458_v15 = vld [vmem:[#allocation3 + $0x115] sm:$0xff] }
 0x545   : > { %v6479_v9 = vpack.c.bf16 %v6459_v4, %v6458_v15  ;;  %v7137_v4 = vld [vmem:[#allocation2 + $0x23] sm:$0xff] }
 0x54b   : > { %9141 = vmatmul.mubr.bf16.gmra.mrb[32].mxu1 %v6149_v41  ;;  %v6796_v41 = vpack.c.bf16 %v6761_v25, %v6760_v28 }
 0x54c   : > { %9160 = vmatprep.mubr.bf16.mxu1 %v6464_v62  ;;  %v6765_v62 = vld [vmem:[#allocation3 + $0x4e] sm:$0xff] }
 0x54d   : > { %v6798_v20 = vpack.c.bf16 %v6765_v62, %v6764_v23 }
 0x553   : > { %9161 = vmatmul.mubr.bf16.vlgmr.msra.gmra.mrb[0].mxu1 %v6465_v24  ;;  %v6766_v24 = vld [vmem:[#allocation3 + $0x56] sm:$0xff] }
 0x554   : > { %9164 = vmatprep.mubr.bf16.mxu1 %v6466_v63  ;;  %9197 = vmatpush3.bf16.msra.mxu1 %v10061_v12  ;;  %v6481_v12 = vpack.c.bf16 %v6463_v56, %v6462_v5  ;;  %v6799_v63 = vpack.c.bf16 %v6767_v0, %v6766_v24  ;;  %v7138_v56 = vld [vmem:[#allocation2 + $0x2b] sm:$0xff] }
 0x555   : > { %9198 = vmatprep.subr.bf16.mxu1 %v10062_v29 }
 0x558   : > { %9199 = vmatpush3.bf16.msra.mxu1 %v10062_v29  ;;  %v6769_v29 = vld [vmem:[#allocation3 + $0x6e] sm:$0xff] }
 0x559   : > { %9200 = vmatprep.subr.bf16.mxu1 %v10063_v37 }
 0x55b   : > { %9165 = vmatmul.mubr.bf16.gmra.mrb[4].mxu1 %v6467_v61  ;;  %v6773_v61 = vld [vmem:[#allocation3 + $0x8e] sm:$0xff] }
 0x55c   : > { %9168 = vmatprep.mubr.bf16.mxu1 %v6468_v53  ;;  %9201 = vmatpush3.bf16.msra.mxu1 %v10063_v37  ;;  %v6768_v37 = vld [vmem:[#allocation3 + $0x66] sm:$0xff] }
 0x55d   : > { %9202 = vmatprep.subr.bf16.mxu1 %v10064_v26  ;;  %v6800_v57 = vpack.c.bf16 %v6769_v29, %v6768_v37 }
 0x560   : > { %9203 = vmatpush3.bf16.msra.mxu1 %v10064_v26  ;;  %v6772_v26 = vld [vmem:[#allocation3 + $0x86] sm:$0xff] }
 0x561   : > { %9204 = vmatprep.subr.bf16.mxu1 %v10065_v55  ;;  %v6802_v53 = vpack.c.bf16 %v6773_v61, %v6772_v26 }
 0x563   : > { %9169 = vmatmul.mubr.bf16.gmra.mrb[8].mxu1 %v6469_v14  ;;  %v6776_v14 = vld [vmem:[#allocation3 + $0xa6] sm:$0xff] }
 0x564   : > { %9172 = vmatprep.mubr.bf16.mxu1 %v6470_v16  ;;  %9205 = vmatpush3.bf16.msra.mxu1 %v10065_v55  ;;  %v6774_v55 = vld [vmem:[#allocation3 + $0x96] sm:$0xff]  ;;  %v6804_v60 = vpack.c.bf16 %v6777_v49, %v6776_v14  ;;  %v6779_v16 = vld [vmem:[#allocation3 + $0xbe] sm:$0xff] }
 0x565   : > { %9206 = vmatprep.subr.bf16.mxu1 %v10066_v43  ;;  %v6803_v27 = vpack.c.bf16 %v6775_v46, %v6774_v55  ;;  %v7140_v46 = vld [vmem:[#allocation2 + $0x3b] sm:$0xff] }
 0x568   : > { %9207 = vmatpush3.bf16.msra.mxu1 %v10066_v43  ;;  %v6778_v43 = vld [vmem:[#allocation3 + $0xb6] sm:$0xff] }
 0x569   : > { %9208 = vmatprep.subr.bf16.mxu1 %v10067_v51  ;;  %v6805_v18 = vpack.c.bf16 %v6779_v16, %v6778_v43 }
 0x56b   : > { %9173 = vmatmul.mubr.bf16.gmra.mrb[12].mxu1 %v6471_v19  ;;  %v6782_v19 = vld [vmem:[#allocation3 + $0xd6] sm:$0xff] }
 0x56c   : > { %9176 = vmatprep.mubr.bf16.mxu1 %v6472_v3  ;;  %9209 = vmatpush3.bf16.msra.mxu1 %v10067_v51  ;;  %v6781_v51 = vld [vmem:[#allocation3 + $0xce] sm:$0xff]  ;;  %v6807_v3 = vpack.c.bf16 %v6783_v11, %v6782_v19 }
 0x56d   : > { %9210 = vmatprep.subr.bf16.mxu1 %v10068_v35  ;;  %v6806_v58 = vpack.c.bf16 %v6781_v51, %v6780_v1 }
 0x570   : > { %9211 = vmatpush3.bf16.msra.mxu1 %v10068_v35  ;;  %v6785_v35 = vld [vmem:[#allocation3 + $0xee] sm:$0xff] }
 0x571   : > { %v6808_v50 = vpack.c.bf16 %v6785_v35, %v6784_v31  ;;  %v7143_v35 = vld [vmem:[#allocation2 + $0x53] sm:$0xff] }
 0x573   : > { %9177 = vmatmul.mubr.bf16.gmra.mrb[16].mxu1 %v6473_v39  ;;  %v6787_v39 = vld [vmem:[#allocation3 + $0xfe] sm:$0xff] }
 0x574   : > { %9180 = vmatprep.mubr.bf16.mxu1 %v6474_v22  ;;  %v6809_v22 = vpack.c.bf16 %v6787_v39, %v6786_v42 }
 0x57b   : > { %9181 = vmatmul.mubr.bf16.gmra.mrb[20].mxu1 %v6475_v38  ;;  %v6791_v38 = vld [vmem:[#allocation3 + $0x11e] sm:$0xff] }
 0x57c   : > { %9184 = vmatprep.mubr.bf16.mxu1 %v6476_v8  ;;  %v6793_v8 = vld [vmem:[#allocation3 + $0x12e] sm:$0xff]  ;;  %v6811_v40 = vpack.c.bf16 %v6791_v38, %v6790_v2 }
 0x57d   : > { %v6812_v6 = vpack.c.bf16 %v6793_v8, %v6792_v17 }
 0x583   : > { %9185 = vmatmul.mubr.bf16.gmra.mrb[24].mxu1 %v6477_v45  ;;  %v6795_v45 = vld [vmem:[#allocation3 + $0x13e] sm:$0xff] }
 0x584   : > { %9188 = vmatprep.mubr.bf16.mxu1 %v6478_v59  ;;  %v6813_v36 = vpack.c.bf16 %v6795_v45, %v6794_v54  ;;  %v12097_v59 = vld [vmem:[%s12184_s4] ss:$0 sm:$0xff]  ;;  %v7149_v45 = vld [vmem:[#allocation2 + $0x83] sm:$0xff] }
 0x58b   : > { %9189 = vmatmul.mubr.bf16.gmra.mrb[28].mxu1 %v6479_v9  ;;  %v7135_v9 = vld [vmem:[#allocation2 + $0x13] sm:$0xff] }
 0x58c   : > { %9192 = vmatprep.mubr.bf16.mxu1 %v6480_v34 }
 0x593   : > { %9193 = vmatmul.mubr.bf16.gmra.mrb[32].mxu1 %v6481_v12 }
 0x594   : > { %9212 = vmatprep.mubr.bf16.mxu1 %v6796_v41  ;;  %v7136_v41 = vld [vmem:[#allocation2 + $0x1b] sm:$0xff] }
 0x59b   : > { %9213 = vmatmul.mubr.bf16.vlgmr.msra.gmra.mrb[0].mxu1 %v6797_v21 }
 0x59c   : > { %9216 = vmatprep.mubr.bf16.mxu1 %v6798_v20 }
 0x5a3   : > { %9217 = vmatmul.mubr.bf16.gmra.mrb[4].mxu1 %v6799_v63  ;;  %v7141_v63 = vld [vmem:[#allocation2 + $0x43] sm:$0xff] }
 0x5a4   : > { %9220 = vmatprep.mubr.bf16.mxu1 %v6800_v57 }
 0x5ab   : > { %9221 = vmatmul.mubr.bf16.gmra.mrb[8].mxu1 %v6801_v10  ;;  %v7142_v10 = vld [vmem:[#allocation2 + $0x4b] sm:$0xff] }
 0x5ac   : > { %9224 = vmatprep.mubr.bf16.mxu1 %v6802_v53 }
 0x5b3   : > { %9225 = vmatmul.mubr.bf16.gmra.mrb[12].mxu1 %v6803_v27 }
 0x5b4   : > { %9228 = vmatprep.mubr.bf16.mxu1 %v6804_v60 }
 0x5bb   : > { %9229 = vmatmul.mubr.bf16.gmra.mrb[16].mxu1 %v6805_v18 }
 0x5bc   : > { %9232 = vmatprep.mubr.bf16.mxu1 %v6806_v58  ;;  %v7145_v58 = vld [vmem:[#allocation2 + $0x63] sm:$0xff] }
 0x5c3   : > { %9233 = vmatmul.mubr.bf16.gmra.mrb[20].mxu1 %v6807_v3 }
 0x5c4   : > { %9236 = vmatprep.mubr.bf16.mxu1 %v6808_v50  ;;  %v7146_v50 = vld [vmem:[#allocation2 + $0x6b] sm:$0xff] }
 0x5cb   : > { %9237 = vmatmul.mubr.bf16.gmra.mrb[24].mxu1 %v6809_v22  ;;  %v7144_v22 = vld [vmem:[#allocation2 + $0x5b] sm:$0xff] }
 0x5cc   : > { %9240 = vmatprep.mubr.bf16.mxu1 %v6810_v52 }
 0x5d3   : > { %9241 = vmatmul.mubr.bf16.gmra.mrb[28].mxu1 %v6811_v40 }
 0x5d4   : > { %9244 = vmatprep.mubr.bf16.mxu1 %v6812_v6 }
 0x5db   : > { %9245 = vmatmul.mubr.bf16.gmra.mrb[32].mxu1 %v6813_v36 }
 0x66e   : > { %v9214_v15 = vpop.f32.mrb[0].mxu1 }
 0x66f   : > { %v7101_v30 = vadd.f32 %v9214_v15, %v12097_v59  ;;  %v6913_v13 = vpop.f32.mrb[1].mxu1 }
 0x670   : > { %v7099_v34 = vadd.f32 %v12097_v59, %v6913_v13  ;;  %v9215_v5 = vpop.f32.mrb[2].mxu1 }
 0x671   : > { %v7173_v12 = vadd.f32 %v7137_v4, %v7101_v30  ;;  %v7102_v25 = vadd.f32 %v9215_v5, %v12097_v59  ;;  %v6916_v28 = vpop.f32.mrb[3].mxu1  ;;  %v7147_v4 = vld [vmem:[#allocation2 + $0x73] sm:$0xff] }
 0x672   : > { %v7171_v48 = vadd.f32 %v7135_v9, %v7099_v34  ;;  %v7100_v33 = vadd.f32 %v12097_v59, %v6916_v28  ;;  %v7150_v9 = vld [vmem:[#allocation2 + $0x8b] sm:$0xff] }
 0x673   : > { %v7209_v62 = vmax.f32 %v7173_v12, 0.0  ;;  %v7174_v21 = vadd.f32 %v7138_v56, %v7102_v25  ;;  %v7148_v12 = vld [vmem:[#allocation2 + $0x7b] sm:$0xff] }
 0x674   : > { %v7207_v23 = vmax.f32 %v7171_v48, 0.0  ;;  %v7172_v20 = vadd.f32 %v7136_v41, %v7100_v33 }
 0x675   : > { %7245 = vst [vmem:[%s12106_s23 + $0x10] sm:$0xff] %v7209_v62  ;;  %v7210_v24 = vmax.f32 %v7174_v21, 0.0 }
 0x676   : > { %7243 = vst [vmem:[%s12106_s23] sm:$0xff] %v7207_v23  ;;  %v7208_v0 = vmax.f32 %v7172_v20, 0.0  ;;  %v9218_v29 = vpop.f32.mrb[4].mxu1 }
 0x677   : > { %7246 = vst [vmem:[%s12106_s23 + $0x18] sm:$0xff] %v7210_v24  ;;  %v7105_v37 = vadd.f32 %v9218_v29, %v12097_v59  ;;  %v6929_v57 = vpop.f32.mrb[5].mxu1  ;;  %v7153_v24 = vld [vmem:[#allocation2 + $0xa3] sm:$0xff] }
 0x678   : > { %7244 = vst [vmem:[%s12106_s23 + $0x8] sm:$0xff] %v7208_v0  ;;  %v7103_v32 = vadd.f32 %v12097_v59, %v6929_v57  ;;  %v9219_v61 = vpop.f32.mrb[6].mxu1 }
 0x679   : > { %v7177_v26 = vadd.f32 %v7141_v63, %v7105_v37  ;;  %v7106_v53 = vadd.f32 %v9219_v61, %v12097_v59  ;;  %v6932_v55 = vpop.f32.mrb[7].mxu1  ;;  %v7151_v63 = vld [vmem:[#allocation2 + $0x93] sm:$0xff] }
 0x67a   : > { %v7175_v49 = vadd.f32 %v7139_v47, %v7103_v32  ;;  %v7104_v27 = vadd.f32 %v12097_v59, %v6932_v55  ;;  %v7154_v47 = vld [vmem:[#allocation2 + $0xab] sm:$0xff] }
 0x67b   : > { %v7213_v14 = vmax.f32 %v7177_v26, 0.0  ;;  %v7178_v60 = vadd.f32 %v7142_v10, %v7106_v53  ;;  %v7152_v26 = vld [vmem:[#allocation2 + $0x9b] sm:$0xff] }
 0x67c   : > { %v7211_v43 = vmax.f32 %v7175_v49, 0.0  ;;  %v7176_v16 = vadd.f32 %v7140_v46, %v7104_v27 }
 0x67d   : > { %7249 = vst [vmem:[%s12106_s23 + $0x30] sm:$0xff] %v7213_v14  ;;  %v7214_v51 = vmax.f32 %v7178_v60, 0.0 }
 0x67e   : > { %7247 = vst [vmem:[%s12106_s23 + $0x20] sm:$0xff] %v7211_v43  ;;  %v7212_v18 = vmax.f32 %v7176_v16, 0.0  ;;  %v9222_v1 = vpop.f32.mrb[8].mxu1 }
 0x67f   : > { %7250 = vst [vmem:[%s12106_s23 + $0x38] sm:$0xff] %v7214_v51  ;;  %v7109_v19 = vadd.f32 %v9222_v1, %v12097_v59  ;;  %v6945_v11 = vpop.f32.mrb[9].mxu1  ;;  %v7157_v51 = vld [vmem:[#allocation2 + $0xc3] sm:$0xff] }
 0x680   : > { %7248 = vst [vmem:[%s12106_s23 + $0x28] sm:$0xff] %v7212_v18  ;;  %v7107_v3 = vadd.f32 %v12097_v59, %v6945_v11  ;;  %v9223_v31 = vpop.f32.mrb[10].mxu1 }
 0x681   : > { %v7181_v42 = vadd.f32 %v7145_v58, %v7109_v19  ;;  %v7110_v39 = vadd.f32 %v9223_v31, %v12097_v59  ;;  %v6948_v44 = vpop.f32.mrb[11].mxu1  ;;  %v7155_v58 = vld [vmem:[#allocation2 + $0xb3] sm:$0xff] }
 0x682   : > { %v7179_v7 = vadd.f32 %v7143_v35, %v7107_v3  ;;  %v7108_v52 = vadd.f32 %v12097_v59, %v6948_v44  ;;  %v7158_v35 = vld [vmem:[#allocation2 + $0xcb] sm:$0xff] }
 0x683   : > { %v7217_v2 = vmax.f32 %v7181_v42, 0.0  ;;  %v7182_v38 = vadd.f32 %v7146_v50, %v7110_v39  ;;  %v7156_v42 = vld [vmem:[#allocation2 + $0xbb] sm:$0xff] }
 0x684   : > { %v7215_v17 = vmax.f32 %v7179_v7, 0.0  ;;  %v7180_v8 = vadd.f32 %v7144_v22, %v7108_v52 }
 0x685   : > { %7253 = vst [vmem:[%s12106_s23 + $0x50] sm:$0xff] %v7217_v2  ;;  %v7218_v40 = vmax.f32 %v7182_v38, 0.0 }
 0x686   : > { %7251 = vst [vmem:[%s12106_s23 + $0x40] sm:$0xff] %v7215_v17  ;;  %v7216_v6 = vmax.f32 %v7180_v8, 0.0  ;;  %v9226_v54 = vpop.f32.mrb[12].mxu1 }
 0x687   : > { %7254 = vst [vmem:[%s12106_s23 + $0x58] sm:$0xff] %v7218_v40  ;;  %v7113_v36 = vadd.f32 %v9226_v54, %v12097_v59  ;;  %v6961_v15 = vpop.f32.mrb[13].mxu1  ;;  %v7161_v40 = vld [vmem:[#allocation2 + $0xe3] sm:$0xff] }
 0x688   : > { %7252 = vst [vmem:[%s12106_s23 + $0x48] sm:$0xff] %v7216_v6  ;;  %v7111_v30 = vadd.f32 %v12097_v59, %v6961_v15  ;;  %v9227_v13 = vpop.f32.mrb[14].mxu1 }
 0x689   : > { %v7185_v34 = vadd.f32 %v7149_v45, %v7113_v36  ;;  %v7114_v5 = vadd.f32 %v9227_v13, %v12097_v59  ;;  %v6964_v56 = vpop.f32.mrb[15].mxu1  ;;  %v7159_v45 = vld [vmem:[#allocation2 + $0xd3] sm:$0xff] }
 0x68a   : > { %v7183_v25 = vadd.f32 %v7147_v4, %v7111_v30  ;;  %v7112_v28 = vadd.f32 %v12097_v59, %v6964_v56  ;;  %v7162_v4 = vld [vmem:[#allocation2 + $0xeb] sm:$0xff] }
 0x68b   : > { %v7221_v41 = vmax.f32 %v7185_v34, 0.0  ;;  %v7186_v48 = vadd.f32 %v7150_v9, %v7114_v5  ;;  %v7160_v34 = vld [vmem:[#allocation2 + $0xdb] sm:$0xff] }
 0x68c   : > { %v7219_v33 = vmax.f32 %v7183_v25, 0.0  ;;  %v7184_v62 = vadd.f32 %v7148_v12, %v7112_v28 }
 0x68d   : > { %7257 = vst [vmem:[%s12106_s23 + $0x70] sm:$0xff] %v7221_v41  ;;  %v7222_v21 = vmax.f32 %v7186_v48, 0.0 }
 0x68e   : > { %7255 = vst [vmem:[%s12106_s23 + $0x60] sm:$0xff] %v7219_v33  ;;  %v7220_v23 = vmax.f32 %v7184_v62, 0.0  ;;  %v9230_v20 = vpop.f32.mrb[16].mxu1 }
 0x68f   : > { %7258 = vst [vmem:[%s12106_s23 + $0x78] sm:$0xff] %v7222_v21  ;;  %v7117_v0 = vadd.f32 %v9230_v20, %v12097_v59  ;;  %v6977_v29 = vpop.f32.mrb[17].mxu1  ;;  %v7165_v21 = vld [vmem:[#allocation2 + $0x103] sm:$0xff] }
 0x690   : > { %7256 = vst [vmem:[%s12106_s23 + $0x68] sm:$0xff] %v7220_v23  ;;  %v7115_v37 = vadd.f32 %v12097_v59, %v6977_v29  ;;  %v9231_v57 = vpop.f32.mrb[18].mxu1 }
 0x691   : > { %v7189_v32 = vadd.f32 %v7153_v24, %v7117_v0  ;;  %v7118_v61 = vadd.f32 %v9231_v57, %v12097_v59  ;;  %v6980_v10 = vpop.f32.mrb[19].mxu1  ;;  %v7163_v24 = vld [vmem:[#allocation2 + $0xf3] sm:$0xff] }
 0x692   : > { %v7187_v53 = vadd.f32 %v7151_v63, %v7115_v37  ;;  %v7116_v55 = vadd.f32 %v12097_v59, %v6980_v10  ;;  %v7166_v63 = vld [vmem:[#allocation2 + $0x10b] sm:$0xff] }
 0x693   : > { %v7225_v46 = vmax.f32 %v7189_v32, 0.0  ;;  %v7190_v49 = vadd.f32 %v7154_v47, %v7118_v61  ;;  %v7164_v32 = vld [vmem:[#allocation2 + $0xfb] sm:$0xff] }
 0x694   : > { %v7223_v27 = vmax.f32 %v7187_v53, 0.0  ;;  %v7188_v14 = vadd.f32 %v7152_v26, %v7116_v55 }
 0x695   : > { %7261 = vst [vmem:[%s12106_s23 + $0x90] sm:$0xff] %v7225_v46  ;;  %v7226_v60 = vmax.f32 %v7190_v49, 0.0 }
 0x696   : > { %7259 = vst [vmem:[%s12106_s23 + $0x80] sm:$0xff] %v7223_v27  ;;  %v7224_v43 = vmax.f32 %v7188_v14, 0.0  ;;  %v9234_v16 = vpop.f32.mrb[20].mxu1 }
 0x697   : > { %7262 = vst [vmem:[%s12106_s23 + $0x98] sm:$0xff] %v7226_v60  ;;  %v7121_v18 = vadd.f32 %v9234_v16, %v12097_v59  ;;  %v6993_v1 = vpop.f32.mrb[21].mxu1  ;;  %v7169_v60 = vld [vmem:[#allocation2 + $0x123] sm:$0xff] }
 0x698   : > { %7260 = vst [vmem:[%s12106_s23 + $0x88] sm:$0xff] %v7224_v43  ;;  %v7119_v19 = vadd.f32 %v12097_v59, %v6993_v1  ;;  %v9235_v11 = vpop.f32.mrb[22].mxu1 }
 0x699   : > { %v7193_v3 = vadd.f32 %v7157_v51, %v7121_v18  ;;  %v7122_v31 = vadd.f32 %v9235_v11, %v12097_v59  ;;  %v6996_v50 = vpop.f32.mrb[23].mxu1  ;;  %v7167_v51 = vld [vmem:[#allocation2 + $0x113] sm:$0xff] }
 0x69a   : > { %v7191_v39 = vadd.f32 %v7155_v58, %v7119_v19  ;;  %v7120_v44 = vadd.f32 %v12097_v59, %v6996_v50  ;;  %v7170_v58 = vld [vmem:[#allocation2 + $0x12b] sm:$0xff] }
 0x69b   : > { %v7229_v22 = vmax.f32 %v7193_v3, 0.0  ;;  %v7194_v7 = vadd.f32 %v7158_v35, %v7122_v31  ;;  %v7168_v3 = vld [vmem:[#allocation2 + $0x11b] sm:$0xff] }
 0x69c   : > { %v7227_v52 = vmax.f32 %v7191_v39, 0.0  ;;  %v7192_v2 = vadd.f32 %v7156_v42, %v7120_v44 }
 0x69d   : > { %7265 = vst [vmem:[%s12106_s23 + $0xb0] sm:$0xff] %v7229_v22  ;;  %v7230_v38 = vmax.f32 %v7194_v7, 0.0 }
 0x69e   : > { %7263 = vst [vmem:[%s12106_s23 + $0xa0] sm:$0xff] %v7227_v52  ;;  %v7228_v17 = vmax.f32 %v7192_v2, 0.0  ;;  %v9238_v8 = vpop.f32.mrb[24].mxu1 }
 0x69f   : > { %7266 = vst [vmem:[%s12106_s23 + $0xb8] sm:$0xff] %v7230_v38  ;;  %v7125_v6 = vadd.f32 %v9238_v8, %v12097_v59  ;;  %v7009_v54 = vpop.f32.mrb[25].mxu1 }
 0x6a0   : > { %7264 = vst [vmem:[%s12106_s23 + $0xa8] sm:$0xff] %v7228_v17  ;;  %v7123_v36 = vadd.f32 %v12097_v59, %v7009_v54  ;;  %v9239_v15 = vpop.f32.mrb[26].mxu1 }
 0x6a1   : > { %v7197_v30 = vadd.f32 %v7161_v40, %v7125_v6  ;;  %v7126_v13 = vadd.f32 %v9239_v15, %v12097_v59  ;;  %v7012_v9 = vpop.f32.mrb[27].mxu1 }
 0x6a2   : > { %v7195_v5 = vadd.f32 %v7159_v45, %v7123_v36  ;;  %v7124_v56 = vadd.f32 %v12097_v59, %v7012_v9 }
 0x6a3   : > { %v7233_v12 = vmax.f32 %v7197_v30, 0.0  ;;  %v7198_v25 = vadd.f32 %v7162_v4, %v7126_v13 }
 0x6a4   : > { %v7231_v28 = vmax.f32 %v7195_v5, 0.0  ;;  %v7196_v41 = vadd.f32 %v7160_v34, %v7124_v56 }
 0x6a5   : > { %7269 = vst [vmem:[%s12106_s23 + $0xd0] sm:$0xff] %v7233_v12  ;;  %v7234_v48 = vmax.f32 %v7198_v25, 0.0 }
 0x6a6   : > { %7267 = vst [vmem:[%s12106_s23 + $0xc0] sm:$0xff] %v7231_v28  ;;  %v7232_v33 = vmax.f32 %v7196_v41, 0.0  ;;  %v9242_v62 = vpop.f32.mrb[28].mxu1 }
 0x6a7   : > { %7270 = vst [vmem:[%s12106_s23 + $0xd8] sm:$0xff] %v7234_v48  ;;  %v7129_v23 = vadd.f32 %v9242_v62, %v12097_v59  ;;  %v7025_v20 = vpop.f32.mrb[29].mxu1 }
 0x6a8   : > { %7268 = vst [vmem:[%s12106_s23 + $0xc8] sm:$0xff] %v7232_v33  ;;  %v7127_v0 = vadd.f32 %v12097_v59, %v7025_v20  ;;  %v9243_v29 = vpop.f32.mrb[30].mxu1 }
 0x6a9   : > { %v7201_v37 = vadd.f32 %v7165_v21, %v7129_v23  ;;  %v7130_v57 = vadd.f32 %v9243_v29, %v12097_v59  ;;  %v7028_v47 = vpop.f32.mrb[31].mxu1 }
 0x6aa   : > { %v7199_v61 = vadd.f32 %v7163_v24, %v7127_v0  ;;  %v7128_v10 = vadd.f32 %v12097_v59, %v7028_v47 }
 0x6ab   : > { %v7237_v26 = vmax.f32 %v7201_v37, 0.0  ;;  %v7202_v53 = vadd.f32 %v7166_v63, %v7130_v57 }
 0x6ac   : > { %v7235_v55 = vmax.f32 %v7199_v61, 0.0  ;;  %v7200_v46 = vadd.f32 %v7164_v32, %v7128_v10 }
 0x6ad   : > { %7273 = vst [vmem:[%s12106_s23 + $0xf0] sm:$0xff] %v7237_v26  ;;  %v7238_v49 = vmax.f32 %v7202_v53, 0.0 }
 0x6ae   : > { %7271 = vst [vmem:[%s12106_s23 + $0xe0] sm:$0xff] %v7235_v55  ;;  %v7236_v27 = vmax.f32 %v7200_v46, 0.0  ;;  %v9246_v14 = vpop.f32.mrb[32].mxu1 }
 0x6af   : > { %7274 = vst [vmem:[%s12106_s23 + $0xf8] sm:$0xff] %v7238_v49  ;;  %v7133_v43 = vadd.f32 %v9246_v14, %v12097_v59  ;;  %v7041_v16 = vpop.f32.mrb[33].mxu1 }
 0x6b0   : > { %7272 = vst [vmem:[%s12106_s23 + $0xe8] sm:$0xff] %v7236_v27  ;;  %v7131_v18 = vadd.f32 %v12097_v59, %v7041_v16  ;;  %v9247_v1 = vpop.f32.mrb[34].mxu1 }
 0x6b1   : > { %v7205_v19 = vadd.f32 %v7169_v60, %v7133_v43  ;;  %v7134_v11 = vadd.f32 %v9247_v1, %v12097_v59  ;;  %v7044_v35 = vpop.f32.mrb[35].mxu1 }
 0x6b2   : > { %v7203_v31 = vadd.f32 %v7167_v51, %v7131_v18  ;;  %v7132_v50 = vadd.f32 %v12097_v59, %v7044_v35 }
 0x6b3   : > { %v7241_v42 = vmax.f32 %v7205_v19, 0.0  ;;  %v7206_v39 = vadd.f32 %v7170_v58, %v7134_v11 }
 0x6b4   : > { %v7239_v44 = vmax.f32 %v7203_v31, 0.0  ;;  %v7204_v22 = vadd.f32 %v7168_v3, %v7132_v50 }
 0x6b5   : > { %7277 = vst [vmem:[%s12106_s23 + $0x110] sm:$0xff] %v7241_v42  ;;  %v7242_v7 = vmax.f32 %v7206_v39, 0.0 }
 0x6b6   : > { %7275 = vst [vmem:[%s12106_s23 + $0x100] sm:$0xff] %v7239_v44  ;;  %v7240_v52 = vmax.f32 %v7204_v22, 0.0 }
 0x6b7   : > { %7278 = vst [vmem:[%s12106_s23 + $0x118] sm:$0xff] %v7242_v7 }
 0x6b8   : > { %7276 = vst [vmem:[%s12106_s23 + $0x108] sm:$0xff] %v7240_v52 }
 0x6b9 PF: > { %s15_s18 = sadd.s32 1, %s10082_s18  }
 0x6ba   : > { %p12_p4 = scmp.ge.s32.totalorder %s15_s18, 4  }
 0x6bc   :  { %14 = sbr.rel (!%p12_p4) target bundleno = 1 (0x1), region = 86 }

</bundles_post_ra>
